<compile_context>
chip_gen: v6e
topology: v6e:2x2x1
jax: 0.10.0
libtpu: 0.0.40
codegen_flags: <defaults>
</compile_context>

<pallas_src>
import jax
import jax.numpy as jnp
from jax.experimental import pallas as pl
from jax.experimental.pallas import tpu as pltpu

HEADS = 8
NEG_INF = -1e9


def _gat_layer(x, mask_bias, hb, hsum, diag, rep, hsel, col,
               w_ref, apk_ref, bias_ref):
    """One GATConv(heads=8, concat=False) layer, heads batched along lanes.

    x         : [N, F_in]  f32      mask_bias : [N, H*N]  (0 / -1e9, self-loops incl.)
    hb        : [H, H*N]   bf16     hb[h', h*N+j]      = (h'==h)
    hsum      : [H*N, H]   bf16     hsum[h*N+j, h']    = (h==h')
    diag      : [N, H*N]   f32      diag[j', h*N+j]    = (j'==j)
    rep       : [H*N, N]   bf16     rep[h*N+j, j']     = (j==j')
    hsel      : [H*N, H*hid] bf16   hsel[h*N+j, h'*hid+d] = (h==h')
    col       : [H*hid, hid] bf16   col[h'*hid+d, d']  = (d==d')
    w_ref     : [F_in, H*hid] bf16  apk_ref : [H*hid, 2H] bf16 (block-diag [a_dst | a_src])
    bias_ref  : [1, hid] f32
    """
    # (1) fused projection for all heads, bf16 in / f32 acc
    xh = jnp.dot(x.astype(jnp.bfloat16), w_ref[...],
                 preferred_element_type=jnp.float32)                 # [N, H*hid]
    xh_bf = xh.astype(jnp.bfloat16)

    # (2) all per-head attention coefficients in one K=H*hid contraction
    alpha = jnp.dot(xh_bf, apk_ref[...],
                    preferred_element_type=jnp.float32)              # [N, 2H]
    a_dst = alpha[:, :HEADS].astype(jnp.bfloat16)                    # [N, H]
    a_src = alpha[:, HEADS:].astype(jnp.bfloat16)                    # [N, H]

    # (3) lane-dense [N, H*N] logits slab (head h occupies lanes h*N:(h+1)*N)
    dst_b = jnp.dot(a_dst, hb, preferred_element_type=jnp.float32)   # dst_b[i,hN+j]=a_dst[i,h]
    spread = jnp.dot(a_src, hb, preferred_element_type=jnp.float32)  # spread[j',hN+j]=a_src[j',h]
    src_row = jnp.sum(spread * diag, axis=0, keepdims=True)          # [1, H*N]: a_src[j,h]

    s = dst_b + src_row
    e = jnp.maximum(s, 0.2 * s) + mask_bias                          # LeakyReLU(0.2) + mask
    # per-row shift (constant over j within every head => softmax-invariant),
    # one lane-max instead of 8 per-head XLU max reductions
    e = e - jnp.max(e, axis=1, keepdims=True)
    p = jnp.exp(e)                                                   # masked entries -> 0

    # (4) per-head denominators as an MXU contraction; fold 1/HEADS mean in
    denom = jnp.dot(p.astype(jnp.bfloat16), hsum,
                    preferred_element_type=jnp.float32)              # [N, H]
    denom = jnp.maximum(denom, 1e-30)                                # self-loop guarantees >0
    scale = pl.reciprocal(denom, approx=True) * (1.0 / HEADS)        # EUP
    scale_b = jnp.dot(scale.astype(jnp.bfloat16), hb,
                      preferred_element_type=jnp.float32)            # [N, H*N]
    attn = (p * scale_b).astype(jnp.bfloat16)                        # normalized probs

    # (5) relayout xh -> [H*N, hid] with constant matmuls (MXU has slack),
    #     then ONE fused aggregation matmul over all heads+sources.
    xh_rep = jnp.dot(rep, xh_bf, preferred_element_type=jnp.float32) # xh_rep[hN+j,:]=xh[j,:]
    xh_sel = xh_rep.astype(jnp.bfloat16) * hsel                      # keep head-h column block
    xh_stack = jnp.dot(xh_sel, col,
                       preferred_element_type=jnp.float32).astype(jnp.bfloat16)  # [H*N, hid]

    out = jnp.dot(attn, xh_stack, preferred_element_type=jnp.float32)  # [N, hid]
    # TODO(synk): attention-coefficient dropout is identity in eval mode (training=False).
    return out + bias_ref[...]


def gatnet_kernel(x_ref, mask_ref, hb_ref, hsum_ref, diag_ref, rep_ref,
                  hsel_ref, col_ref,
                  w0_ref, apk0_ref, bias0_ref,
                  w1_ref, apk1_ref, bias1_ref,
                  lw_ref, lb_ref, out_ref):
    mask_bias = mask_ref[...]
    hb = hb_ref[...]
    hsum = hsum_ref[...]
    diag = diag_ref[...]
    rep = rep_ref[...]
    hsel = hsel_ref[...]
    col = col_ref[...]

    # layer 0: conv -> ReLU -> dropout(eval)=identity
    h = _gat_layer(x_ref[...], mask_bias, hb, hsum, diag, rep, hsel, col,
                   w0_ref, apk0_ref, bias0_ref)
    h = jnp.maximum(h, 0.0)
    # layer 1
    h = _gat_layer(h, mask_bias, hb, hsum, diag, rep, hsel, col,
                   w1_ref, apk1_ref, bias1_ref)
    h = jnp.maximum(h, 0.0)

    # final linear (bf16 operands, f32 acc) + exact log_softmax over classes
    z = jnp.dot(h.astype(jnp.bfloat16), lw_ref[...],
                preferred_element_type=jnp.float32) + lb_ref[...]
    z = z - jnp.max(z, axis=1, keepdims=True)
    out_ref[...] = z - jnp.log(jnp.sum(jnp.exp(z), axis=1, keepdims=True))


def _block_diag_att(a):
    """[heads, hidden] attention vector -> block-diagonal [heads*hidden, heads]."""
    heads, hidden = a.shape
    eye = jnp.eye(heads, dtype=a.dtype)
    return (a[:, :, None] * eye[:, None, :]).reshape(heads * hidden, heads)


def gatnet_forward(x, adj, params):
    (w0, as0, ad0, b0, w1, as1, ad1, b1, lw, lb) = params
    n, _ = x.shape
    hidden = b0.shape[1]
    num_class = lw.shape[1]
    bf16 = jnp.bfloat16

    # --- host-side preprocessing (casts, block-diag packing, structural 0/1 matrices,
    #     additive adjacency bias) so the kernel contains no where / repacking ---
    mask_bias = jnp.where(adj > 0, 0.0, NEG_INF).astype(jnp.float32)        # [N, N]
    mask_exp = jnp.tile(mask_bias, (1, HEADS))                              # [N, H*N]

    eye_h = jnp.eye(HEADS, dtype=jnp.float32)
    eye_n = jnp.eye(n, dtype=jnp.float32)
    hb = jnp.repeat(eye_h, n, axis=1).astype(bf16)                          # [H, H*N]
    hsum = jnp.repeat(eye_h, n, axis=0).astype(bf16)                        # [H*N, H]
    diag = jnp.tile(eye_n, (1, HEADS))                                      # [N, H*N] f32
    rep = jnp.tile(eye_n, (HEADS, 1)).astype(bf16)                          # [H*N, N]
    hsel = jnp.repeat(jnp.repeat(eye_h, n, axis=0), hidden, axis=1).astype(bf16)  # [H*N, H*hid]
    col = jnp.tile(jnp.eye(hidden, dtype=jnp.float32), (HEADS, 1)).astype(bf16)   # [H*hid, hid]

    apk0 = jnp.concatenate([_block_diag_att(ad0), _block_diag_att(as0)], axis=1).astype(bf16)
    apk1 = jnp.concatenate([_block_diag_att(ad1), _block_diag_att(as1)], axis=1).astype(bf16)

    args = (x, mask_exp, hb, hsum, diag, rep, hsel, col,
            w0.astype(bf16), apk0, b0,
            w1.astype(bf16), apk1, b1,
            lw.astype(bf16), lb)

    def full_spec(a):
        return pl.BlockSpec(a.shape, lambda i: (0,) * a.ndim)

    # TODO(synk): for large graphs, add a destination-row grid axis ("parallel"),
    # tile mask/e/p/output rows, and raise vmem_limit_bytes; the single-block
    # grid here is sized for the toy N=32 case and is VMEM-trivial.
    return pl.pallas_call(
        gatnet_kernel,
        out_shape=jax.ShapeDtypeStruct((n, num_class), jnp.float32),
        grid=(1,),
        in_specs=[full_spec(a) for a in args],
        out_specs=pl.BlockSpec((n, num_class), lambda i: (0, 0)),
        compiler_params=pltpu.CompilerParams(
            dimension_semantics=("arbitrary",)),
    )(*args)


def init_params(key, num_feature, hidden, num_class):
    """Deterministic synthetic parameters (shapes match PyG GATConv / nn.Linear)."""
    ks = jax.random.split(key, 10)
    f32 = jnp.float32
    # GATConv 0: lin weight [F_in, heads*hidden], att_src/att_dst [heads, hidden], bias [hidden]
    w0 = jax.random.normal(ks[0], (num_feature, HEADS * hidden), f32) * (1.0 / jnp.sqrt(num_feature))
    as0 = jax.random.normal(ks[1], (HEADS, hidden), f32) * 0.1
    ad0 = jax.random.normal(ks[2], (HEADS, hidden), f32) * 0.1
    b0 = jnp.zeros((1, hidden), f32)
    # GATConv 1
    w1 = jax.random.normal(ks[3], (hidden, HEADS * hidden), f32) * (1.0 / jnp.sqrt(hidden))
    as1 = jax.random.normal(ks[4], (HEADS, hidden), f32) * 0.1
    ad1 = jax.random.normal(ks[5], (HEADS, hidden), f32) * 0.1
    b1 = jnp.zeros((1, hidden), f32)
    # Linear(hidden, num_class): torch stores weight [C, H]; pre-transposed to [H, C]
    lw = jax.random.normal(ks[6], (num_class, hidden), f32) * (1.0 / jnp.sqrt(hidden))
    lw = lw.T
    lb = jax.random.normal(ks[7], (1, num_class), f32) * 0.1
    return (w0, as0, ad0, b0, w1, as1, ad1, b1, lw, lb)


if __name__ == "__main__":
    # Small synthetic graph, consistent with the module's forward.
    NUM_NODES = 32
    NUM_EDGES = 48
    NUM_FEATURE = 16
    HIDDEN = 64
    NUM_CLASS = 8

    key = jax.random.PRNGKey(0)
    k_x, k_src, k_dst, k_p = jax.random.split(key, 4)

    # data.x, data.edge_index, data.edge_attr
    x = jax.random.normal(k_x, (NUM_NODES, NUM_FEATURE), jnp.float32)
    src = jax.random.randint(k_src, (NUM_EDGES,), 0, NUM_NODES)
    dst = jax.random.randint(k_dst, (NUM_EDGES,), 0, NUM_NODES)
    edge_attr = jnp.ones((NUM_EDGES, 1), jnp.float32)  # unused by forward (parity only)

    # Glue: edge_index -> dense adjacency mask [dst, src] with self-loops
    # (matching PyG GATConv add_self_loops=True).
    adj = jnp.zeros((NUM_NODES, NUM_NODES), jnp.float32)
    adj = adj.at[dst, src].set(1.0)
    adj = jnp.maximum(adj, jnp.eye(NUM_NODES, dtype=jnp.float32))

    params = init_params(k_p, NUM_FEATURE, HIDDEN, NUM_CLASS)

    out = jax.jit(gatnet_forward)(x, adj, params)
    out = jax.block_until_ready(out)

    assert out.shape == (NUM_NODES, NUM_CLASS)
    # log_softmax rows must sum (in prob space) to 1
    assert bool(jnp.allclose(jnp.sum(jnp.exp(out), axis=1), 1.0, atol=1e-4))
    print("KERNEL_OK")
</pallas_src>

<mosaic_0001>
module attributes {stable_mosaic.version = 11 : i64} {
  func.func @gatnet_kernel(%arg0: i32, %arg1: memref<32x16xf32, #tpu.memory_space<vmem>>, %arg2: memref<32x256xf32, #tpu.memory_space<vmem>>, %arg3: memref<8x256xbf16, #tpu.memory_space<vmem>>, %arg4: memref<256x8xbf16, #tpu.memory_space<vmem>>, %arg5: memref<32x256xf32, #tpu.memory_space<vmem>>, %arg6: memref<256x32xbf16, #tpu.memory_space<vmem>>, %arg7: memref<256x512xbf16, #tpu.memory_space<vmem>>, %arg8: memref<512x64xbf16, #tpu.memory_space<vmem>>, %arg9: memref<16x512xbf16, #tpu.memory_space<vmem>>, %arg10: memref<512x16xbf16, #tpu.memory_space<vmem>>, %arg11: memref<1x64xf32, #tpu.memory_space<vmem>>, %arg12: memref<64x512xbf16, #tpu.memory_space<vmem>>, %arg13: memref<512x16xbf16, #tpu.memory_space<vmem>>, %arg14: memref<1x64xf32, #tpu.memory_space<vmem>>, %arg15: memref<64x8xbf16, #tpu.memory_space<vmem>>, %arg16: memref<1x8xf32, #tpu.memory_space<vmem>>, %arg17: memref<32x8xf32, #tpu.memory_space<vmem>>) attributes {dimension_semantics = [#tpu.dimension_semantics<arbitrary>], iteration_bounds = array<i64: 1>, scalar_prefetch = 0 : i64, scratch_operands = 0 : i64, tpu.core_type = #tpu.core_type<tc>, window_params = [{pipeline_mode = #tpu.pipeline_mode<synchronous>, transform_indices = @transform_0, window_bounds = array<i64: 32, 16>}, {pipeline_mode = #tpu.pipeline_mode<synchronous>, transform_indices = @transform_1, window_bounds = array<i64: 32, 256>}, {pipeline_mode = #tpu.pipeline_mode<synchronous>, transform_indices = @transform_2, window_bounds = array<i64: 8, 256>}, {pipeline_mode = #tpu.pipeline_mode<synchronous>, transform_indices = @transform_3, window_bounds = array<i64: 256, 8>}, {pipeline_mode = #tpu.pipeline_mode<synchronous>, transform_indices = @transform_4, window_bounds = array<i64: 32, 256>}, {pipeline_mode = #tpu.pipeline_mode<synchronous>, transform_indices = @transform_5, window_bounds = array<i64: 256, 32>}, {pipeline_mode = #tpu.pipeline_mode<synchronous>, transform_indices = @transform_6, window_bounds = array<i64: 256, 512>}, {pipeline_mode = #tpu.pipeline_mode<synchronous>, transform_indices = @transform_7, window_bounds = array<i64: 512, 64>}, {pipeline_mode = #tpu.pipeline_mode<synchronous>, transform_indices = @transform_8, window_bounds = array<i64: 16, 512>}, {pipeline_mode = #tpu.pipeline_mode<synchronous>, transform_indices = @transform_9, window_bounds = array<i64: 512, 16>}, {pipeline_mode = #tpu.pipeline_mode<synchronous>, transform_indices = @transform_10, window_bounds = array<i64: 1, 64>}, {pipeline_mode = #tpu.pipeline_mode<synchronous>, transform_indices = @transform_11, window_bounds = array<i64: 64, 512>}, {pipeline_mode = #tpu.pipeline_mode<synchronous>, transform_indices = @transform_12, window_bounds = array<i64: 512, 16>}, {pipeline_mode = #tpu.pipeline_mode<synchronous>, transform_indices = @transform_13, window_bounds = array<i64: 1, 64>}, {pipeline_mode = #tpu.pipeline_mode<synchronous>, transform_indices = @transform_14, window_bounds = array<i64: 64, 8>}, {pipeline_mode = #tpu.pipeline_mode<synchronous>, transform_indices = @transform_15, window_bounds = array<i64: 1, 8>}, {pipeline_mode = #tpu.pipeline_mode<synchronous>, transform_indices = @transform_16, window_bounds = array<i64: 32, 8>}]} {
    %c0 = arith.constant 0 : index
    %c0_0 = arith.constant 0 : index
    %0 = vector.load %arg2[%c0, %c0_0] : memref<32x256xf32, #tpu.memory_space<vmem>>, vector<32x256xf32>
    %c0_1 = arith.constant 0 : index
    %c0_2 = arith.constant 0 : index
    %1 = vector.load %arg3[%c0_1, %c0_2] : memref<8x256xbf16, #tpu.memory_space<vmem>>, vector<8x256xbf16>
    %c0_3 = arith.constant 0 : index
    %c0_4 = arith.constant 0 : index
    %2 = vector.load %arg4[%c0_3, %c0_4] : memref<256x8xbf16, #tpu.memory_space<vmem>>, vector<256x8xbf16>
    %c0_5 = arith.constant 0 : index
    %c0_6 = arith.constant 0 : index
    %3 = vector.load %arg5[%c0_5, %c0_6] : memref<32x256xf32, #tpu.memory_space<vmem>>, vector<32x256xf32>
    %c0_7 = arith.constant 0 : index
    %c0_8 = arith.constant 0 : index
    %4 = vector.load %arg6[%c0_7, %c0_8] : memref<256x32xbf16, #tpu.memory_space<vmem>>, vector<256x32xbf16>
    %c0_9 = arith.constant 0 : index
    %c0_10 = arith.constant 0 : index
    %5 = vector.load %arg7[%c0_9, %c0_10] : memref<256x512xbf16, #tpu.memory_space<vmem>>, vector<256x512xbf16>
    %c0_11 = arith.constant 0 : index
    %c0_12 = arith.constant 0 : index
    %6 = vector.load %arg8[%c0_11, %c0_12] : memref<512x64xbf16, #tpu.memory_space<vmem>>, vector<512x64xbf16>
    %c0_13 = arith.constant 0 : index
    %c0_14 = arith.constant 0 : index
    %7 = vector.load %arg1[%c0_13, %c0_14] : memref<32x16xf32, #tpu.memory_space<vmem>>, vector<32x16xf32>
    %8 = arith.truncf %7 : vector<32x16xf32> to vector<32x16xbf16>
    %c0_15 = arith.constant 0 : index
    %c0_16 = arith.constant 0 : index
    %9 = vector.load %arg9[%c0_15, %c0_16] : memref<16x512xbf16, #tpu.memory_space<vmem>>, vector<16x512xbf16>
    %cst = arith.constant dense<0.000000e+00> : vector<32x512xf32>
    %10 = tpu.matmul %8, %9, %cst {dimension_numbers = #tpu.dot_dimension_numbers<[1], [0], [0], [1], [0, 0, 1, 1], [], []>} : vector<32x16xbf16>, vector<16x512xbf16>, vector<32x512xf32> -> vector<32x512xf32>
    %11 = arith.truncf %10 : vector<32x512xf32> to vector<32x512xbf16>
    %c0_17 = arith.constant 0 : index
    %c0_18 = arith.constant 0 : index
    %12 = vector.load %arg10[%c0_17, %c0_18] : memref<512x16xbf16, #tpu.memory_space<vmem>>, vector<512x16xbf16>
    %cst_19 = arith.constant dense<0.000000e+00> : vector<32x16xf32>
    %13 = tpu.matmul %11, %12, %cst_19 {dimension_numbers = #tpu.dot_dimension_numbers<[1], [0], [0], [1], [0, 0, 1, 1], [], []>} : vector<32x512xbf16>, vector<512x16xbf16>, vector<32x16xf32> -> vector<32x16xf32>
    %14 = vector.extract_strided_slice %13 {offsets = [0, 0], sizes = [32, 8], strides = [1, 1]} : vector<32x16xf32> to vector<32x8xf32>
    %15 = arith.truncf %14 : vector<32x8xf32> to vector<32x8xbf16>
    %16 = vector.extract_strided_slice %13 {offsets = [0, 8], sizes = [32, 8], strides = [1, 1]} : vector<32x16xf32> to vector<32x8xf32>
    %17 = arith.truncf %16 : vector<32x8xf32> to vector<32x8xbf16>
    %cst_20 = arith.constant dense<0.000000e+00> : vector<32x256xf32>
    %18 = tpu.matmul %15, %1, %cst_20 {dimension_numbers = #tpu.dot_dimension_numbers<[1], [0], [0], [1], [0, 0, 1, 1], [], []>} : vector<32x8xbf16>, vector<8x256xbf16>, vector<32x256xf32> -> vector<32x256xf32>
    %cst_21 = arith.constant dense<0.000000e+00> : vector<32x256xf32>
    %19 = tpu.matmul %17, %1, %cst_21 {dimension_numbers = #tpu.dot_dimension_numbers<[1], [0], [0], [1], [0, 0, 1, 1], [], []>} : vector<32x8xbf16>, vector<8x256xbf16>, vector<32x256xf32> -> vector<32x256xf32>
    %20 = arith.mulf %19, %3 : vector<32x256xf32>
    %cst_22 = arith.constant dense<0.000000e+00> : vector<256xf32>
    %21 = vector.multi_reduction <add>, %20, %cst_22 [0] : vector<32x256xf32> to vector<256xf32>
    %22 = vector.shape_cast %21 : vector<256xf32> to vector<1x256xf32>
    %23 = vector.broadcast %22 : vector<1x256xf32> to vector<32x256xf32>
    %24 = arith.addf %18, %23 : vector<32x256xf32>
    %cst_23 = arith.constant 2.000000e-01 : f32
    %25 = vector.broadcast %cst_23 : f32 to vector<32x256xf32>
    %26 = arith.mulf %25, %24 : vector<32x256xf32>
    %27 = arith.maximumf %24, %26 : vector<32x256xf32>
    %28 = arith.addf %27, %0 : vector<32x256xf32>
    %cst_24 = arith.constant dense<0xFF800000> : vector<32xf32>
    %29 = vector.multi_reduction <maximumf>, %28, %cst_24 [1] : vector<32x256xf32> to vector<32xf32>
    %30 = vector.shape_cast %29 : vector<32xf32> to vector<32x1xf32>
    %31 = vector.broadcast %30 : vector<32x1xf32> to vector<32x256xf32>
    %32 = arith.subf %28, %31 : vector<32x256xf32>
    %33 = math.exp %32 : vector<32x256xf32>
    %34 = arith.truncf %33 : vector<32x256xf32> to vector<32x256xbf16>
    %cst_25 = arith.constant dense<0.000000e+00> : vector<32x8xf32>
    %35 = tpu.matmul %34, %2, %cst_25 {dimension_numbers = #tpu.dot_dimension_numbers<[1], [0], [0], [1], [0, 0, 1, 1], [], []>} : vector<32x256xbf16>, vector<256x8xbf16>, vector<32x8xf32> -> vector<32x8xf32>
    %cst_26 = arith.constant 1.000000e-30 : f32
    %36 = vector.broadcast %cst_26 : f32 to vector<32x8xf32>
    %37 = arith.maximumf %35, %36 : vector<32x8xf32>
    %38 = tpu.reciprocal %37 {approx = true} : vector<32x8xf32> -> vector<32x8xf32>
    %cst_27 = arith.constant 1.250000e-01 : f32
    %39 = vector.broadcast %cst_27 : f32 to vector<32x8xf32>
    %40 = arith.mulf %38, %39 : vector<32x8xf32>
    %41 = arith.truncf %40 : vector<32x8xf32> to vector<32x8xbf16>
    %cst_28 = arith.constant dense<0.000000e+00> : vector<32x256xf32>
    %42 = tpu.matmul %41, %1, %cst_28 {dimension_numbers = #tpu.dot_dimension_numbers<[1], [0], [0], [1], [0, 0, 1, 1], [], []>} : vector<32x8xbf16>, vector<8x256xbf16>, vector<32x256xf32> -> vector<32x256xf32>
    %43 = arith.mulf %33, %42 : vector<32x256xf32>
    %44 = arith.truncf %43 : vector<32x256xf32> to vector<32x256xbf16>
    %cst_29 = arith.constant dense<0.000000e+00> : vector<256x512xf32>
    %45 = tpu.matmul %4, %11, %cst_29 {dimension_numbers = #tpu.dot_dimension_numbers<[1], [0], [0], [1], [0, 0, 1, 1], [], []>} : vector<256x32xbf16>, vector<32x512xbf16>, vector<256x512xf32> -> vector<256x512xf32>
    %46 = arith.truncf %45 : vector<256x512xf32> to vector<256x512xbf16>
    %47 = arith.mulf %46, %5 : vector<256x512xbf16>
    %cst_30 = arith.constant dense<0.000000e+00> : vector<256x64xf32>
    %48 = tpu.matmul %47, %6, %cst_30 {dimension_numbers = #tpu.dot_dimension_numbers<[1], [0], [0], [1], [0, 0, 1, 1], [], []>} : vector<256x512xbf16>, vector<512x64xbf16>, vector<256x64xf32> -> vector<256x64xf32>
    %49 = arith.truncf %48 : vector<256x64xf32> to vector<256x64xbf16>
    %cst_31 = arith.constant dense<0.000000e+00> : vector<32x64xf32>
    %50 = tpu.matmul %44, %49, %cst_31 {dimension_numbers = #tpu.dot_dimension_numbers<[1], [0], [0], [1], [0, 0, 1, 1], [], []>} : vector<32x256xbf16>, vector<256x64xbf16>, vector<32x64xf32> -> vector<32x64xf32>
    %c0_32 = arith.constant 0 : index
    %c0_33 = arith.constant 0 : index
    %51 = vector.load %arg11[%c0_32, %c0_33] : memref<1x64xf32, #tpu.memory_space<vmem>>, vector<1x64xf32>
    %52 = vector.broadcast %51 : vector<1x64xf32> to vector<32x64xf32>
    %53 = arith.addf %50, %52 : vector<32x64xf32>
    %cst_34 = arith.constant 0.000000e+00 : f32
    %54 = vector.broadcast %cst_34 : f32 to vector<32x64xf32>
    %55 = arith.maximumf %53, %54 : vector<32x64xf32>
    %56 = arith.truncf %55 : vector<32x64xf32> to vector<32x64xbf16>
    %c0_35 = arith.constant 0 : index
    %c0_36 = arith.constant 0 : index
    %57 = vector.load %arg12[%c0_35, %c0_36] : memref<64x512xbf16, #tpu.memory_space<vmem>>, vector<64x512xbf16>
    %cst_37 = arith.constant dense<0.000000e+00> : vector<32x512xf32>
    %58 = tpu.matmul %56, %57, %cst_37 {dimension_numbers = #tpu.dot_dimension_numbers<[1], [0], [0], [1], [0, 0, 1, 1], [], []>} : vector<32x64xbf16>, vector<64x512xbf16>, vector<32x512xf32> -> vector<32x512xf32>
    %59 = arith.truncf %58 : vector<32x512xf32> to vector<32x512xbf16>
    %c0_38 = arith.constant 0 : index
    %c0_39 = arith.constant 0 : index
    %60 = vector.load %arg13[%c0_38, %c0_39] : memref<512x16xbf16, #tpu.memory_space<vmem>>, vector<512x16xbf16>
    %cst_40 = arith.constant dense<0.000000e+00> : vector<32x16xf32>
    %61 = tpu.matmul %59, %60, %cst_40 {dimension_numbers = #tpu.dot_dimension_numbers<[1], [0], [0], [1], [0, 0, 1, 1], [], []>} : vector<32x512xbf16>, vector<512x16xbf16>, vector<32x16xf32> -> vector<32x16xf32>
    %62 = vector.extract_strided_slice %61 {offsets = [0, 0], sizes = [32, 8], strides = [1, 1]} : vector<32x16xf32> to vector<32x8xf32>
    %63 = arith.truncf %62 : vector<32x8xf32> to vector<32x8xbf16>
    %64 = vector.extract_strided_slice %61 {offsets = [0, 8], sizes = [32, 8], strides = [1, 1]} : vector<32x16xf32> to vector<32x8xf32>
    %65 = arith.truncf %64 : vector<32x8xf32> to vector<32x8xbf16>
    %cst_41 = arith.constant dense<0.000000e+00> : vector<32x256xf32>
    %66 = tpu.matmul %63, %1, %cst_41 {dimension_numbers = #tpu.dot_dimension_numbers<[1], [0], [0], [1], [0, 0, 1, 1], [], []>} : vector<32x8xbf16>, vector<8x256xbf16>, vector<32x256xf32> -> vector<32x256xf32>
    %cst_42 = arith.constant dense<0.000000e+00> : vector<32x256xf32>
    %67 = tpu.matmul %65, %1, %cst_42 {dimension_numbers = #tpu.dot_dimension_numbers<[1], [0], [0], [1], [0, 0, 1, 1], [], []>} : vector<32x8xbf16>, vector<8x256xbf16>, vector<32x256xf32> -> vector<32x256xf32>
    %68 = arith.mulf %67, %3 : vector<32x256xf32>
    %cst_43 = arith.constant dense<0.000000e+00> : vector<256xf32>
    %69 = vector.multi_reduction <add>, %68, %cst_43 [0] : vector<32x256xf32> to vector<256xf32>
    %70 = vector.shape_cast %69 : vector<256xf32> to vector<1x256xf32>
    %71 = vector.broadcast %70 : vector<1x256xf32> to vector<32x256xf32>
    %72 = arith.addf %66, %71 : vector<32x256xf32>
    %cst_44 = arith.constant 2.000000e-01 : f32
    %73 = vector.broadcast %cst_44 : f32 to vector<32x256xf32>
    %74 = arith.mulf %73, %72 : vector<32x256xf32>
    %75 = arith.maximumf %72, %74 : vector<32x256xf32>
    %76 = arith.addf %75, %0 : vector<32x256xf32>
    %cst_45 = arith.constant dense<0xFF800000> : vector<32xf32>
    %77 = vector.multi_reduction <maximumf>, %76, %cst_45 [1] : vector<32x256xf32> to vector<32xf32>
    %78 = vector.shape_cast %77 : vector<32xf32> to vector<32x1xf32>
    %79 = vector.broadcast %78 : vector<32x1xf32> to vector<32x256xf32>
    %80 = arith.subf %76, %79 : vector<32x256xf32>
    %81 = math.exp %80 : vector<32x256xf32>
    %82 = arith.truncf %81 : vector<32x256xf32> to vector<32x256xbf16>
    %cst_46 = arith.constant dense<0.000000e+00> : vector<32x8xf32>
    %83 = tpu.matmul %82, %2, %cst_46 {dimension_numbers = #tpu.dot_dimension_numbers<[1], [0], [0], [1], [0, 0, 1, 1], [], []>} : vector<32x256xbf16>, vector<256x8xbf16>, vector<32x8xf32> -> vector<32x8xf32>
    %cst_47 = arith.constant 1.000000e-30 : f32
    %84 = vector.broadcast %cst_47 : f32 to vector<32x8xf32>
    %85 = arith.maximumf %83, %84 : vector<32x8xf32>
    %86 = tpu.reciprocal %85 {approx = true} : vector<32x8xf32> -> vector<32x8xf32>
    %cst_48 = arith.constant 1.250000e-01 : f32
    %87 = vector.broadcast %cst_48 : f32 to vector<32x8xf32>
    %88 = arith.mulf %86, %87 : vector<32x8xf32>
    %89 = arith.truncf %88 : vector<32x8xf32> to vector<32x8xbf16>
    %cst_49 = arith.constant dense<0.000000e+00> : vector<32x256xf32>
    %90 = tpu.matmul %89, %1, %cst_49 {dimension_numbers = #tpu.dot_dimension_numbers<[1], [0], [0], [1], [0, 0, 1, 1], [], []>} : vector<32x8xbf16>, vector<8x256xbf16>, vector<32x256xf32> -> vector<32x256xf32>
    %91 = arith.mulf %81, %90 : vector<32x256xf32>
    %92 = arith.truncf %91 : vector<32x256xf32> to vector<32x256xbf16>
    %cst_50 = arith.constant dense<0.000000e+00> : vector<256x512xf32>
    %93 = tpu.matmul %4, %59, %cst_50 {dimension_numbers = #tpu.dot_dimension_numbers<[1], [0], [0], [1], [0, 0, 1, 1], [], []>} : vector<256x32xbf16>, vector<32x512xbf16>, vector<256x512xf32> -> vector<256x512xf32>
    %94 = arith.truncf %93 : vector<256x512xf32> to vector<256x512xbf16>
    %95 = arith.mulf %94, %5 : vector<256x512xbf16>
    %cst_51 = arith.constant dense<0.000000e+00> : vector<256x64xf32>
    %96 = tpu.matmul %95, %6, %cst_51 {dimension_numbers = #tpu.dot_dimension_numbers<[1], [0], [0], [1], [0, 0, 1, 1], [], []>} : vector<256x512xbf16>, vector<512x64xbf16>, vector<256x64xf32> -> vector<256x64xf32>
    %97 = arith.truncf %96 : vector<256x64xf32> to vector<256x64xbf16>
    %cst_52 = arith.constant dense<0.000000e+00> : vector<32x64xf32>
    %98 = tpu.matmul %92, %97, %cst_52 {dimension_numbers = #tpu.dot_dimension_numbers<[1], [0], [0], [1], [0, 0, 1, 1], [], []>} : vector<32x256xbf16>, vector<256x64xbf16>, vector<32x64xf32> -> vector<32x64xf32>
    %c0_53 = arith.constant 0 : index
    %c0_54 = arith.constant 0 : index
    %99 = vector.load %arg14[%c0_53, %c0_54] : memref<1x64xf32, #tpu.memory_space<vmem>>, vector<1x64xf32>
    %100 = vector.broadcast %99 : vector<1x64xf32> to vector<32x64xf32>
    %101 = arith.addf %98, %100 : vector<32x64xf32>
    %cst_55 = arith.constant 0.000000e+00 : f32
    %102 = vector.broadcast %cst_55 : f32 to vector<32x64xf32>
    %103 = arith.maximumf %101, %102 : vector<32x64xf32>
    %104 = arith.truncf %103 : vector<32x64xf32> to vector<32x64xbf16>
    %c0_56 = arith.constant 0 : index
    %c0_57 = arith.constant 0 : index
    %105 = vector.load %arg15[%c0_56, %c0_57] : memref<64x8xbf16, #tpu.memory_space<vmem>>, vector<64x8xbf16>
    %cst_58 = arith.constant dense<0.000000e+00> : vector<32x8xf32>
    %106 = tpu.matmul %104, %105, %cst_58 {dimension_numbers = #tpu.dot_dimension_numbers<[1], [0], [0], [1], [0, 0, 1, 1], [], []>} : vector<32x64xbf16>, vector<64x8xbf16>, vector<32x8xf32> -> vector<32x8xf32>
    %c0_59 = arith.constant 0 : index
    %c0_60 = arith.constant 0 : index
    %107 = vector.load %arg16[%c0_59, %c0_60] : memref<1x8xf32, #tpu.memory_space<vmem>>, vector<1x8xf32>
    %108 = vector.broadcast %107 : vector<1x8xf32> to vector<32x8xf32>
    %109 = arith.addf %106, %108 : vector<32x8xf32>
    %cst_61 = arith.constant dense<0xFF800000> : vector<32xf32>
    %110 = vector.multi_reduction <maximumf>, %109, %cst_61 [1] : vector<32x8xf32> to vector<32xf32>
    %111 = vector.shape_cast %110 : vector<32xf32> to vector<32x1xf32>
    %112 = vector.broadcast %111 : vector<32x1xf32> to vector<32x8xf32>
    %113 = arith.subf %109, %112 : vector<32x8xf32>
    %114 = math.exp %113 : vector<32x8xf32>
    %cst_62 = arith.constant dense<0.000000e+00> : vector<32xf32>
    %115 = vector.multi_reduction <add>, %114, %cst_62 [1] : vector<32x8xf32> to vector<32xf32>
    %116 = vector.shape_cast %115 : vector<32xf32> to vector<32x1xf32>
    %117 = math.log %116 : vector<32x1xf32>
    %118 = vector.broadcast %117 : vector<32x1xf32> to vector<32x8xf32>
    %119 = arith.subf %113, %118 : vector<32x8xf32>
    %c0_63 = arith.constant 0 : index
    %c0_64 = arith.constant 0 : index
    %120 = vector.load %arg17[%c0_63, %c0_64] : memref<32x8xf32, #tpu.memory_space<vmem>>, vector<32x8xf32>
    tpu.vector_store %arg17[%c0_63, %c0_64], %119 {strides = array<i32>} : memref<32x8xf32, #tpu.memory_space<vmem>>, vector<32x8xf32>,
    return
  }
  func.func @transform_0(%arg0: i32) -> (i32, i32) {
    %c0_i32 = arith.constant 0 : i32
    %c0_i32_0 = arith.constant 0 : i32
    %c0_i32_1 = arith.constant 0 : i32
    return %c0_i32, %c0_i32_0 : i32, i32
  }
  func.func @transform_1(%arg0: i32) -> (i32, i32) {
    %c0_i32 = arith.constant 0 : i32
    %c0_i32_0 = arith.constant 0 : i32
    %c0_i32_1 = arith.constant 0 : i32
    return %c0_i32, %c0_i32_0 : i32, i32
  }
  func.func @transform_2(%arg0: i32) -> (i32, i32) {
    %c0_i32 = arith.constant 0 : i32
    %c0_i32_0 = arith.constant 0 : i32
    %c0_i32_1 = arith.constant 0 : i32
    return %c0_i32, %c0_i32_0 : i32, i32
  }
  func.func @transform_3(%arg0: i32) -> (i32, i32) {
    %c0_i32 = arith.constant 0 : i32
    %c0_i32_0 = arith.constant 0 : i32
    %c0_i32_1 = arith.constant 0 : i32
    return %c0_i32, %c0_i32_0 : i32, i32
  }
  func.func @transform_4(%arg0: i32) -> (i32, i32) {
    %c0_i32 = arith.constant 0 : i32
    %c0_i32_0 = arith.constant 0 : i32
    %c0_i32_1 = arith.constant 0 : i32
    return %c0_i32, %c0_i32_0 : i32, i32
  }
  func.func @transform_5(%arg0: i32) -> (i32, i32) {
    %c0_i32 = arith.constant 0 : i32
    %c0_i32_0 = arith.constant 0 : i32
    %c0_i32_1 = arith.constant 0 : i32
    return %c0_i32, %c0_i32_0 : i32, i32
  }
  func.func @transform_6(%arg0: i32) -> (i32, i32) {
    %c0_i32 = arith.constant 0 : i32
    %c0_i32_0 = arith.constant 0 : i32
    %c0_i32_1 = arith.constant 0 : i32
    return %c0_i32, %c0_i32_0 : i32, i32
  }
  func.func @transform_7(%arg0: i32) -> (i32, i32) {
    %c0_i32 = arith.constant 0 : i32
    %c0_i32_0 = arith.constant 0 : i32
    %c0_i32_1 = arith.constant 0 : i32
    return %c0_i32, %c0_i32_0 : i32, i32
  }
  func.func @transform_8(%arg0: i32) -> (i32, i32) {
    %c0_i32 = arith.constant 0 : i32
    %c0_i32_0 = arith.constant 0 : i32
    %c0_i32_1 = arith.constant 0 : i32
    return %c0_i32, %c0_i32_0 : i32, i32
  }
  func.func @transform_9(%arg0: i32) -> (i32, i32) {
    %c0_i32 = arith.constant 0 : i32
    %c0_i32_0 = arith.constant 0 : i32
    %c0_i32_1 = arith.constant 0 : i32
    return %c0_i32, %c0_i32_0 : i32, i32
  }
  func.func @transform_10(%arg0: i32) -> (i32, i32) {
    %c0_i32 = arith.constant 0 : i32
    %c0_i32_0 = arith.constant 0 : i32
    %c0_i32_1 = arith.constant 0 : i32
    return %c0_i32, %c0_i32_0 : i32, i32
  }
  func.func @transform_11(%arg0: i32) -> (i32, i32) {
    %c0_i32 = arith.constant 0 : i32
    %c0_i32_0 = arith.constant 0 : i32
    %c0_i32_1 = arith.constant 0 : i32
    return %c0_i32, %c0_i32_0 : i32, i32
  }
  func.func @transform_12(%arg0: i32) -> (i32, i32) {
    %c0_i32 = arith.constant 0 : i32
    %c0_i32_0 = arith.constant 0 : i32
    %c0_i32_1 = arith.constant 0 : i32
    return %c0_i32, %c0_i32_0 : i32, i32
  }
  func.func @transform_13(%arg0: i32) -> (i32, i32) {
    %c0_i32 = arith.constant 0 : i32
    %c0_i32_0 = arith.constant 0 : i32
    %c0_i32_1 = arith.constant 0 : i32
    return %c0_i32, %c0_i32_0 : i32, i32
  }
  func.func @transform_14(%arg0: i32) -> (i32, i32) {
    %c0_i32 = arith.constant 0 : i32
    %c0_i32_0 = arith.constant 0 : i32
    %c0_i32_1 = arith.constant 0 : i32
    return %c0_i32, %c0_i32_0 : i32, i32
  }
  func.func @transform_15(%arg0: i32) -> (i32, i32) {
    %c0_i32 = arith.constant 0 : i32
    %c0_i32_0 = arith.constant 0 : i32
    %c0_i32_1 = arith.constant 0 : i32
    return %c0_i32, %c0_i32_0 : i32, i32
  }
  func.func @transform_16(%arg0: i32) -> (i32, i32) {
    %c0_i32 = arith.constant 0 : i32
    %c0_i32_0 = arith.constant 0 : i32
    %c0_i32_1 = arith.constant 0 : i32
    return %c0_i32, %c0_i32_0 : i32, i32
  }
}

</mosaic_0001>

<bundles_post_ra>
// kernel: tile.24
= control target key start
LH: loop header
LB: loop body
LE: loop exit
PB: predicated region body
PF: predicated region fallthrough
CT: control target
= control target key end

     0   :  { %vm92_vm0 = vcmask 1047556   ;;  %s459_s14 = smov 96   ;;  %s460_s26 = smov 64   ;;  %vm3_vm1 = vcmask 261120   ;;  %vm96_vm2 = vcmask 1048320   ;;  %vm183_vm3 = vcmask 785920   ;;  %s904_s0 = inlined_call_operand.vmem [shape: f32[32,8,32], index: 0, kind: input, shape index: {}]   ;;  %s905_s1 = inlined_call_operand.vmem [shape: f32[32,256], index: 1, kind: output, shape index: {}]  }
   0x1   :  { %v392_v0 = vld [vmem:[%s904_s0 + $0x7] ss:$8 sm:$0xf]   ;;  %v387_v3 = vld [vmem:[%s904_s0 + $0x3] ss:$8 sm:$0xf]  }
   0x2   :  { %v393_v1 = vld [vmem:[%s904_s0 + $0x7] ss:$8 sm:$0xf0]   ;;  %v388_v4 = vld [vmem:[%s904_s0 + $0x3] ss:$8 sm:$0xf0]  }
   0x3   :  { %v114_v2 = vsel %vm92_vm0, %v393_v1, %v392_v0  ;;  %v93_v5 = vsel %vm92_vm0, %v388_v4, %v387_v3  ;;  %v395_v6 = vld [vmem:[%s904_s0 + $0x87] ss:$8 sm:$0xf]   ;;  %v389_v9 = vld [vmem:[%s904_s0 + $0x83] ss:$8 sm:$0xf]  }
   0x4   :  { %115 = vrot.lane.b32.xlu1 %v114_v2, %s459_s14  ;;  %v396_v7 = vld [vmem:[%s904_s0 + $0x87] ss:$8 sm:$0xf0]   ;;  %94 = vrot.lane.b32.xlu0 %v93_v5, %s459_s14  ;;  %v390_v10 = vld [vmem:[%s904_s0 + $0x83] ss:$8 sm:$0xf0]  }
   0x5   :  { %v125_v8 = vsel %vm92_vm0, %v396_v7, %v395_v6  ;;  %v103_v11 = vsel %vm92_vm0, %v390_v10, %v389_v9  ;;  %v401_v12 = vld [vmem:[%s904_s0 + $0xc3] ss:$8 sm:$0xf]   ;;  %v407_v18 = vld [vmem:[%s904_s0 + $0xc7] ss:$8 sm:$0xf]  }
   0x6   :  { %v402_v13 = vld [vmem:[%s904_s0 + $0xc3] ss:$8 sm:$0xf0]   ;;  %v408_v19 = vld [vmem:[%s904_s0 + $0xc7] ss:$8 sm:$0xf0]  }
   0x7   :  { %v398_v14 = vld [vmem:[%s904_s0 + $0x43] ss:$8 sm:$0xf]   ;;  %v147_v16 = vsel %vm92_vm0, %v402_v13, %v401_v12  ;;  %v404_v20 = vld [vmem:[%s904_s0 + $0x47] ss:$8 sm:$0xf]   ;;  %v169_v22 = vsel %vm92_vm0, %v408_v19, %v407_v18 }
   0x8   :  { %v399_v15 = vld [vmem:[%s904_s0 + $0x43] ss:$8 sm:$0xf0]   ;;  %126 = vrot.lane.b32.xlu1 %v125_v8, %s459_s14  ;;  %104 = vrot.lane.b32.xlu0 %v103_v11, %s459_s14  ;;  %v405_v21 = vld [vmem:[%s904_s0 + $0x47] ss:$8 sm:$0xf0]  }
   0x9   :  { %v136_v17 = vsel %vm92_vm0, %v399_v15, %v398_v14  ;;  %v158_v23 = vsel %vm92_vm0, %v405_v21, %v404_v20  ;;  %v412_v24 = vld [vmem:[%s904_s0 + $0x82] ss:$8 sm:$0xf]   ;;  %v418_v30 = vld [vmem:[%s904_s0 + $0x86] ss:$8 sm:$0xf]  }
   0xa   :  { %v413_v25 = vld [vmem:[%s904_s0 + $0x82] ss:$8 sm:$0xf0]   ;;  %v419_v31 = vld [vmem:[%s904_s0 + $0x86] ss:$8 sm:$0xf0]  }
   0xb   :  { %v410_v26 = vld [vmem:[%s904_s0 + $0x2] ss:$8 sm:$0xf]   ;;  %v190_v28 = vsel %vm92_vm0, %v413_v25, %v412_v24  ;;  %v415_v32 = vld [vmem:[%s904_s0 + $0x6] ss:$8 sm:$0xf]   ;;  %v212_v34 = vsel %vm92_vm0, %v419_v31, %v418_v30 }
   0xc   :  { %148 = vrot.lane.b32.xlu1 %v147_v16, %s459_s14  ;;  %137 = vrot.lane.b32.xlu0 %v136_v17, %s459_s14  ;;  %v411_v27 = vld [vmem:[%s904_s0 + $0x2] ss:$8 sm:$0xf0]   ;;  %v416_v33 = vld [vmem:[%s904_s0 + $0x6] ss:$8 sm:$0xf0]  }
   0xd   :  { %v180_v29 = vsel %vm92_vm0, %v411_v27, %v410_v26  ;;  %v201_v35 = vsel %vm92_vm0, %v416_v33, %v415_v32  ;;  %v424_v36 = vld [vmem:[%s904_s0 + $0xc2] ss:$8 sm:$0xf]   ;;  %v430_v40 = vld [vmem:[%s904_s0 + $0xc6] ss:$8 sm:$0xf]  }
   0xe   :  { %v425_v37 = vld [vmem:[%s904_s0 + $0xc2] ss:$8 sm:$0xf0]   ;;  %v431_v42 = vld [vmem:[%s904_s0 + $0xc6] ss:$8 sm:$0xf0]  }
   0xf   :  { %v421_v38 = vld [vmem:[%s904_s0 + $0x42] ss:$8 sm:$0xf]   ;;  %v234_v41 = vsel %vm92_vm0, %v425_v37, %v424_v36  ;;  %v427_v43 = vld [vmem:[%s904_s0 + $0x46] ss:$8 sm:$0xf]   ;;  %v256_v53 = vsel %vm92_vm0, %v431_v42, %v430_v40 }
  0x10   :  { %170 = vrot.lane.b32.xlu1 %v169_v22, %s459_s14  ;;  %159 = vrot.lane.b32.xlu0 %v158_v23, %s459_s14  ;;  %v422_v39 = vld [vmem:[%s904_s0 + $0x42] ss:$8 sm:$0xf0]   ;;  %v428_v45 = vld [vmem:[%s904_s0 + $0x46] ss:$8 sm:$0xf0]  }
  0x11   :  { %v223_v44 = vsel %vm92_vm0, %v422_v39, %v421_v38  ;;  %v367_v46 = vld [vmem:[%s904_s0 + $0x80] ss:$4 sm:$0xff]   ;;  %v245_v55 = vsel %vm92_vm0, %v428_v45, %v427_v43  ;;  %v435_v56 = vld [vmem:[%s904_s0 + $0x81] ss:$8 sm:$0xf]   ;;  %s461_s25 = smov 32  }
  0x12   :  { %368 = vst.msk [vmem:[%s905_s1 + $0x20] ss:$8 sm:$0x3] %vm3_vm1, %v367_v46   ;;  %369 = vst.msk [vmem:[%s905_s1 + $0x11] ss:$8 sm:$0xc] %vm3_vm1, %v367_v46  }
  0x13   :  { %370 = vst.msk [vmem:[%s905_s1 + $0x2] ss:$8 sm:$0x30] %vm3_vm1, %v367_v46   ;;  %371 = vst.msk [vmem:[%s905_s1 - $0xd] ss:$8 sm:$0xc0] %vm3_vm1, %v367_v46  }
  0x14   :  { %191 = vrot.lane.b32.xlu1 %v190_v28, %s460_s26  ;;  %181 = vrot.lane.b32.xlu0 %v180_v29, %s460_s26  ;;  %v372_v47 = vld [vmem:[%s904_s0 + $0xa0] ss:$4 sm:$0xff]   ;;  %v436_v57 = vld [vmem:[%s904_s0 + $0x81] ss:$8 sm:$0xf0]   ;;  %vm270_vm4 = vcmask 523520  }
  0x15   :  { %v2_v48 = vld [vmem:[%s904_s0] ss:$4 sm:$0xff]   ;;  %373 = vst.msk [vmem:[%s905_s1 + $0x24] ss:$8 sm:$0x3] %vm3_vm1, %v372_v47   ;;  %v277_v60 = vsel %vm92_vm0, %v436_v57, %v435_v56 }
  0x16   :  { %v352_v49 = vld [vmem:[%s904_s0 + $0x20] ss:$4 sm:$0xff]   ;;  %374 = vst.msk [vmem:[%s905_s1 + $0x15] ss:$8 sm:$0xc] %vm3_vm1, %v372_v47  }
  0x17   :  { %375 = vst.msk [vmem:[%s905_s1 + $0x6] ss:$8 sm:$0x30] %vm3_vm1, %v372_v47   ;;  %376 = vst.msk [vmem:[%s905_s1 - $0x9] ss:$8 sm:$0xc0] %vm3_vm1, %v372_v47  }
  0x18   :  { %213 = vrot.lane.b32.xlu1 %v212_v34, %s460_s26  ;;  %202 = vrot.lane.b32.xlu0 %v201_v35, %s460_s26  ;;  %4 = vst.msk [vmem:[%s905_s1] ss:$8 sm:$0x3] %vm3_vm1, %v2_v48   ;;  %349 = vst.msk [vmem:[%s905_s1 - $0xf] ss:$8 sm:$0xc] %vm3_vm1, %v2_v48  }
  0x19   :  { %350 = vst.msk [vmem:[%s905_s1 - $0x1e] ss:$8 sm:$0x30] %vm3_vm1, %v2_v48   ;;  %351 = vst.msk [vmem:[%s905_s1 - $0x2d] ss:$8 sm:$0xc0] %vm3_vm1, %v2_v48  }
  0x1a   :  { %353 = vst.msk [vmem:[%s905_s1 + $0x4] ss:$8 sm:$0x3] %vm3_vm1, %v352_v49   ;;  %354 = vst.msk [vmem:[%s905_s1 - $0xb] ss:$8 sm:$0xc] %vm3_vm1, %v352_v49  }
  0x1b   :  { %355 = vst.msk [vmem:[%s905_s1 - $0x1a] ss:$8 sm:$0x30] %vm3_vm1, %v352_v49   ;;  %356 = vst.msk [vmem:[%s905_s1 - $0x29] ss:$8 sm:$0xc0] %vm3_vm1, %v352_v49  }
  0x1c   :  { %235 = vrot.lane.b32.xlu1 %v234_v41, %s460_s26  ;;  %v377_v50 = vld [vmem:[%s904_s0 + $0xc0] ss:$4 sm:$0xff]   ;;  %224 = vrot.lane.b32.xlu0 %v223_v44, %s460_s26  ;;  %v433_v58 = vld [vmem:[%s904_s0 + $0x1] ss:$8 sm:$0xf]  }
  0x1d   :  { %v382_v51 = vld [vmem:[%s904_s0 + $0xe0] ss:$4 sm:$0xff]   ;;  %378 = vst.msk [vmem:[%s905_s1 + $0x30] ss:$8 sm:$0x3] %vm3_vm1, %v377_v50  }
  0x1e   :  { %v357_v52 = vld [vmem:[%s904_s0 + $0x40] ss:$4 sm:$0xff]   ;;  %379 = vst.msk [vmem:[%s905_s1 + $0x21] ss:$8 sm:$0xc] %vm3_vm1, %v377_v50  }
  0x1f   :  { %380 = vst.msk [vmem:[%s905_s1 + $0x12] ss:$8 sm:$0x30] %vm3_vm1, %v377_v50   ;;  %381 = vst.msk [vmem:[%s905_s1 + $0x3] ss:$8 sm:$0xc0] %vm3_vm1, %v377_v50  }
  0x20   :  { %383 = vst.msk [vmem:[%s905_s1 + $0x34] ss:$8 sm:$0x3] %vm3_vm1, %v382_v51   ;;  %384 = vst.msk [vmem:[%s905_s1 + $0x25] ss:$8 sm:$0xc] %vm3_vm1, %v382_v51   ;;  %257 = vrot.lane.b32.xlu1 %v256_v53, %s460_s26  ;;  %246 = vrot.lane.b32.xlu0 %v245_v55, %s460_s26 }
  0x21   :  { %385 = vst.msk [vmem:[%s905_s1 + $0x16] ss:$8 sm:$0x30] %vm3_vm1, %v382_v51   ;;  %386 = vst.msk [vmem:[%s905_s1 + $0x7] ss:$8 sm:$0xc0] %vm3_vm1, %v382_v51  }
  0x22   :  { %358 = vst.msk [vmem:[%s905_s1 + $0x10] ss:$8 sm:$0x3] %vm3_vm1, %v357_v52   ;;  %359 = vst.msk [vmem:[%s905_s1 + $0x1] ss:$8 sm:$0xc] %vm3_vm1, %v357_v52  }
  0x23   :  { %360 = vst.msk [vmem:[%s905_s1 - $0xe] ss:$8 sm:$0x30] %vm3_vm1, %v357_v52   ;;  %361 = vst.msk [vmem:[%s905_s1 - $0x1d] ss:$8 sm:$0xc0] %vm3_vm1, %v357_v52  }
  0x24   :  { %v362_v54 = vld [vmem:[%s904_s0 + $0x60] ss:$4 sm:$0xff]   ;;  %v434_v59 = vld [vmem:[%s904_s0 + $0x1] ss:$8 sm:$0xf0]   ;;  %278 = vrot.lane.b32.xlu1 %v277_v60, %s461_s25 }
  0x25   :  { %363 = vst.msk [vmem:[%s905_s1 + $0x14] ss:$8 sm:$0x3] %vm3_vm1, %v362_v54   ;;  %364 = vst.msk [vmem:[%s905_s1 + $0x5] ss:$8 sm:$0xc] %vm3_vm1, %v362_v54   ;;  %v267_v61 = vsel %vm92_vm0, %v434_v59, %v433_v58 }
  0x26   :  { %365 = vst.msk [vmem:[%s905_s1 - $0xa] ss:$8 sm:$0x30] %vm3_vm1, %v362_v54   ;;  %366 = vst.msk [vmem:[%s905_s1 - $0x19] ss:$8 sm:$0xc0] %vm3_vm1, %v362_v54   ;;  %268 = vrot.lane.b32.xlu0 %v267_v61, %s461_s25 }
  0x27   :  { %v441_v62 = vld [vmem:[%s904_s0 + $0x85] ss:$8 sm:$0xf]   ;;  %v447_v4 = vld [vmem:[%s904_s0 + $0xc1] ss:$8 sm:$0xf]  }
  0x28   :  { %v442_v63 = vld [vmem:[%s904_s0 + $0x85] ss:$8 sm:$0xf0]   ;;  %v448_v5 = vld [vmem:[%s904_s0 + $0xc1] ss:$8 sm:$0xf0]  }
  0x29   :  { %v438_v0 = vld [vmem:[%s904_s0 + $0x5] ss:$8 sm:$0xf]   ;;  %v299_v2 = vsel %vm92_vm0, %v442_v63, %v441_v62  ;;  %v444_v6 = vld [vmem:[%s904_s0 + $0x41] ss:$8 sm:$0xf]   ;;  %v321_v8 = vsel %vm92_vm0, %v448_v5, %v447_v4 }
  0x2a   :  { %v439_v1 = vld [vmem:[%s904_s0 + $0x5] ss:$8 sm:$0xf0]   ;;  %v445_v7 = vld [vmem:[%s904_s0 + $0x41] ss:$8 sm:$0xf0]   ;;  %300 = vrot.lane.b32.xlu1 %v299_v2, %s461_s25 }
  0x2b   :  { %v288_v3 = vsel %vm92_vm0, %v439_v1, %v438_v0  ;;  %v310_v9 = vsel %vm92_vm0, %v445_v7, %v444_v6  ;;  %v453_v10 = vld [vmem:[%s904_s0 + $0xc5] ss:$8 sm:$0xf]  }
  0x2c   :  { %289 = vrot.lane.b32.xlu0 %v288_v3, %s461_s25  ;;  %v454_v11 = vld [vmem:[%s904_s0 + $0xc5] ss:$8 sm:$0xf0]  }
  0x2d   :  { %v450_v12 = vld [vmem:[%s904_s0 + $0x45] ss:$8 sm:$0xf]   ;;  %v343_v14 = vsel %vm92_vm0, %v454_v11, %v453_v10 }
  0x2e   :  { %v451_v13 = vld [vmem:[%s904_s0 + $0x45] ss:$8 sm:$0xf0]   ;;  %322 = vrot.lane.b32.xlu1 %v321_v8, %s461_s25 }
  0x2f   :  { %v332_v15 = vsel %vm92_vm0, %v451_v13, %v450_v12 }
  0x30   :  { %311 = vrot.lane.b32.xlu0 %v310_v9, %s461_s25 }
  0x32   :  { %344 = vrot.lane.b32.xlu1 %v343_v14, %s461_s25 }
  0x34   :  { %333 = vrot.lane.b32.xlu0 %v332_v15, %s461_s25 }
  0x76   :  { %v116_v16 = vpop.permute.xlu1 %115   ;;  %v95_v17 = vpop.permute.xlu0 %94  }
  0x77   :  { %394 = vst.msk [vmem:[%s905_s1 + $0x8] sm:$0xff] %vm96_vm2, %v116_v16   ;;  %97 = vst.msk [vmem:[%s905_s1] sm:$0xff] %vm96_vm2, %v95_v17  }
  0x7a   :  { %v127_v18 = vpop.permute.xlu1 %126   ;;  %v105_v19 = vpop.permute.xlu0 %104  }
  0x7b   :  { %397 = vst.msk [vmem:[%s905_s1 + $0x28] sm:$0xff] %vm96_vm2, %v127_v18   ;;  %391 = vst.msk [vmem:[%s905_s1 + $0x20] sm:$0xff] %vm96_vm2, %v105_v19  }
  0x7e   :  { %v149_v20 = vpop.permute.xlu1 %148   ;;  %v138_v21 = vpop.permute.xlu0 %137  }
  0x7f   :  { %403 = vst.msk [vmem:[%s905_s1 + $0x30] sm:$0xff] %vm96_vm2, %v149_v20   ;;  %400 = vst.msk [vmem:[%s905_s1 + $0x10] sm:$0xff] %vm96_vm2, %v138_v21  }
  0x82   :  { %v171_v22 = vpop.permute.xlu1 %170   ;;  %v160_v23 = vpop.permute.xlu0 %159  }
  0x83   :  { %409 = vst.msk [vmem:[%s905_s1 + $0x38] sm:$0xff] %vm96_vm2, %v171_v22   ;;  %406 = vst.msk [vmem:[%s905_s1 + $0x18] sm:$0xff] %vm96_vm2, %v160_v23  }
  0x86   :  { %v192_v24 = vpop.permute.xlu1 %191   ;;  %v182_v25 = vpop.permute.xlu0 %181  }
  0x87   :  { %414 = vst.msk [vmem:[%s905_s1 + $0x20] sm:$0xff] %vm183_vm3, %v192_v24   ;;  %184 = vst.msk [vmem:[%s905_s1] sm:$0xff] %vm183_vm3, %v182_v25  }
  0x8a   :  { %v214_v26 = vpop.permute.xlu1 %213   ;;  %v203_v27 = vpop.permute.xlu0 %202  }
  0x8b   :  { %420 = vst.msk [vmem:[%s905_s1 + $0x28] sm:$0xff] %vm183_vm3, %v214_v26   ;;  %417 = vst.msk [vmem:[%s905_s1 + $0x8] sm:$0xff] %vm183_vm3, %v203_v27  }
  0x8e   :  { %v236_v28 = vpop.permute.xlu1 %235   ;;  %v225_v29 = vpop.permute.xlu0 %224  }
  0x8f   :  { %426 = vst.msk [vmem:[%s905_s1 + $0x30] sm:$0xff] %vm183_vm3, %v236_v28   ;;  %423 = vst.msk [vmem:[%s905_s1 + $0x10] sm:$0xff] %vm183_vm3, %v225_v29  }
  0x92   :  { %v258_v30 = vpop.permute.xlu1 %257   ;;  %v247_v31 = vpop.permute.xlu0 %246  }
  0x93   :  { %432 = vst.msk [vmem:[%s905_s1 + $0x38] sm:$0xff] %vm183_vm3, %v258_v30   ;;  %429 = vst.msk [vmem:[%s905_s1 + $0x18] sm:$0xff] %vm183_vm3, %v247_v31  }
  0x96   :  { %v279_v32 = vpop.permute.xlu1 %278  }
  0x97   :  { %437 = vst.msk [vmem:[%s905_s1 + $0x20] sm:$0xff] %vm270_vm4, %v279_v32  }
  0x98   :  { %v269_v33 = vpop.permute.xlu0 %268  }
  0x99   :  { %271 = vst.msk [vmem:[%s905_s1] sm:$0xff] %vm270_vm4, %v269_v33  }
  0x9c   :  { %v301_v34 = vpop.permute.xlu1 %300  }
  0x9d   :  { %443 = vst.msk [vmem:[%s905_s1 + $0x28] sm:$0xff] %vm270_vm4, %v301_v34  }
  0x9e   :  { %v290_v35 = vpop.permute.xlu0 %289  }
  0x9f   :  { %440 = vst.msk [vmem:[%s905_s1 + $0x8] sm:$0xff] %vm270_vm4, %v290_v35  }
  0xa0   :  { %v323_v36 = vpop.permute.xlu1 %322  }
  0xa1   :  { %449 = vst.msk [vmem:[%s905_s1 + $0x30] sm:$0xff] %vm270_vm4, %v323_v36  }
  0xa2   :  { %v312_v37 = vpop.permute.xlu0 %311  }
  0xa3   :  { %446 = vst.msk [vmem:[%s905_s1 + $0x10] sm:$0xff] %vm270_vm4, %v312_v37  }
  0xa4   :  { %v345_v38 = vpop.permute.xlu1 %344  }
  0xa5   :  { %455 = vst.msk [vmem:[%s905_s1 + $0x38] sm:$0xff] %vm270_vm4, %v345_v38  }
  0xa6   :  { %v334_v39 = vpop.permute.xlu0 %333  }
  0xa7   :  { %452 = vst.msk [vmem:[%s905_s1 + $0x18] sm:$0xff] %vm270_vm4, %v334_v39  }

// kernel: gatnet_forward.1
= control target key start
LH: loop header
LB: loop body
LE: loop exit
PB: predicated region body
PF: predicated region fallthrough
CT: control target
= control target key end

     0   :  { %v8446_v1 = vmov 0   ;;  %vm293_vm0 = vcmask 130048   ;;  %vm788_vm1 = vcmask 1043456   ;;  %vm781_vm2 = vcmask 64512   ;;  %s6241_s25 = smov 120   ;;  %s8428_s8 = inlined_call_operand.vmem [shape: bf16[16,512], index: 8, kind: input, shape index: {}]   ;;  %s8429_s0 = inlined_call_operand.vmem [shape: f32[32,16], index: 0, kind: input, shape index: {}]   ;;  %s8430_s9 = inlined_call_operand.vmem [shape: bf16[512,16], index: 9, kind: input, shape index: {}]   ;;  %s8431_s2 = inlined_call_operand.vmem [shape: bf16[8,256], index: 2, kind: input, shape index: {}]   ;;  %s8432_s3 = inlined_call_operand.vmem [shape: bf16[256,8], index: 3, kind: input, shape index: {}]   ;;  %s8433_s4 = inlined_call_operand.vmem [shape: f32[32,256], index: 4, kind: input, shape index: {}]   ;;  %s8434_s1 = inlined_call_operand.vmem [shape: f32[32,256], index: 1, kind: input, shape index: {}]   ;;  %s8435_s5 = inlined_call_operand.vmem [shape: bf16[256,32], index: 5, kind: input, shape index: {}]   ;;  %s8436_s7 = inlined_call_operand.vmem [shape: bf16[512,64], index: 7, kind: input, shape index: {}]   ;;  %s8437_s6 = inlined_call_operand.vmem [shape: bf16[256,512], index: 6, kind: input, shape index: {}]   ;;  %s8438_s11 = inlined_call_operand.vmem [shape: bf16[64,512], index: 11, kind: input, shape index: {}]   ;;  %s8439_s12 = inlined_call_operand.vmem [shape: bf16[512,16], index: 12, kind: input, shape index: {}]   ;;  %s8440_s10 = inlined_call_operand.vmem [shape: f32[1,64], index: 10, kind: input, shape index: {}]   ;;  %s8441_s14 = inlined_call_operand.vmem [shape: bf16[64,8], index: 14, kind: input, shape index: {}]   ;;  %s8442_s13 = inlined_call_operand.vmem [shape: f32[1,64], index: 13, kind: input, shape index: {}]   ;;  %s8443_s15 = inlined_call_operand.vmem [shape: f32[1,8], index: 15, kind: input, shape index: {}]   ;;  %s8444_s16 = inlined_call_operand.vmem [shape: f32[32,8], index: 16, kind: output, shape index: {}]  }
   0x1   :  { %8496 = sst [smem:[#allocation32_spill]] %s8428_s8  ;;  %332 = vmatprep.mubr.bf16.mxu0 %v8446_v1  ;;  %385 = vmatprep.mubr.bf16.mxu1 %v8446_v1  ;;  %v263_v5 = vld [vmem:[%s8429_s0] sm:$0xff]  ;;  %v264_v6 = vld [vmem:[%s8429_s0 + $0x8] sm:$0xff]  ;;  %v5778_v8 = vld [vmem:[%s8430_s9 + $0x78] sm:$0xff]   ;;  %vm1307_vm3 = vcmask 261120   ;;  %vm2878_vm4 = vcmask 523264  }
   0x2   :  { %s8497_s23 = sld [smem:[#allocation32_spill]]  ;;  %v267_v7 = vpack.c.bf16 %v264_v6, %v263_v5  ;;  %v5779_v9 = vld [vmem:[%s8430_s9 + $0xf8] sm:$0xff]   ;;  %v265_v10 = vld [vmem:[%s8429_s0 + $0x10] sm:$0xff]  ;;  %v5786_v19 = vld [vmem:[%s8430_s9 + $0x68] sm:$0xff]  }
   0x3   :  { %v266_v11 = vld [vmem:[%s8429_s0 + $0x18] sm:$0xff]  ;;  %v5782_v14 = vld [vmem:[%s8430_s9 + $0x70] sm:$0xff]   ;;  %v5787_v20 = vld [vmem:[%s8430_s9 + $0xe8] sm:$0xff]  }
   0x4   :  { %v5780_v12 = vld [vmem:[%s8430_s9 + $0x38] sm:$0xff]   ;;  %v5783_v15 = vld [vmem:[%s8430_s9 + $0xf0] sm:$0xff]   ;;  %v268_v17 = vpack.c.bf16 %v266_v11, %v265_v10  ;;  %v5788_v21 = vld [vmem:[%s8430_s9 + $0x28] sm:$0xff]  }
   0x5   :  { %v5781_v13 = vld [vmem:[%s8430_s9 + $0xb8] sm:$0xff]   ;;  %v5784_v16 = vld [vmem:[%s8430_s9 + $0x30] sm:$0xff]   ;;  %v5789_v22 = vld [vmem:[%s8430_s9 + $0xa8] sm:$0xff]  }
   0x6   :  { %v5785_v18 = vld [vmem:[%s8430_s9 + $0xb0] sm:$0xff]   ;;  %v5790_v23 = vld [vmem:[%s8430_s9 + $0x60] sm:$0xff]   ;;  %v5794_v27 = vld [vmem:[%s8430_s9 + $0x58] sm:$0xff]  }
   0x7   :  { %v5791_v24 = vld [vmem:[%s8430_s9 + $0xe0] sm:$0xff]   ;;  %v5795_v28 = vld [vmem:[%s8430_s9 + $0xd8] sm:$0xff]   ;;  %v5798_v31 = vld [vmem:[%s8430_s9 + $0x50] sm:$0xff]  }
   0x8   :  { %v5772_v0 = vld [vmem:[%s8497_s23 + $0x4] ss:$16 sps:$4 sm:$0xff]   ;;  %v5774_v2 = vld [vmem:[%s8497_s23 + $0xc] ss:$16 sps:$4 sm:$0xff]   ;;  %v5776_v3 = vld [vmem:[%s8497_s23] ss:$16 sps:$4 sm:$0xff]  }
   0x9   :  { %314 = vmatprep.subr.bf16.mxu0 %v5772_v0  ;;  %v5777_v4 = vld [vmem:[%s8497_s23 + $0x8] ss:$16 sps:$4 sm:$0xff]   ;;  %367 = vmatprep.subr.bf16.mxu1 %v5774_v2  ;;  %v5792_v25 = vld [vmem:[%s8430_s9 + $0x20] sm:$0xff]   ;;  %v5799_v32 = vld [vmem:[%s8430_s9 + $0xd0] sm:$0xff]  }
   0xa   :  { %315 = vmatpush1.bf16.msra.mxu0 %v5776_v3  ;;  %368 = vmatpush1.bf16.msra.mxu1 %v5777_v4  ;;  %v5793_v26 = vld [vmem:[%s8430_s9 + $0xa0] sm:$0xff]   ;;  %v5796_v29 = vld [vmem:[%s8430_s9 + $0x18] sm:$0xff]   ;;  %v5800_v33 = vld [vmem:[%s8430_s9 + $0x10] sm:$0xff]  }
   0xb   :  { %5080 = vmatprep.subr.bf16.mxu0 %v5778_v8  ;;  %5108 = vmatprep.subr.bf16.mxu1 %v5779_v9  ;;  %v5797_v30 = vld [vmem:[%s8430_s9 + $0x98] sm:$0xff]   ;;  %v5801_v34 = vld [vmem:[%s8430_s9 + $0x90] sm:$0xff]   ;;  %v5802_v35 = vld [vmem:[%s8430_s9 + $0x48] sm:$0xff]  }
   0xc   :  { %v5803_v36 = vld [vmem:[%s8430_s9 + $0xc8] sm:$0xff]   ;;  %v5806_v39 = vld [vmem:[%s8430_s9 + $0x40] sm:$0xff]   ;;  %v5812_v8 = vld [vmem:[%s8432_s3 + $0x78] sm:$0xff]  }
   0xd   :  { %4771 = vmatmul.mubr.msk.bf16.vlgmr.msra.gmra.mxu0 %vm293_vm0, %v267_v7  ;;  %4773 = vmatmul.mubr.msk.bf16.vlgmr.msra.gmra.mxu1 %vm293_vm0, %v267_v7  ;;  %v5804_v37 = vld [vmem:[%s8430_s9 + $0x8] sm:$0xff]   ;;  %v5807_v40 = vld [vmem:[%s8430_s9 + $0xc0] sm:$0xff]  }
   0xe   :  { %342 = vmatprep.mubr.bf16.mxu0 %v8446_v1  ;;  %395 = vmatprep.mubr.bf16.mxu1 %v8446_v1  ;;  %v5805_v38 = vld [vmem:[%s8430_s9 + $0x88] sm:$0xff]   ;;  %v5808_v41 = vld [vmem:[%s8430_s9] sm:$0xff]  }
   0xf   :  { %5081 = vmatpush3.bf16.msra.mxu0 %v5780_v12  ;;  %5109 = vmatpush3.bf16.msra.mxu1 %v5781_v13  ;;  %v5809_v42 = vld [vmem:[%s8430_s9 + $0x80] sm:$0xff]  }
  0x10   :  { %5082 = vmatprep.subr.bf16.mxu0 %v5782_v14  ;;  %5110 = vmatprep.subr.bf16.mxu1 %v5783_v15  ;;  %v62_v4 = vld [vmem:[%s8431_s2] sm:$0xff] }
  0x11   :  { %v6481_v5 = vcombine.high %v62_v4, %v62_v4  ;;  %v4807_v6 = vcombine.low %v62_v4, %v62_v4 }
  0x13   :  { %5083 = vmatpush3.bf16.msra.mxu0 %v5784_v16  ;;  %5111 = vmatpush3.bf16.msra.mxu1 %v5785_v18  ;;  %8498 = vst [vmem:[#allocation2_spill] sm:$0xff] %v6481_v5  ;;  %v6486_v7 = vsel %vm788_vm1, %v4807_v6, 0  ;;  %v95_v6 = vld [vmem:[%s8433_s4] sm:$0xff] }
  0x14   :  { %5084 = vmatprep.subr.bf16.mxu0 %v5786_v19  ;;  %5112 = vmatprep.subr.bf16.mxu1 %v5787_v20  ;;  %8499 = vst [vmem:[#allocation3_spill] sm:$0xff] %v6486_v7 }
  0x15   :  { %4772 = vmatmul.mubr.msk.bf16.gmra.mxu0 %vm293_vm0, %v268_v17  ;;  %4774 = vmatmul.mubr.msk.bf16.gmra.mxu1 %vm293_vm0, %v268_v17 }
  0x17   :  { %5085 = vmatpush3.bf16.msra.mxu0 %v5788_v21  ;;  %5113 = vmatpush3.bf16.msra.mxu1 %v5789_v22 }
  0x18   :  { %5086 = vmatprep.subr.bf16.mxu0 %v5790_v23  ;;  %5114 = vmatprep.subr.bf16.mxu1 %v5791_v24 }
  0x1b   :  { %5087 = vmatpush3.bf16.msra.mxu0 %v5792_v25  ;;  %5115 = vmatpush3.bf16.msra.mxu1 %v5793_v26 }
  0x1c   :  { %5088 = vmatprep.subr.bf16.mxu0 %v5794_v27  ;;  %5116 = vmatprep.subr.bf16.mxu1 %v5795_v28 }
  0x1f   :  { %5089 = vmatpush3.bf16.msra.mxu0 %v5796_v29  ;;  %5117 = vmatpush3.bf16.msra.mxu1 %v5797_v30 }
  0x20   :  { %5090 = vmatprep.subr.bf16.mxu0 %v5798_v31  ;;  %5118 = vmatprep.subr.bf16.mxu1 %v5799_v32 }
  0x23   :  { %5091 = vmatpush3.bf16.msra.mxu0 %v5800_v33  ;;  %5119 = vmatpush3.bf16.msra.mxu1 %v5801_v34 }
  0x24   :  { %5092 = vmatprep.subr.bf16.mxu0 %v5802_v35  ;;  %5120 = vmatprep.subr.bf16.mxu1 %v5803_v36 }
  0x27   :  { %5093 = vmatpush3.bf16.msra.mxu0 %v5804_v37  ;;  %5121 = vmatpush3.bf16.msra.mxu1 %v5805_v38 }
  0x28   :  { %5094 = vmatprep.subr.bf16.mxu0 %v5806_v39  ;;  %5122 = vmatprep.subr.bf16.mxu1 %v5807_v40  ;;  %v5813_v39 = vld [vmem:[%s8432_s3 + $0x38] sm:$0xff]   ;;  %v5814_v40 = vld [vmem:[%s8432_s3 + $0x70] sm:$0xff]  }
  0x2b   :  { %5095 = vmatpush3.bf16.msra.mxu0 %v5808_v41  ;;  %5123 = vmatpush3.bf16.msra.mxu1 %v5809_v42  ;;  %v5815_v42 = vld [vmem:[%s8432_s3 + $0x30] sm:$0xff]  }
  0x2c   :  { %4812 = vmatprep.subr.msk.bf16.mxu1 %vm788_vm1, %v6481_v5  ;;  %4809 = vmatprep.subr.msk.bf16.mxu0 %vm788_vm1, %v6481_v5 }
  0xcd   :  { %v334_v43 = vpop.f32.mrf.mxu0  ;;  %v387_v44 = vpop.f32.mrf.mxu1 }
  0xcf   :  { %v336_v45 = vpop.f32.mrf.mxu0  ;;  %v389_v46 = vpop.f32.mrf.mxu1 }
  0xd1   :  { %v338_v47 = vpop.f32.mrf.mxu0  ;;  %v391_v48 = vpop.f32.mrf.mxu1 }
  0xd2   :  { %v6459_v53 = vpack.c.bf16 %v338_v47, %v334_v43  ;;  %v6461_v54 = vpack.c.bf16 %v391_v48, %v387_v44  ;;  %v5816_v43 = vld [vmem:[%s8432_s3 + $0x68] sm:$0xff]   ;;  %v5819_v47 = vld [vmem:[%s8432_s3 + $0x20] sm:$0xff]   ;;  %v5820_v48 = vld [vmem:[%s8432_s3 + $0x58] sm:$0xff]  }
  0xd3   :  { %v340_v49 = vpop.f32.mrf.mxu0  ;;  %v393_v50 = vpop.f32.mrf.mxu1  ;;  %v5817_v44 = vld [vmem:[%s8432_s3 + $0x28] sm:$0xff]  }
  0xd4   :  { %v6455_v51 = vpack.c.bf16 %v340_v49, %v336_v45  ;;  %v6457_v52 = vpack.c.bf16 %v393_v50, %v389_v46  ;;  %v5818_v45 = vld [vmem:[%s8432_s3 + $0x60] sm:$0xff]   ;;  %v5821_v49 = vld [vmem:[%s8432_s3 + $0x18] sm:$0xff]   ;;  %v5822_v50 = vld [vmem:[%s8432_s3 + $0x50] sm:$0xff]  }
  0xd5   :  { %v344_v55 = vpop.f32.mrf.mxu0  ;;  %v397_v56 = vpop.f32.mrf.mxu1 }
  0xd6   :  { %702 = vmatprep.mubr.bf16.mxu0 %v6455_v51  ;;  %751 = vmatprep.mubr.bf16.mxu1 %v6457_v52 }
  0xd7   :  { %v346_v57 = vpop.f32.mrf.mxu0  ;;  %v399_v58 = vpop.f32.mrf.mxu1  ;;  %703 = vmatmul.mubr.bf16.vlgmr.msra.gmra.mxu0 %v6459_v53  ;;  %752 = vmatmul.mubr.bf16.vlgmr.msra.gmra.mxu1 %v6461_v54 }
  0xd8   :  { %895 = vmatpush1.bf16.msra.mxu1 %v6486_v7  ;;  %810 = vmatpush1.bf16.msra.mxu0 %v6486_v7 }
  0xd9   :  { %v348_v59 = vpop.f32.mrf.mxu0  ;;  %v401_v60 = vpop.f32.mrf.mxu1  ;;  %4831 = vmatprep.subr.msk.bf16.mxu1 %vm788_vm1, %v6481_v5  ;;  %5136 = vmatprep.subr.bf16.mxu0 %v5812_v8  ;;  %v98_v8 = vld [vmem:[%s8433_s4 + $0x18] sm:$0xff] }
  0xda   :  { %v6469_v2 = vpack.c.bf16 %v348_v59, %v344_v55  ;;  %v6471_v3 = vpack.c.bf16 %v401_v60, %v397_v56  ;;  %v5823_v55 = vld [vmem:[%s8432_s3 + $0x10] sm:$0xff]   ;;  %v5824_v56 = vld [vmem:[%s8432_s3 + $0x48] sm:$0xff]   ;;  %v5827_v59 = vld [vmem:[%s8432_s3] sm:$0xff]  }
  0xdb   :  { %v350_v61 = vpop.f32.mrf.mxu0  ;;  %v403_v62 = vpop.f32.mrf.mxu1 }
  0xdc   :  { %v411_v63 = vpack.c.bf16 %v350_v61, %v346_v57  ;;  %v6467_v0 = vpack.c.bf16 %v403_v62, %v399_v58  ;;  %v5825_v57 = vld [vmem:[%s8432_s3 + $0x8] sm:$0xff]   ;;  %v5826_v58 = vld [vmem:[%s8432_s3 + $0x40] sm:$0xff]  }
  0xde   :  { %710 = vmatprep.mubr.bf16.mxu0 %v411_v63  ;;  %759 = vmatprep.mubr.bf16.mxu1 %v6467_v0 }
  0xdf   :  { %711 = vmatmul.mubr.bf16.gmra.mxu0 %v6469_v2  ;;  %760 = vmatmul.mubr.bf16.gmra.mxu1 %v6471_v3 }
  0xe0   :  { %912 = vmatprep.mubr.bf16.mxu1 %v8446_v1  ;;  %827 = vmatprep.mubr.bf16.mxu0 %v8446_v1 }
 0x197   :  { %v5096_v9 = vpop.f32.mrf.mxu0  ;;  %v5124_v10 = vpop.f32.mrf.mxu1 }
 0x199   :  { %v5097_v11 = vpop.f32.mrf.mxu0  ;;  %v5125_v12 = vpop.f32.mrf.mxu1 }
 0x19a   :  { %v5098_v15 = vadd.f32 %v5097_v11, %v5096_v9  ;;  %v5126_v16 = vadd.f32 %v5125_v12, %v5124_v10  ;;  %v96_v12 = vld [vmem:[%s8433_s4 + $0x8] sm:$0xff] }
 0x19b   :  { %v5099_v13 = vpop.f32.mrf.mxu0  ;;  %v5127_v14 = vpop.f32.mrf.mxu1 }
 0x19c   :  { %v754_v23 = vadd.f32 %v5126_v16, %v5098_v15 }
 0x19d   :  { %v5100_v17 = vpop.f32.mrf.mxu0  ;;  %v5128_v18 = vpop.f32.mrf.mxu1 }
 0x19e   :  { %v5101_v19 = vadd.f32 %v5100_v17, %v5099_v13  ;;  %v5129_v20 = vadd.f32 %v5128_v18, %v5127_v14  ;;  %v100_v14 = vld [vmem:[%s8433_s4 + $0x28] sm:$0xff] }
 0x19f   :  { %v5102_v21 = vpop.f32.mrf.mxu0  ;;  %v5130_v22 = vpop.f32.mrf.mxu1 }
 0x1a0   :  { %v757_v24 = vadd.f32 %v5129_v20, %v5101_v19  ;;  %v101_v19 = vld [vmem:[%s8433_s4 + $0x30] sm:$0xff] }
 0x1a1   :  { %v5103_v25 = vpop.f32.mrf.mxu0  ;;  %v5131_v26 = vpop.f32.mrf.mxu1 }
 0x1a2   :  { %v768_v27 = vpack.c.bf16 %v757_v24, %v754_v23  ;;  %v5104_v30 = vadd.f32 %v5103_v25, %v5102_v21  ;;  %v5132_v31 = vadd.f32 %v5131_v26, %v5130_v22  ;;  %v102_v25 = vld [vmem:[%s8433_s4 + $0x38] sm:$0xff] }
 0x1a3   :  { %v5105_v28 = vpop.f32.mrf.mxu0  ;;  %v5133_v29 = vpop.f32.mrf.mxu1 }
 0x1a4   :  { %772 = vrot.lane.b32.xlu0 %v768_v27, %s6241_s25  ;;  %4813 = vmatmul.mubr.msk.bf16.vlgmr.msra.gmra.mxu1 %vm781_vm2, %v768_v27  ;;  %v762_v36 = vadd.f32 %v5132_v31, %v5104_v30 }
 0x1a5   :  { %1177 = vmatpush1.bf16.msra.mxu1 %v6486_v7  ;;  %v5106_v32 = vpop.f32.mrf.mxu0  ;;  %v5134_v33 = vpop.f32.mrf.mxu1  ;;  %922 = vmatprep.mubr.bf16.mxu1 %v8446_v1 }
 0x1a6   :  { %v5107_v34 = vadd.f32 %v5106_v32, %v5105_v28  ;;  %v5135_v35 = vadd.f32 %v5134_v33, %v5133_v29  ;;  %1368 = vmatprep.subr.bf16.mxu1 %v411_v63  ;;  %v97_v63 = vld [vmem:[%s8433_s4 + $0x10] sm:$0xff] }
 0x1a8   :  { %v765_v37 = vadd.f32 %v5135_v35, %v5107_v34 }
 0x1aa   :  { %v769_v38 = vpack.c.bf16 %v765_v37, %v762_v36 }
 0x1ac   :  { %774 = vrot.lane.b32.xlu0 %v769_v38, %s6241_s25  ;;  %4814 = vmatmul.mubr.msk.bf16.gmra.mxu1 %vm781_vm2, %v769_v38 }
 0x1ad   :  { %1194 = vmatprep.mubr.bf16.mxu1 %v8446_v1 }
 0x216   :  { %v773_v41 = vpop.permute.xlu0 %772 }
 0x217   :  { %4810 = vmatmul.mubr.msk.bf16.vlgmr.msra.gmra.mxu0 %vm781_vm2, %v773_v41 }
 0x218   :  { %5137 = vmatpush3.bf16.msra.mxu0 %v5813_v39  ;;  %837 = vmatprep.mubr.bf16.mxu0 %v8446_v1 }
 0x219   :  { %5138 = vmatprep.subr.bf16.mxu0 %v5814_v40 }
 0x21c   :  { %5139 = vmatpush3.bf16.msra.mxu0 %v5815_v42 }
 0x21d   :  { %5140 = vmatprep.subr.bf16.mxu0 %v5816_v43 }
 0x21e   :  { %v775_v46 = vpop.permute.xlu0 %774 }
 0x21f   :  { %4811 = vmatmul.mubr.msk.bf16.gmra.mxu0 %vm781_vm2, %v775_v46 }
 0x220   :  { %5141 = vmatpush3.bf16.msra.mxu0 %v5817_v44 }
 0x221   :  { %5142 = vmatprep.subr.bf16.mxu0 %v5818_v45 }
 0x224   :  { %5143 = vmatpush3.bf16.msra.mxu0 %v5819_v47 }
 0x225   :  { %5144 = vmatprep.subr.bf16.mxu0 %v5820_v48 }
 0x228   :  { %5145 = vmatpush3.bf16.msra.mxu0 %v5821_v49 }
 0x229   :  { %5146 = vmatprep.subr.bf16.mxu0 %v5822_v50 }
 0x22c   :  { %5147 = vmatpush3.bf16.msra.mxu0 %v5823_v55 }
 0x22d   :  { %5148 = vmatprep.subr.bf16.mxu0 %v5824_v56 }
 0x230   :  { %5149 = vmatpush3.bf16.msra.mxu0 %v5825_v57 }
 0x231   :  { %5150 = vmatprep.subr.bf16.mxu0 %v5826_v58 }
 0x234   :  { %5151 = vmatpush3.bf16.msra.mxu0 %v5827_v59 }
 0x235   :  { %1561 = vmatprep.subr.bf16.mxu0 %v6467_v0  ;;  %v99_v0 = vld [vmem:[%s8433_s4 + $0x20] sm:$0xff] }
 0x264   :  { %v914_v62 = vpop.f32.mrf.mxu1 }
 0x266   :  { %v916_v10 = vpop.f32.mrf.mxu1 }
 0x268   :  { %v918_v20 = vpop.f32.mrf.mxu1 }
 0x26a   :  { %v920_v30 = vpop.f32.mrf.mxu1 }
 0x26c   :  { %v924_v36 = vpop.f32.mrf.mxu1 }
 0x26e   :  { %v926_v41 = vpop.f32.mrf.mxu1 }
 0x270   :  { %v928_v46 = vpop.f32.mrf.mxu1 }
 0x272   :  { %v930_v57 = vpop.f32.mrf.mxu1 }
 0x2d7   :  { %v829_v60 = vpop.f32.mrf.mxu0 }
 0x2d8   :  { %v848_v15 = vmul.f32 %v829_v60, %v95_v6 }
 0x2d9   :  { %v831_v61 = vpop.f32.mrf.mxu0 }
 0x2da   :  { %v849_v21 = vmul.f32 %v831_v61, %v96_v12 }
 0x2db   :  { %v833_v4 = vpop.f32.mrf.mxu0 }
 0x2dc   :  { %v850_v11 = vmul.f32 %v833_v4, %v97_v63 }
 0x2dd   :  { %v835_v9 = vpop.f32.mrf.mxu0 }
 0x2de   :  { %v851_v16 = vmul.f32 %v835_v9, %v98_v8  ;;  %v856_v22 = vadd.f32 %v850_v11, %v848_v15  ;;  %v54_v9 = vld [vmem:[%s8434_s1] sm:$0xff] }
 0x2df   :  { %v839_v13 = vpop.f32.mrf.mxu0 }
 0x2e0   :  { %v852_v17 = vmul.f32 %v839_v13, %v99_v0  ;;  %v865_v26 = vadd.f32 %v851_v16, %v849_v21 }
 0x2e1   :  { %v841_v18 = vpop.f32.mrf.mxu0 }
 0x2e2   :  { %v853_v23 = vmul.f32 %v841_v18, %v100_v14  ;;  %v857_v27 = vadd.f32 %v856_v22, %v852_v17  ;;  %v59_v14 = vld [vmem:[%s8434_s1 + $0x28] sm:$0xff] }
 0x2e3   :  { %v843_v24 = vpop.f32.mrf.mxu0 }
 0x2e4   :  { %v854_v28 = vmul.f32 %v843_v24, %v101_v19  ;;  %v866_v31 = vadd.f32 %v865_v26, %v853_v23  ;;  %v57_v19 = vld [vmem:[%s8434_s1 + $0x18] sm:$0xff] }
 0x2e5   :  { %v845_v29 = vpop.f32.mrf.mxu0 }
 0x2e6   :  { %v858_v32 = vadd.f32 %v857_v27, %v854_v28  ;;  %v855_v33 = vmul.f32 %v845_v29, %v102_v25  ;;  %v56_v27 = vld [vmem:[%s8434_s1 + $0x10] sm:$0xff] }
 0x2e8   :  { %v859_v34 = vrot.slane %v858_v32, 4  ;;  %v867_v35 = vadd.f32 %v866_v31, %v855_v33 }
 0x2ea   :  { %v860_v37 = vadd.f32 %v859_v34, %v858_v32  ;;  %v868_v38 = vrot.slane %v867_v35, 4  ;;  %v61_v32 = vld [vmem:[%s8434_s1 + $0x38] sm:$0xff] }
 0x2ec   :  { %v861_v39 = vrot.slane %v860_v37, 2  ;;  %v869_v40 = vadd.f32 %v868_v38, %v867_v35  ;;  %v60_v35 = vld [vmem:[%s8434_s1 + $0x30] sm:$0xff] }
 0x2ee   :  { %v862_v42 = vadd.f32 %v861_v39, %v860_v37  ;;  %v870_v43 = vrot.slane %v869_v40, 2 }
 0x2f0   :  { %v863_v44 = vrot.slane %v862_v42, 1  ;;  %v871_v45 = vadd.f32 %v870_v43, %v869_v40 }
 0x2f2   :  { %v864_v47 = vadd.f32 %v863_v44, %v862_v42  ;;  %v872_v48 = vrot.slane %v871_v45, 1 }
 0x2f4   :  { %v873_v49 = vadd.f32 %v872_v48, %v871_v45  ;;  %v915_v50 = vadd.f32 %v914_v62, %v864_v47  ;;  %v925_v55 = vadd.f32 %v924_v36, %v864_v47  ;;  %v919_v56 = vadd.f32 %v918_v20, %v864_v47  ;;  %v55_v62 = vld [vmem:[%s8434_s1 + $0x8] sm:$0xff] }
 0x2f5   :  { %v929_v6 = vadd.f32 %v928_v46, %v864_v47 }
 0x2f6   :  { %v917_v58 = vadd.f32 %v916_v10, %v873_v49  ;;  %v933_v59 = vmul.f32 0.2, %v915_v50  ;;  %v927_v60 = vadd.f32 %v926_v41, %v873_v49  ;;  %v937_v61 = vmul.f32 0.2, %v925_v55  ;;  %v58_v10 = vld [vmem:[%s8434_s1 + $0x20] sm:$0xff] }
 0x2f7   :  { %v921_v63 = vadd.f32 %v920_v30, %v873_v49  ;;  %v935_v4 = vmul.f32 0.2, %v919_v56  ;;  %v931_v8 = vadd.f32 %v930_v57, %v873_v49  ;;  %v939_v22 = vmul.f32 0.2, %v929_v6 }
 0x2f8   :  { %v934_v0 = vmul.f32 0.2, %v917_v58  ;;  %v941_v11 = vmax.f32 %v915_v50, %v933_v59  ;;  %v938_v12 = vmul.f32 0.2, %v927_v60  ;;  %v945_v13 = vmax.f32 %v925_v55, %v937_v61 }
 0x2f9   :  { %v936_v15 = vmul.f32 0.2, %v921_v63  ;;  %v940_v18 = vmul.f32 0.2, %v931_v8  ;;  %v943_v20 = vmax.f32 %v919_v56, %v935_v4  ;;  %v947_v34 = vmax.f32 %v929_v6, %v939_v22  ;;  %v6696_v22 = vld [vmem:[%s8435_s5 + $0x40] sm:$0xff]  }
 0x2fa   :  { %v942_v16 = vmax.f32 %v917_v58, %v934_v0  ;;  %v946_v17 = vmax.f32 %v927_v60, %v938_v12  ;;  %v949_v23 = vadd.f32 %v941_v11, %v54_v9  ;;  %v953_v25 = vadd.f32 %v945_v13, %v58_v10 }
 0x2fb   :  { %v944_v21 = vmax.f32 %v921_v63, %v936_v15  ;;  %v948_v31 = vmax.f32 %v931_v8, %v940_v18  ;;  %v951_v33 = vadd.f32 %v943_v20, %v56_v27  ;;  %v955_v38 = vadd.f32 %v947_v34, %v60_v35  ;;  %v6664_v18 = vld [vmem:[%s8435_s5 + $0x20] sm:$0xff]   ;;  %v6680_v20 = vld [vmem:[%s8435_s5 + $0x30] sm:$0xff]  }
 0x2fc   :  { %v950_v24 = vadd.f32 %v942_v16, %v55_v62  ;;  %v954_v26 = vadd.f32 %v946_v17, %v59_v14  ;;  %v6656_v17 = vld [vmem:[%s8435_s5 + $0x18] sm:$0xff]  }
 0x2fd   :  { %v952_v30 = vadd.f32 %v944_v21, %v57_v19  ;;  %v956_v37 = vadd.f32 %v948_v31, %v61_v32  ;;  %v6672_v19 = vld [vmem:[%s8435_s5 + $0x28] sm:$0xff]   ;;  %v6688_v21 = vld [vmem:[%s8435_s5 + $0x38] sm:$0xff]  }
 0x2fe   :  { %v957_v28 = vmax.f32 %v949_v23, %v950_v24  ;;  %v963_v29 = vmax.f32 %v953_v25, %v954_v26 }
 0x2ff   :  { %v960_v36 = vmax.f32 %v951_v33, %v952_v30  ;;  %v966_v39 = vmax.f32 %v955_v38, %v956_v37 }
 0x300   :  { %958 = vmax.xlane.f32.xlu1 %v957_v28  ;;  %964 = vmax.xlane.f32.xlu0 %v963_v29 }
 0x304   :  { %961 = vmax.xlane.f32.xlu1 %v960_v36 }
 0x308   :  { %967 = vmax.xlane.f32.xlu1 %v966_v39 }
 0x389   :  { %v959_v40 = vpop.xlane.xlu1 %958  ;;  %v965_v43 = vpop.xlane.xlu0 %964 }
 0x38a   :  { %v969_v41 = vsub.f32 %v949_v23, %v959_v40  ;;  %v970_v42 = vsub.f32 %v950_v24, %v959_v40  ;;  %v974_v47 = vsub.f32 %v954_v26, %v965_v43  ;;  %v973_v60 = vsub.f32 %v953_v25, %v965_v43  ;;  %v6704_v23 = vld [vmem:[%s8435_s5 + $0x48] sm:$0xff]   ;;  %v6712_v24 = vld [vmem:[%s8435_s5 + $0x50] sm:$0xff]   ;;  %v6720_v25 = vld [vmem:[%s8435_s5 + $0x58] sm:$0xff]  }
 0x38b   :  { %v6728_v26 = vld [vmem:[%s8435_s5 + $0x60] sm:$0xff]  }
 0x38c   :  { %v977_v44 = vmul.f32 1.442695, %v969_v41  ;;  %v979_v45 = vmul.f32 1.442695, %v970_v42  ;;  %v987_v57 = vmul.f32 1.442695, %v974_v47 }
 0x38d   :  { %v962_v46 = vpop.xlane.xlu1 %961  ;;  %v985_v4 = vmul.f32 1.442695, %v973_v60  ;;  %v6744_v42 = vld [vmem:[%s8435_s5 + $0x70] sm:$0xff]   ;;  %v5844_v60 = vld [vmem:[%s8436_s7 + $0xf8] sm:$0xff]  }
 0x38e   :  { %v971_v48 = vsub.f32 %v951_v33, %v962_v46  ;;  %v972_v49 = vsub.f32 %v952_v30, %v962_v46  ;;  %6032 = vpow2.f32 %v977_v44  ;;  %v6736_v33 = vld [vmem:[%s8435_s5 + $0x68] sm:$0xff]   ;;  %v6752_v46 = vld [vmem:[%s8435_s5 + $0x78] sm:$0xff]  }
 0x38f   :  { %6034 = vpow2.f32 %v979_v45 }
 0x390   :  { %v981_v50 = vmul.f32 1.442695, %v971_v48  ;;  %v983_v55 = vmul.f32 1.442695, %v972_v49 }
 0x391   :  { %v968_v56 = vpop.xlane.xlu1 %967 }
 0x392   :  { %6036 = vpow2.f32 %v981_v50  ;;  %v975_v58 = vsub.f32 %v955_v38, %v968_v56  ;;  %v976_v59 = vsub.f32 %v956_v37, %v968_v56 }
 0x393   :  { %6038 = vpow2.f32 %v983_v55 }
 0x394   :  { %v991_v61 = vmul.f32 1.442695, %v976_v59  ;;  %6040 = vpow2.f32 %v987_v57  ;;  %v989_v63 = vmul.f32 1.442695, %v975_v58 }
 0x396   :  { %6042 = vpow2.f32 %v991_v61  ;;  %v5848_v61 = vld [vmem:[%s8436_s7 + $0xe8] sm:$0xff]  }
 0x397   :  { %6044 = vpow2.f32 %v989_v63  ;;  %v5849_v63 = vld [vmem:[%s8436_s7 + $0xa8] sm:$0xff]  }
 0x398   :  { %6046 = vpow2.f32 %v985_v4  ;;  %v5851_v4 = vld [vmem:[%s8436_s7 + $0x78] sm:$0xff]  }
 0x39b   :  { %v6601_v6 = vpop.eup %6032 }
 0x39c   :  { %v6603_v8 = vpop.eup %6034 }
 0x39f   :  { %v6605_v9 = vpop.eup %6036 }
 0x3a0   :  { %v6607_v0 = vpop.eup %6038  ;;  %v993_v11 = vpack.c.bf16 %v6605_v9, %v6601_v6 }
 0x3a1   :  { %v994_v12 = vpack.c.bf16 %v6607_v0, %v6603_v8  ;;  %v6613_v13 = vpop.eup %6040 }
 0x3a2   :  { %8500 = vst [vmem:[#allocation4_spill] sm:$0xff] %v6613_v13 }
 0x3a3   :  { %1125 = vmatprep.mubr.bf16.mxu0 %v994_v12  ;;  %v6615_v62 = vpop.eup %6042  ;;  %v5852_v12 = vld [vmem:[%s8436_s7 + $0xa0] sm:$0xff]  }
 0x3a4   :  { %8501 = vst [vmem:[#allocation5_spill] sm:$0xff] %v6615_v62  ;;  %1126 = vmatmul.mubr.bf16.vlgmr.msra.gmra.mxu0 %v993_v11  ;;  %v996_v10 = vpack.c.bf16 %v6615_v62, %v6613_v13  ;;  %v6621_v14 = vpop.eup %6044  ;;  %v5850_v11 = vld [vmem:[%s8436_s7 + $0xe0] sm:$0xff]  }
 0x3a5   :  { %1562 = vmatpush1.bf16.msra.mxu0 %v6471_v3  ;;  %v6623_v15 = vpop.eup %6046  ;;  %v6632_v3 = vld [vmem:[%s8435_s5] sm:$0xff]  }
 0x3a6   :  { %1563 = vmatprep.subr.bf16.mxu0 %v6457_v52  ;;  %1133 = vmatprep.mubr.bf16.mxu0 %v996_v10  ;;  %v995_v16 = vpack.c.bf16 %v6621_v14, %v6623_v15  ;;  %v6640_v52 = vld [vmem:[%s8435_s5 + $0x8] sm:$0xff]   ;;  %v5853_v10 = vld [vmem:[%s8436_s7 + $0x38] sm:$0xff]  }
 0x3a9   :  { %1564 = vmatpush1.bf16.msra.mxu0 %v6461_v54  ;;  %v6648_v54 = vld [vmem:[%s8435_s5 + $0x10] sm:$0xff]  }
 0x3aa   :  { %5276 = vmatprep.subr.bf16.mxu0 %v5844_v60  ;;  %v5880_v60 = vld [vmem:[%s8436_s7 + $0x48] sm:$0xff]  }
 0x3ac   :  { %1134 = vmatmul.mubr.bf16.gmra.mxu0 %v995_v16  ;;  %v5854_v16 = vld [vmem:[%s8436_s7 + $0xd8] sm:$0xff]  }
 0x3ad   :  { %1581 = vmatprep.mubr.bf16.mxu0 %v8446_v1 }
 0x3b4   :  { %4866 = vmatmul.mubr.msk.bf16.vlgmr.msra.gmra.mxu0 %vm1307_vm3, %v6632_v3 }
 0x3b5   :  { %1591 = vmatprep.mubr.bf16.mxu0 %v8446_v1 }
 0x3bc   :  { %4867 = vmatmul.mubr.msk.bf16.gmra.mxu0 %vm1307_vm3, %v6640_v52 }
 0x3bd   :  { %1601 = vmatprep.mubr.bf16.mxu0 %v8446_v1 }
 0x3c4   :  { %4868 = vmatmul.mubr.msk.bf16.gmra.mxu0 %vm1307_vm3, %v6648_v54 }
 0x3c5   :  { %1611 = vmatprep.mubr.bf16.mxu0 %v8446_v1 }
 0x3cc   :  { %4869 = vmatmul.mubr.msk.bf16.gmra.mxu0 %vm1307_vm3, %v6656_v17 }
 0x3cd   :  { %1621 = vmatprep.mubr.bf16.mxu0 %v8446_v1 }
 0x3d4   :  { %4870 = vmatmul.mubr.msk.bf16.gmra.mxu0 %vm1307_vm3, %v6664_v18 }
 0x3d5   :  { %1631 = vmatprep.mubr.bf16.mxu0 %v8446_v1 }
 0x3dc   :  { %4871 = vmatmul.mubr.msk.bf16.gmra.mxu0 %vm1307_vm3, %v6672_v19 }
 0x3dd   :  { %1641 = vmatprep.mubr.bf16.mxu0 %v8446_v1 }
 0x3e4   :  { %4872 = vmatmul.mubr.msk.bf16.gmra.mxu0 %vm1307_vm3, %v6680_v20 }
 0x3e5   :  { %1651 = vmatprep.mubr.bf16.mxu0 %v8446_v1 }
 0x3ec   :  { %4873 = vmatmul.mubr.msk.bf16.gmra.mxu0 %vm1307_vm3, %v6688_v21 }
 0x3ed   :  { %1661 = vmatprep.mubr.bf16.mxu0 %v8446_v1 }
 0x3f4   :  { %4874 = vmatmul.mubr.msk.bf16.gmra.mxu0 %vm1307_vm3, %v6696_v22 }
 0x3f5   :  { %1671 = vmatprep.mubr.bf16.mxu0 %v8446_v1 }
 0x3fc   :  { %4875 = vmatmul.mubr.msk.bf16.gmra.mxu0 %vm1307_vm3, %v6704_v23 }
 0x3fd   :  { %1681 = vmatprep.mubr.bf16.mxu0 %v8446_v1 }
 0x404   :  { %4876 = vmatmul.mubr.msk.bf16.gmra.mxu0 %vm1307_vm3, %v6712_v24 }
 0x405   :  { %1691 = vmatprep.mubr.bf16.mxu0 %v8446_v1 }
 0x40c   :  { %4877 = vmatmul.mubr.msk.bf16.gmra.mxu0 %vm1307_vm3, %v6720_v25 }
 0x40d   :  { %1701 = vmatprep.mubr.bf16.mxu0 %v8446_v1 }
 0x414   :  { %4878 = vmatmul.mubr.msk.bf16.gmra.mxu0 %vm1307_vm3, %v6728_v26 }
 0x415   :  { %1711 = vmatprep.mubr.bf16.mxu0 %v8446_v1 }
 0x41c   :  { %4879 = vmatmul.mubr.msk.bf16.gmra.mxu0 %vm1307_vm3, %v6736_v33 }
 0x41d   :  { %1721 = vmatprep.mubr.bf16.mxu0 %v8446_v1 }
 0x424   :  { %4880 = vmatmul.mubr.msk.bf16.gmra.mxu0 %vm1307_vm3, %v6744_v42 }
 0x425   :  { %1731 = vmatprep.mubr.bf16.mxu0 %v8446_v1 }
 0x42c   :  { %4881 = vmatmul.mubr.msk.bf16.gmra.mxu0 %vm1307_vm3, %v6752_v46 }
 0x464   :  { %v5152_v27 = vpop.f32.mrf.mxu0 }
 0x466   :  { %v5153_v28 = vpop.f32.mrf.mxu0 }
 0x467   :  { %v5154_v29 = vadd.f32 %v5153_v28, %v5152_v27  ;;  %v5861_v27 = vld [vmem:[%s8436_s7 + $0x28] sm:$0xff]  }
 0x468   :  { %v5155_v30 = vpop.f32.mrf.mxu0 }
 0x469   :  { %v1142_v31 = vmax.f32 %v5154_v29, 1e-30  ;;  %v5864_v29 = vld [vmem:[%s8436_s7 + $0xc8] sm:$0xff]  }
 0x46a   :  { %v5156_v32 = vpop.f32.mrf.mxu0 }
 0x46b   :  { %v5157_v34 = vadd.f32 %v5156_v32, %v5155_v30  ;;  %6048 = vrcp.f32 %v1142_v31  ;;  %v5865_v30 = vld [vmem:[%s8436_s7 + $0x60] sm:$0xff]   ;;  %v5866_v31 = vld [vmem:[%s8436_s7 + $0x88] sm:$0xff]  }
 0x46c   :  { %v5158_v35 = vpop.f32.mrf.mxu0 }
 0x46d   :  { %v1143_v36 = vmax.f32 %v5157_v34, 1e-30  ;;  %v5868_v34 = vld [vmem:[%s8436_s7 + $0x20] sm:$0xff]  }
 0x46e   :  { %v5159_v37 = vpop.f32.mrf.mxu0 }
 0x46f   :  { %6050 = vrcp.f32 %v1143_v36  ;;  %v5160_v38 = vadd.f32 %v5159_v37, %v5158_v35  ;;  %v5867_v37 = vld [vmem:[%s8437_s6 + $0xc] ss:$16 sps:$4 sm:$0xff]  }
 0x470   :  { %v5161_v39 = vpop.f32.mrf.mxu0 }
 0x471   :  { %v1144_v40 = vmax.f32 %v5160_v38, 1e-30  ;;  %v5869_v38 = vld [vmem:[%s8436_s7 + $0xc0] sm:$0xff]  }
 0x472   :  { %v5162_v41 = vpop.f32.mrf.mxu0 }
 0x473   :  { %v5163_v43 = vadd.f32 %v5162_v41, %v5161_v39  ;;  %6052 = vrcp.f32 %v1144_v40  ;;  %v5870_v40 = vld [vmem:[%s8436_s7 + $0x58] sm:$0xff]   ;;  %v5871_v41 = vld [vmem:[%s8436_s7 + $0x80] sm:$0xff]  }
 0x475   :  { %v1145_v44 = vmax.f32 %v5163_v43, 1e-30 }
 0x477   :  { %6054 = vrcp.f32 %v1145_v44 }
 0x478   :  { %v6049_v45 = vpop.eup %6048 }
 0x479   :  { %v1150_v48 = vmul.f32 0.125, %v6049_v45  ;;  %v5872_v45 = vld [vmem:[%s8436_s7 + $0x18] sm:$0xff]  }
 0x47c   :  { %v6051_v47 = vpop.eup %6050 }
 0x47d   :  { %v1151_v49 = vmul.f32 0.125, %v6051_v47 }
 0x47f   :  { %v1154_v50 = vpack.c.bf16 %v1151_v49, %v1150_v48  ;;  %v5875_v49 = vld [vmem:[%s8436_s7 + $0x50] sm:$0xff]  }
 0x480   :  { %v6053_v55 = vpop.eup %6052 }
 0x481   :  { %4832 = vmatmul.mubr.msk.bf16.vlgmr.msra.gmra.mxu1 %vm781_vm2, %v1154_v50  ;;  %v1152_v57 = vmul.f32 0.125, %v6053_v55  ;;  %v5873_v55 = vld [vmem:[%s8437_s6 + $0x28] ss:$16 sps:$4 sm:$0xff]  }
 0x482   :  { %1369 = vmatpush1.bf16.msra.mxu1 %v6469_v2  ;;  %1204 = vmatprep.mubr.bf16.mxu1 %v8446_v1  ;;  %v5845_v2 = vld [vmem:[%s8436_s7 + $0xb8] sm:$0xff]  }
 0x483   :  { %1370 = vmatprep.subr.bf16.mxu1 %v6455_v51  ;;  %v5846_v51 = vld [vmem:[%s8436_s7 + $0xf0] sm:$0xff]   ;;  %5277 = vmatpush3.bf16.msra.mxu0 %v5845_v2 }
 0x484   :  { %v6055_v56 = vpop.eup %6054  ;;  %5278 = vmatprep.subr.bf16.mxu0 %v5846_v51 }
 0x485   :  { %v1153_v58 = vmul.f32 0.125, %v6055_v56  ;;  %v5876_v56 = vld [vmem:[%s8437_s6 + $0x2c] ss:$16 sps:$4 sm:$0xff]  }
 0x486   :  { %1371 = vmatpush1.bf16.msra.mxu1 %v6459_v53  ;;  %v5847_v53 = vld [vmem:[%s8436_s7 + $0xb0] sm:$0xff]  }
 0x487   :  { %v1155_v59 = vpack.c.bf16 %v1153_v58, %v1152_v57  ;;  %5279 = vmatpush3.bf16.msra.mxu0 %v5847_v53  ;;  %5164 = vmatprep.subr.bf16.mxu1 %v5851_v4  ;;  %v5881_v53 = vld [vmem:[%s8436_s7 + $0x8] sm:$0xff]   ;;  %v5885_v4 = vld [vmem:[%s8436_s7 + $0x40] sm:$0xff]  }
 0x488   :  { %5280 = vmatprep.subr.bf16.mxu0 %v5848_v61 }
 0x489   :  { %4833 = vmatmul.mubr.msk.bf16.gmra.mxu1 %vm781_vm2, %v1155_v59 }
 0x48a   :  { %1388 = vmatprep.mubr.bf16.mxu1 %v8446_v1 }
 0x48b   :  { %5281 = vmatpush3.bf16.msra.mxu0 %v5849_v63 }
 0x48c   :  { %5282 = vmatprep.subr.bf16.mxu0 %v5850_v11 }
 0x48f   :  { %5283 = vmatpush3.bf16.msra.mxu0 %v5852_v12  ;;  %v5883_v12 = vld [vmem:[%s8437_s6 + $0x48] ss:$16 sps:$4 sm:$0xff]  }
 0x490   :  { %5284 = vmatprep.subr.bf16.mxu0 %v5854_v16 }
 0x491   :  { %4850 = vmatmul.mubr.msk.bf16.vlgmr.msra.gmra.mxu1 %vm1307_vm3, %v6632_v3  ;;  %v5855_v3 = vld [vmem:[%s8436_s7 + $0x70] sm:$0xff]  }
 0x492   :  { %1398 = vmatprep.mubr.bf16.mxu1 %v8446_v1  ;;  %5165 = vmatpush3.bf16.msra.mxu1 %v5853_v10  ;;  %v5886_v10 = vld [vmem:[%s8437_s6 + $0x4c] ss:$16 sps:$4 sm:$0xff]  }
 0x493   :  { %5166 = vmatprep.subr.bf16.mxu1 %v5855_v3 }
 0x499   :  { %4851 = vmatmul.mubr.msk.bf16.gmra.mxu1 %vm1307_vm3, %v6640_v52  ;;  %v5856_v52 = vld [vmem:[%s8436_s7 + $0x98] sm:$0xff]  }
 0x49a   :  { %1408 = vmatprep.mubr.bf16.mxu1 %v8446_v1  ;;  %5285 = vmatpush3.bf16.msra.mxu0 %v5856_v52 }
 0x4a1   :  { %4852 = vmatmul.mubr.msk.bf16.gmra.mxu1 %vm1307_vm3, %v6648_v54  ;;  %v5857_v54 = vld [vmem:[%s8436_s7 + $0x30] sm:$0xff]  }
 0x4a2   :  { %1418 = vmatprep.mubr.bf16.mxu1 %v8446_v1  ;;  %5167 = vmatpush3.bf16.msra.mxu1 %v5857_v54 }
 0x4a9   :  { %4853 = vmatmul.mubr.msk.bf16.gmra.mxu1 %vm1307_vm3, %v6656_v17  ;;  %v5858_v17 = vld [vmem:[%s8436_s7 + $0xd0] sm:$0xff]  }
 0x4aa   :  { %1428 = vmatprep.mubr.bf16.mxu1 %v8446_v1  ;;  %5286 = vmatprep.subr.bf16.mxu0 %v5858_v17 }
 0x4b1   :  { %4854 = vmatmul.mubr.msk.bf16.gmra.mxu1 %vm1307_vm3, %v6664_v18  ;;  %v5859_v18 = vld [vmem:[%s8436_s7 + $0x68] sm:$0xff]  }
 0x4b2   :  { %1438 = vmatprep.mubr.bf16.mxu1 %v8446_v1  ;;  %5168 = vmatprep.subr.bf16.mxu1 %v5859_v18 }
 0x4b3   :  { %5169 = vmatpush3.bf16.msra.mxu1 %v5861_v27  ;;  %v5891_v27 = vld [vmem:[%s8437_s6 + $0x68] ss:$16 sps:$4 sm:$0xff]  }
 0x4b4   :  { %5170 = vmatprep.subr.bf16.mxu1 %v5865_v30 }
 0x4b7   :  { %5171 = vmatpush3.bf16.msra.mxu1 %v5868_v34 }
 0x4b8   :  { %5172 = vmatprep.subr.bf16.mxu1 %v5870_v40 }
 0x4b9   :  { %4855 = vmatmul.mubr.msk.bf16.gmra.mxu1 %vm1307_vm3, %v6672_v19  ;;  %v5860_v19 = vld [vmem:[%s8436_s7 + $0x90] sm:$0xff]  }
 0x4ba   :  { %1448 = vmatprep.mubr.bf16.mxu1 %v8446_v1  ;;  %5287 = vmatpush3.bf16.msra.mxu0 %v5860_v19 }
 0x4bb   :  { %5288 = vmatprep.subr.bf16.mxu0 %v5864_v29  ;;  %5173 = vmatpush3.bf16.msra.mxu1 %v5872_v45 }
 0x4bc   :  { %5174 = vmatprep.subr.bf16.mxu1 %v5875_v49  ;;  %v5905_v49 = vld [vmem:[%s8437_s6 + $0xac] ss:$16 sps:$4 sm:$0xff]  }
 0x4be   :  { %5289 = vmatpush3.bf16.msra.mxu0 %v5866_v31 }
 0x4bf   :  { %5290 = vmatprep.subr.bf16.mxu0 %v5869_v38  ;;  %v5899_v38 = vld [vmem:[%s8437_s6 + $0x8c] ss:$16 sps:$4 sm:$0xff]  }
 0x4c1   :  { %4856 = vmatmul.mubr.msk.bf16.gmra.mxu1 %vm1307_vm3, %v6680_v20  ;;  %v1583_v20 = vpop.f32.mrf.mxu0 }
 0x4c2   :  { %1458 = vmatprep.mubr.bf16.mxu1 %v8446_v1  ;;  %5291 = vmatpush3.bf16.msra.mxu0 %v5871_v41 }
 0x4c3   :  { %v1585_v28 = vpop.f32.mrf.mxu0 }
 0x4c5   :  { %v1587_v32 = vpop.f32.mrf.mxu0 }
 0x4c6   :  { %v1744_v35 = vpack.c.bf16 %v1587_v32, %v1583_v20 }
 0x4c7   :  { %v1589_v36 = vpop.f32.mrf.mxu0 }
 0x4c8   :  { %v1745_v39 = vpack.c.bf16 %v1589_v36, %v1585_v28  ;;  %v5893_v28 = vld [vmem:[%s8437_s6 + $0x6c] ss:$16 sps:$4 sm:$0xff]   ;;  %v5897_v36 = vld [vmem:[%s8437_s6 + $0x88] ss:$16 sps:$4 sm:$0xff]  }
 0x4c9   :  { %4857 = vmatmul.mubr.msk.bf16.gmra.mxu1 %vm1307_vm3, %v6688_v21  ;;  %v5862_v21 = vld [vmem:[%s8437_s6 + $0x8] ss:$16 sps:$4 sm:$0xff]   ;;  %v1593_v44 = vpop.f32.mrf.mxu0 }
 0x4ca   :  { %1468 = vmatprep.mubr.bf16.mxu1 %v8446_v1  ;;  %v2128_v43 = vmul.bf16 %v5862_v21, %v1744_v35  ;;  %v2129_v47 = vmul.bf16 %v5867_v37, %v1745_v39 }
 0x4cb   :  { %v1595_v48 = vpop.f32.mrf.mxu0 }
 0x4cc   :  { %2575 = vmatprep.mubr.bf16.mxu0 %v2129_v47  ;;  %v5903_v47 = vld [vmem:[%s8437_s6 + $0xa8] ss:$16 sps:$4 sm:$0xff]  }
 0x4cd   :  { %v1597_v50 = vpop.f32.mrf.mxu0  ;;  %2576 = vmatmul.mubr.bf16.vlgmr.msra.gmra.mxu0 %v2128_v43 }
 0x4ce   :  { %v1748_v57 = vpack.c.bf16 %v1597_v50, %v1593_v44 }
 0x4cf   :  { %v1599_v58 = vpop.f32.mrf.mxu0 }
 0x4d0   :  { %v1749_v59 = vpack.c.bf16 %v1599_v58, %v1595_v48  ;;  %v2132_v2 = vmul.bf16 %v5873_v55, %v1748_v57 }
 0x4d1   :  { %4858 = vmatmul.mubr.msk.bf16.gmra.mxu1 %vm1307_vm3, %v6696_v22  ;;  %v5877_v22 = vld [vmem:[%s8436_s7 + $0x10] sm:$0xff]   ;;  %v1603_v51 = vpop.f32.mrf.mxu0 }
 0x4d2   :  { %1478 = vmatprep.mubr.bf16.mxu1 %v8446_v1  ;;  %5175 = vmatpush3.bf16.msra.mxu1 %v5877_v22  ;;  %v2133_v61 = vmul.bf16 %v5876_v56, %v1749_v59  ;;  %v5909_v59 = vld [vmem:[%s8437_s6 + $0xc8] ss:$16 sps:$4 sm:$0xff]  }
 0x4d3   :  { %5176 = vmatprep.subr.bf16.mxu1 %v5880_v60  ;;  %v1605_v63 = vpop.f32.mrf.mxu0 }
 0x4d4   :  { %2583 = vmatprep.mubr.bf16.mxu0 %v2133_v61 }
 0x4d5   :  { %v1607_v11 = vpop.f32.mrf.mxu0  ;;  %2584 = vmatmul.mubr.bf16.gmra.mxu0 %v2132_v2  ;;  %v5911_v2 = vld [vmem:[%s8437_s6 + $0xcc] ss:$16 sps:$4 sm:$0xff]  }
 0x4d6   :  { %5177 = vmatpush3.bf16.msra.mxu1 %v5881_v53  ;;  %v1752_v16 = vpack.c.bf16 %v1607_v11, %v1603_v51 }
 0x4d7   :  { %5178 = vmatprep.subr.bf16.mxu1 %v5885_v4  ;;  %v1609_v3 = vpop.f32.mrf.mxu0 }
 0x4d8   :  { %v1753_v52 = vpack.c.bf16 %v1609_v3, %v1605_v63  ;;  %v2136_v54 = vmul.bf16 %v5883_v12, %v1752_v16  ;;  %v5915_v12 = vld [vmem:[%s8437_s6 + $0xe8] ss:$16 sps:$4 sm:$0xff]  }
 0x4d9   :  { %4859 = vmatmul.mubr.msk.bf16.gmra.mxu1 %vm1307_vm3, %v6704_v23  ;;  %v5887_v23 = vld [vmem:[%s8436_s7] sm:$0xff]   ;;  %v1613_v17 = vpop.f32.mrf.mxu0 }
 0x4da   :  { %1488 = vmatprep.mubr.bf16.mxu1 %v8446_v1  ;;  %5179 = vmatpush3.bf16.msra.mxu1 %v5887_v23  ;;  %v2137_v18 = vmul.bf16 %v5886_v10, %v1753_v52  ;;  %v5917_v23 = vld [vmem:[%s8437_s6 + $0xec] ss:$16 sps:$4 sm:$0xff]  }
 0x4db   :  { %v1615_v19 = vpop.f32.mrf.mxu0 }
 0x4dc   :  { %2591 = vmatprep.mubr.bf16.mxu0 %v2137_v18 }
 0x4dd   :  { %v1617_v20 = vpop.f32.mrf.mxu0  ;;  %2592 = vmatmul.mubr.bf16.gmra.mxu0 %v2136_v54 }
 0x4de   :  { %v1756_v29 = vpack.c.bf16 %v1617_v20, %v1613_v17 }
 0x4df   :  { %v1619_v30 = vpop.f32.mrf.mxu0 }
 0x4e0   :  { %v1757_v31 = vpack.c.bf16 %v1619_v30, %v1615_v19  ;;  %v2140_v32 = vmul.bf16 %v5891_v27, %v1756_v29  ;;  %v5921_v19 = vld [vmem:[%s8437_s6 + $0x108] ss:$16 sps:$4 sm:$0xff]   ;;  %v5923_v27 = vld [vmem:[%s8437_s6 + $0x10c] ss:$16 sps:$4 sm:$0xff]  }
 0x4e1   :  { %4860 = vmatmul.mubr.msk.bf16.gmra.mxu1 %vm1307_vm3, %v6712_v24  ;;  %v1623_v34 = vpop.f32.mrf.mxu0 }
 0x4e2   :  { %1498 = vmatprep.mubr.bf16.mxu1 %v8446_v1  ;;  %v2141_v35 = vmul.bf16 %v5893_v28, %v1757_v31 }
 0x4e3   :  { %v1625_v24 = vpop.f32.mrf.mxu0 }
 0x4e4   :  { %2599 = vmatprep.mubr.bf16.mxu0 %v2141_v35  ;;  %v5927_v35 = vld [vmem:[%s8437_s6 + $0x128] ss:$16 sps:$4 sm:$0xff]  }
 0x4e5   :  { %v1627_v21 = vpop.f32.mrf.mxu0  ;;  %2600 = vmatmul.mubr.bf16.gmra.mxu0 %v2140_v32 }
 0x4e6   :  { %v1760_v37 = vpack.c.bf16 %v1627_v21, %v1623_v34  ;;  %v5929_v21 = vld [vmem:[%s8437_s6 + $0x12c] ss:$16 sps:$4 sm:$0xff]  }
 0x4e7   :  { %v1629_v39 = vpop.f32.mrf.mxu0 }
 0x4e8   :  { %v1761_v40 = vpack.c.bf16 %v1629_v39, %v1625_v24  ;;  %v2144_v41 = vmul.bf16 %v5897_v36, %v1760_v37 }
 0x4e9   :  { %4861 = vmatmul.mubr.msk.bf16.gmra.mxu1 %vm1307_vm3, %v6720_v25  ;;  %v1633_v43 = vpop.f32.mrf.mxu0 }
 0x4ea   :  { %1508 = vmatprep.mubr.bf16.mxu1 %v8446_v1  ;;  %v2145_v44 = vmul.bf16 %v5899_v38, %v1761_v40 }
 0x4eb   :  { %v1635_v25 = vpop.f32.mrf.mxu0 }
 0x4ec   :  { %2607 = vmatprep.mubr.bf16.mxu0 %v2145_v44  ;;  %v5933_v44 = vld [vmem:[%s8437_s6 + $0x148] ss:$16 sps:$4 sm:$0xff]  }
 0x4ed   :  { %v1637_v45 = vpop.f32.mrf.mxu0  ;;  %2608 = vmatmul.mubr.bf16.gmra.mxu0 %v2144_v41 }
 0x4ee   :  { %v1764_v48 = vpack.c.bf16 %v1637_v45, %v1633_v43  ;;  %v5935_v45 = vld [vmem:[%s8437_s6 + $0x14c] ss:$16 sps:$4 sm:$0xff]  }
 0x4ef   :  { %v1639_v50 = vpop.f32.mrf.mxu0 }
 0x4f0   :  { %v1765_v55 = vpack.c.bf16 %v1639_v50, %v1635_v25  ;;  %v2148_v56 = vmul.bf16 %v5903_v47, %v1764_v48 }
 0x4f1   :  { %4862 = vmatmul.mubr.msk.bf16.gmra.mxu1 %vm1307_vm3, %v6728_v26  ;;  %v1643_v22 = vpop.f32.mrf.mxu0 }
 0x4f2   :  { %1518 = vmatprep.mubr.bf16.mxu1 %v8446_v1  ;;  %v2149_v57 = vmul.bf16 %v5905_v49, %v1765_v55 }
 0x4f3   :  { %v1645_v26 = vpop.f32.mrf.mxu0 }
 0x4f4   :  { %2615 = vmatprep.mubr.bf16.mxu0 %v2149_v57  ;;  %v5939_v57 = vld [vmem:[%s8437_s6 + $0x168] ss:$16 sps:$4 sm:$0xff]  }
 0x4f5   :  { %v1647_v58 = vpop.f32.mrf.mxu0  ;;  %2616 = vmatmul.mubr.bf16.gmra.mxu0 %v2148_v56 }
 0x4f6   :  { %v1768_v60 = vpack.c.bf16 %v1647_v58, %v1643_v22  ;;  %v5941_v58 = vld [vmem:[%s8437_s6 + $0x16c] ss:$16 sps:$4 sm:$0xff]  }
 0x4f7   :  { %v1649_v51 = vpop.f32.mrf.mxu0 }
 0x4f8   :  { %v1769_v53 = vpack.c.bf16 %v1649_v51, %v1645_v26  ;;  %v2152_v61 = vmul.bf16 %v5909_v59, %v1768_v60 }
 0x4f9   :  { %4863 = vmatmul.mubr.msk.bf16.gmra.mxu1 %vm1307_vm3, %v6736_v33  ;;  %v1653_v63 = vpop.f32.mrf.mxu0 }
 0x4fa   :  { %1528 = vmatprep.mubr.bf16.mxu1 %v8446_v1  ;;  %v2153_v4 = vmul.bf16 %v5911_v2, %v1769_v53 }
 0x4fb   :  { %v1655_v33 = vpop.f32.mrf.mxu0 }
 0x4fc   :  { %2623 = vmatprep.mubr.bf16.mxu0 %v2153_v4  ;;  %v5945_v4 = vld [vmem:[%s8437_s6 + $0x188] ss:$16 sps:$4 sm:$0xff]  }
 0x4fd   :  { %v1657_v11 = vpop.f32.mrf.mxu0  ;;  %2624 = vmatmul.mubr.bf16.gmra.mxu0 %v2152_v61 }
 0x4fe   :  { %v1772_v10 = vpack.c.bf16 %v1657_v11, %v1653_v63  ;;  %v5947_v11 = vld [vmem:[%s8437_s6 + $0x18c] ss:$16 sps:$4 sm:$0xff]  }
 0x4ff   :  { %v1659_v16 = vpop.f32.mrf.mxu0 }
 0x500   :  { %v1773_v3 = vpack.c.bf16 %v1659_v16, %v1655_v33  ;;  %v2156_v52 = vmul.bf16 %v5915_v12, %v1772_v10 }
 0x501   :  { %4864 = vmatmul.mubr.msk.bf16.gmra.mxu1 %vm1307_vm3, %v6744_v42  ;;  %v1663_v54 = vpop.f32.mrf.mxu0 }
 0x502   :  { %1538 = vmatprep.mubr.bf16.mxu1 %v8446_v1  ;;  %v2157_v17 = vmul.bf16 %v5917_v23, %v1773_v3 }
 0x503   :  { %v1665_v42 = vpop.f32.mrf.mxu0 }
 0x504   :  { %2631 = vmatprep.mubr.bf16.mxu0 %v2157_v17  ;;  %v5951_v17 = vld [vmem:[%s8437_s6 + $0x1a8] ss:$16 sps:$4 sm:$0xff]  }
 0x505   :  { %v1667_v18 = vpop.f32.mrf.mxu0  ;;  %2632 = vmatmul.mubr.bf16.gmra.mxu0 %v2156_v52 }
 0x506   :  { %v1776_v20 = vpack.c.bf16 %v1667_v18, %v1663_v54  ;;  %v5953_v18 = vld [vmem:[%s8437_s6 + $0x1ac] ss:$16 sps:$4 sm:$0xff]  }
 0x507   :  { %v1669_v28 = vpop.f32.mrf.mxu0 }
 0x508   :  { %v1777_v29 = vpack.c.bf16 %v1669_v28, %v1665_v42  ;;  %v2160_v30 = vmul.bf16 %v5921_v19, %v1776_v20 }
 0x509   :  { %4865 = vmatmul.mubr.msk.bf16.gmra.mxu1 %vm1307_vm3, %v6752_v46  ;;  %v1673_v31 = vpop.f32.mrf.mxu0 }
 0x50a   :  { %v2161_v32 = vmul.bf16 %v5923_v27, %v1777_v29 }
 0x50b   :  { %v1675_v34 = vpop.f32.mrf.mxu0 }
 0x50c   :  { %2639 = vmatprep.mubr.bf16.mxu0 %v2161_v32  ;;  %v5957_v32 = vld [vmem:[%s8437_s6 + $0x1c8] ss:$16 sps:$4 sm:$0xff]  }
 0x50d   :  { %v1677_v46 = vpop.f32.mrf.mxu0  ;;  %2640 = vmatmul.mubr.bf16.gmra.mxu0 %v2160_v30 }
 0x50e   :  { %v1780_v24 = vpack.c.bf16 %v1677_v46, %v1673_v31  ;;  %v5959_v46 = vld [vmem:[%s8437_s6 + $0x1cc] ss:$16 sps:$4 sm:$0xff]  }
 0x50f   :  { %v1679_v36 = vpop.f32.mrf.mxu0 }
 0x510   :  { %v1781_v37 = vpack.c.bf16 %v1679_v36, %v1675_v34  ;;  %v2164_v38 = vmul.bf16 %v5927_v35, %v1780_v24 }
 0x511   :  { %v1683_v39 = vpop.f32.mrf.mxu0 }
 0x512   :  { %v2165_v40 = vmul.bf16 %v5929_v21, %v1781_v37 }
 0x513   :  { %v1685_v41 = vpop.f32.mrf.mxu0 }
 0x514   :  { %2647 = vmatprep.mubr.bf16.mxu0 %v2165_v40 }
 0x515   :  { %v1687_v43 = vpop.f32.mrf.mxu0  ;;  %2648 = vmatmul.mubr.bf16.gmra.mxu0 %v2164_v38 }
 0x516   :  { %v1784_v25 = vpack.c.bf16 %v1687_v43, %v1683_v39 }
 0x517   :  { %v1689_v47 = vpop.f32.mrf.mxu0 }
 0x518   :  { %v1785_v48 = vpack.c.bf16 %v1689_v47, %v1685_v41  ;;  %v2168_v49 = vmul.bf16 %v5933_v44, %v1784_v25  ;;  %v5963_v41 = vld [vmem:[%s8437_s6 + $0x1e8] ss:$16 sps:$4 sm:$0xff]   ;;  %v5965_v25 = vld [vmem:[%s8437_s6 + $0x1ec] ss:$16 sps:$4 sm:$0xff]  }
 0x519   :  { %v1693_v50 = vpop.f32.mrf.mxu0 }
 0x51a   :  { %v2169_v55 = vmul.bf16 %v5935_v45, %v1785_v48 }
 0x51b   :  { %v1695_v56 = vpop.f32.mrf.mxu0 }
 0x51c   :  { %2655 = vmatprep.mubr.bf16.mxu0 %v2169_v55 }
 0x51d   :  { %v1697_v22 = vpop.f32.mrf.mxu0  ;;  %2656 = vmatmul.mubr.bf16.gmra.mxu0 %v2168_v49 }
 0x51e   :  { %v1788_v26 = vpack.c.bf16 %v1697_v22, %v1693_v50 }
 0x51f   :  { %v1699_v59 = vpop.f32.mrf.mxu0 }
 0x520   :  { %v1789_v60 = vpack.c.bf16 %v1699_v59, %v1695_v56  ;;  %v2172_v2 = vmul.bf16 %v5939_v57, %v1788_v26 }
 0x521   :  { %v1703_v51 = vpop.f32.mrf.mxu0 }
 0x522   :  { %v2173_v53 = vmul.bf16 %v5941_v58, %v1789_v60 }
 0x523   :  { %v1705_v61 = vpop.f32.mrf.mxu0 }
 0x524   :  { %2663 = vmatprep.mubr.bf16.mxu0 %v2173_v53 }
 0x525   :  { %v1707_v63 = vpop.f32.mrf.mxu0  ;;  %2664 = vmatmul.mubr.bf16.gmra.mxu0 %v2172_v2 }
 0x526   :  { %v1792_v33 = vpack.c.bf16 %v1707_v63, %v1703_v51  ;;  %v5882_v63 = vld [vmem:[%s8437_s6 + $0x4] ss:$16 sps:$4 sm:$0xff]  }
 0x527   :  { %v1709_v12 = vpop.f32.mrf.mxu0 }
 0x528   :  { %v1793_v10 = vpack.c.bf16 %v1709_v12, %v1705_v61  ;;  %v2176_v23 = vmul.bf16 %v5945_v4, %v1792_v33 }
 0x529   :  { %v1713_v16 = vpop.f32.mrf.mxu0 }
 0x52a   :  { %v2177_v3 = vmul.bf16 %v5947_v11, %v1793_v10 }
 0x52b   :  { %v1715_v52 = vpop.f32.mrf.mxu0 }
 0x52c   :  { %2671 = vmatprep.mubr.bf16.mxu0 %v2177_v3  ;;  %v5890_v3 = vld [vmem:[%s8437_s6 + $0x24] ss:$16 sps:$4 sm:$0xff]  }
 0x52d   :  { %v1717_v54 = vpop.f32.mrf.mxu0  ;;  %2672 = vmatmul.mubr.bf16.gmra.mxu0 %v2176_v23 }
 0x52e   :  { %v1796_v42 = vpack.c.bf16 %v1717_v54, %v1713_v16  ;;  %v5888_v54 = vld [vmem:[%s8437_s6 + $0x20] ss:$16 sps:$4 sm:$0xff]  }
 0x52f   :  { %v1719_v19 = vpop.f32.mrf.mxu0 }
 0x530   :  { %v1797_v20 = vpack.c.bf16 %v1719_v19, %v1715_v52  ;;  %v2180_v27 = vmul.bf16 %v5951_v17, %v1796_v42 }
 0x531   :  { %v1723_v28 = vpop.f32.mrf.mxu0 }
 0x532   :  { %v2181_v29 = vmul.bf16 %v5953_v18, %v1797_v20 }
 0x533   :  { %v1725_v30 = vpop.f32.mrf.mxu0 }
 0x534   :  { %2679 = vmatprep.mubr.bf16.mxu0 %v2181_v29  ;;  %v5896_v29 = vld [vmem:[%s8437_s6 + $0x44] ss:$16 sps:$4 sm:$0xff]  }
 0x535   :  { %v1727_v31 = vpop.f32.mrf.mxu0  ;;  %2680 = vmatmul.mubr.bf16.gmra.mxu0 %v2180_v27 }
 0x536   :  { %v1800_v34 = vpack.c.bf16 %v1727_v31, %v1723_v28  ;;  %v5894_v31 = vld [vmem:[%s8437_s6 + $0x40] ss:$16 sps:$4 sm:$0xff]  }
 0x537   :  { %v1729_v35 = vpop.f32.mrf.mxu0 }
 0x538   :  { %v1801_v24 = vpack.c.bf16 %v1729_v35, %v1725_v30  ;;  %v2184_v21 = vmul.bf16 %v5957_v32, %v1800_v34 }
 0x539   :  { %v1733_v36 = vpop.f32.mrf.mxu0 }
 0x53a   :  { %v2185_v37 = vmul.bf16 %v5959_v46, %v1801_v24 }
 0x53b   :  { %v1735_v38 = vpop.f32.mrf.mxu0 }
 0x53c   :  { %2687 = vmatprep.mubr.bf16.mxu0 %v2185_v37  ;;  %v5902_v37 = vld [vmem:[%s8437_s6 + $0x64] ss:$16 sps:$4 sm:$0xff]  }
 0x53d   :  { %v1737_v40 = vpop.f32.mrf.mxu0  ;;  %2688 = vmatmul.mubr.bf16.gmra.mxu0 %v2184_v21 }
 0x53e   :  { %v1804_v44 = vpack.c.bf16 %v1737_v40, %v1733_v36 }
 0x53f   :  { %v1739_v45 = vpop.f32.mrf.mxu0 }
 0x540   :  { %v1805_v48 = vpack.c.bf16 %v1739_v45, %v1735_v38  ;;  %v2188_v55 = vmul.bf16 %v5963_v41, %v1804_v44 }
 0x541   :  { %v1196_v39 = vpop.f32.mrf.mxu1 }
 0x542   :  { %v7005_v49 = vmul.f32 %v6601_v6, %v1196_v39  ;;  %v2189_v22 = vmul.bf16 %v5965_v25, %v1805_v48  ;;  %v5900_v39 = vld [vmem:[%s8437_s6 + $0x60] ss:$16 sps:$4 sm:$0xff]  }
 0x543   :  { %v6999_v43 = vpop.f32.mrf.mxu1 }
 0x544   :  { %8502 = vst [vmem:[#allocation6_spill] sm:$0xff] %v7005_v49  ;;  %2695 = vmatprep.mubr.bf16.mxu0 %v2189_v22 }
 0x545   :  { %v1200_v47 = vpop.f32.mrf.mxu1  ;;  %2696 = vmatmul.mubr.bf16.gmra.mxu0 %v2188_v55  ;;  %v5908_v55 = vld [vmem:[%s8437_s6 + $0x84] ss:$16 sps:$4 sm:$0xff]  }
 0x546   :  { %v7008_v50 = vmul.f32 %v6605_v9, %v1200_v47  ;;  %2917 = vmatprep.mubr.bf16.mxu0 %v8446_v1 }
 0x547   :  { %v7010_v56 = vpop.f32.mrf.mxu1 }
 0x548   :  { %8503 = vst [vmem:[#allocation7_spill] sm:$0xff] %v7008_v50 }
 0x549   :  { %v1206_v26 = vpop.f32.mrf.mxu1 }
 0x54a   :  { %v7018_v6 = vmul.f32 %v6623_v15, %v1206_v26  ;;  %v5878_v15 = vld [vmem:[%s8437_s6] ss:$16 sps:$4 sm:$0xff]  }
 0x54b   :  { %v7014_v58 = vpop.f32.mrf.mxu1  ;;  %v5906_v26 = vld [vmem:[%s8437_s6 + $0x80] ss:$16 sps:$4 sm:$0xff]  }
 0x54c   :  { %8504 = vst [vmem:[#allocation8_spill] sm:$0xff] %v7014_v58  ;;  %8505 = vst [vmem:[#allocation9_spill] sm:$0xff] %v7018_v6 }
 0x54d   :  { %v1210_v59 = vpop.f32.mrf.mxu1 }
 0x54e   :  { %v7021_v9 = vmul.f32 %v6621_v14, %v1210_v59 }
 0x54f   :  { %v7023_v60 = vpop.f32.mrf.mxu1 }
 0x550   :  { %8506 = vst [vmem:[#allocation10_spill] sm:$0xff] %v7021_v9  ;;  %8507 = vst [vmem:[#allocation11_spill] sm:$0xff] %v7023_v60 }
 0x551   :  { %v1390_v51 = vpop.f32.mrf.mxu1 }
 0x553   :  { %v1392_v53 = vpop.f32.mrf.mxu1 }
 0x555   :  { %v1394_v61 = vpop.f32.mrf.mxu1 }
 0x556   :  { %v1742_v4 = vpack.c.bf16 %v1394_v61, %v1390_v51 }
 0x557   :  { %v1396_v33 = vpop.f32.mrf.mxu1 }
 0x558   :  { %v1743_v14 = vpack.c.bf16 %v1396_v33, %v1392_v53  ;;  %v2126_v10 = vmul.bf16 %v5878_v15, %v1742_v4  ;;  %v5914_v33 = vld [vmem:[%s8437_s6 + $0xa4] ss:$16 sps:$4 sm:$0xff]  }
 0x559   :  { %v1400_v11 = vpop.f32.mrf.mxu1 }
 0x55a   :  { %v2127_v12 = vmul.bf16 %v5882_v63, %v1743_v14 }
 0x55b   :  { %v1402_v23 = vpop.f32.mrf.mxu1 }
 0x55c   :  { %2414 = vmatprep.mubr.bf16.mxu1 %v2127_v12 }
 0x55d   :  { %v1404_v16 = vpop.f32.mrf.mxu1  ;;  %2415 = vmatmul.mubr.bf16.vlgmr.msra.gmra.mxu1 %v2126_v10 }
 0x55e   :  { %v1746_v52 = vpack.c.bf16 %v1404_v16, %v1400_v11  ;;  %v5912_v11 = vld [vmem:[%s8437_s6 + $0xa0] ss:$16 sps:$4 sm:$0xff]  }
 0x55f   :  { %v1406_v17 = vpop.f32.mrf.mxu1 }
 0x560   :  { %v1747_v42 = vpack.c.bf16 %v1406_v17, %v1402_v23  ;;  %v2130_v20 = vmul.bf16 %v5888_v54, %v1746_v52  ;;  %v5920_v17 = vld [vmem:[%s8437_s6 + $0xc4] ss:$16 sps:$4 sm:$0xff]  }
 0x561   :  { %v1410_v18 = vpop.f32.mrf.mxu1 }
 0x562   :  { %v2131_v19 = vmul.bf16 %v5890_v3, %v1747_v42 }
 0x563   :  { %v1412_v27 = vpop.f32.mrf.mxu1 }
 0x564   :  { %2422 = vmatprep.mubr.bf16.mxu1 %v2131_v19 }
 0x565   :  { %v1414_v28 = vpop.f32.mrf.mxu1  ;;  %2423 = vmatmul.mubr.bf16.gmra.mxu1 %v2130_v20 }
 0x566   :  { %v1750_v30 = vpack.c.bf16 %v1414_v28, %v1410_v18  ;;  %v5918_v18 = vld [vmem:[%s8437_s6 + $0xc0] ss:$16 sps:$4 sm:$0xff]  }
 0x567   :  { %v1416_v32 = vpop.f32.mrf.mxu1 }
 0x568   :  { %v1751_v34 = vpack.c.bf16 %v1416_v32, %v1412_v27  ;;  %v2134_v24 = vmul.bf16 %v5894_v31, %v1750_v30  ;;  %v5926_v32 = vld [vmem:[%s8437_s6 + $0xe4] ss:$16 sps:$4 sm:$0xff]  }
 0x569   :  { %v1420_v46 = vpop.f32.mrf.mxu1 }
 0x56a   :  { %v2135_v35 = vmul.bf16 %v5896_v29, %v1751_v34 }
 0x56b   :  { %v1422_v21 = vpop.f32.mrf.mxu1 }
 0x56c   :  { %2430 = vmatprep.mubr.bf16.mxu1 %v2135_v35 }
 0x56d   :  { %v1424_v36 = vpop.f32.mrf.mxu1  ;;  %2431 = vmatmul.mubr.bf16.gmra.mxu1 %v2134_v24 }
 0x56e   :  { %v1754_v38 = vpack.c.bf16 %v1424_v36, %v1420_v46  ;;  %v5924_v46 = vld [vmem:[%s8437_s6 + $0xe0] ss:$16 sps:$4 sm:$0xff]  }
 0x56f   :  { %v1426_v40 = vpop.f32.mrf.mxu1 }
 0x570   :  { %v1755_v41 = vpack.c.bf16 %v1426_v40, %v1422_v21  ;;  %v2138_v45 = vmul.bf16 %v5900_v39, %v1754_v38 }
 0x571   :  { %v1430_v44 = vpop.f32.mrf.mxu1 }
 0x572   :  { %v2139_v25 = vmul.bf16 %v5902_v37, %v1755_v41 }
 0x573   :  { %v1432_v47 = vpop.f32.mrf.mxu1 }
 0x574   :  { %2438 = vmatprep.mubr.bf16.mxu1 %v2139_v25  ;;  %v5932_v25 = vld [vmem:[%s8437_s6 + $0x104] ss:$16 sps:$4 sm:$0xff]  }
 0x575   :  { %v1434_v48 = vpop.f32.mrf.mxu1  ;;  %2439 = vmatmul.mubr.bf16.gmra.mxu1 %v2138_v45 }
 0x576   :  { %v1758_v22 = vpack.c.bf16 %v1434_v48, %v1430_v44  ;;  %v5930_v48 = vld [vmem:[%s8437_s6 + $0x100] ss:$16 sps:$4 sm:$0xff]  }
 0x577   :  { %v1436_v59 = vpop.f32.mrf.mxu1 }
 0x578   :  { %v1759_v51 = vpack.c.bf16 %v1436_v59, %v1432_v47  ;;  %v2142_v63 = vmul.bf16 %v5906_v26, %v1758_v22 }
 0x579   :  { %v1440_v53 = vpop.f32.mrf.mxu1 }
 0x57a   :  { %v2143_v61 = vmul.bf16 %v5908_v55, %v1759_v51 }
 0x57b   :  { %v1442_v4 = vpop.f32.mrf.mxu1 }
 0x57c   :  { %2446 = vmatprep.mubr.bf16.mxu1 %v2143_v61 }
 0x57d   :  { %v1444_v15 = vpop.f32.mrf.mxu1  ;;  %2447 = vmatmul.mubr.bf16.gmra.mxu1 %v2142_v63 }
 0x57e   :  { %v1762_v14 = vpack.c.bf16 %v1444_v15, %v1440_v53 }
 0x57f   :  { %v1446_v12 = vpop.f32.mrf.mxu1 }
 0x580   :  { %v1763_v10 = vpack.c.bf16 %v1446_v12, %v1442_v4  ;;  %v2146_v3 = vmul.bf16 %v5912_v11, %v1762_v14  ;;  %v5938_v14 = vld [vmem:[%s8437_s6 + $0x124] ss:$16 sps:$4 sm:$0xff]  }
 0x581   :  { %v1450_v23 = vpop.f32.mrf.mxu1 }
 0x582   :  { %v2147_v16 = vmul.bf16 %v5914_v33, %v1763_v10  ;;  %v5936_v10 = vld [vmem:[%s8437_s6 + $0x120] ss:$16 sps:$4 sm:$0xff]  }
 0x583   :  { %v1452_v52 = vpop.f32.mrf.mxu1 }
 0x584   :  { %2454 = vmatprep.mubr.bf16.mxu1 %v2147_v16 }
 0x585   :  { %v1454_v54 = vpop.f32.mrf.mxu1  ;;  %2455 = vmatmul.mubr.bf16.gmra.mxu1 %v2146_v3 }
 0x586   :  { %v1766_v42 = vpack.c.bf16 %v1454_v54, %v1450_v23 }
 0x587   :  { %v1456_v19 = vpop.f32.mrf.mxu1 }
 0x588   :  { %v1767_v20 = vpack.c.bf16 %v1456_v19, %v1452_v52  ;;  %v2150_v29 = vmul.bf16 %v5918_v18, %v1766_v42 }
 0x589   :  { %v1460_v27 = vpop.f32.mrf.mxu1 }
 0x58a   :  { %v2151_v28 = vmul.bf16 %v5920_v17, %v1767_v20 }
 0x58b   :  { %v1462_v30 = vpop.f32.mrf.mxu1 }
 0x58c   :  { %2462 = vmatprep.mubr.bf16.mxu1 %v2151_v28  ;;  %v5944_v28 = vld [vmem:[%s8437_s6 + $0x144] ss:$16 sps:$4 sm:$0xff]  }
 0x58d   :  { %v1464_v31 = vpop.f32.mrf.mxu1  ;;  %2463 = vmatmul.mubr.bf16.gmra.mxu1 %v2150_v29  ;;  %v5292_v37 = vpop.f32.mrf.mxu0 }
 0x58e   :  { %v1770_v34 = vpack.c.bf16 %v1464_v31, %v1460_v27  ;;  %v5942_v31 = vld [vmem:[%s8437_s6 + $0x140] ss:$16 sps:$4 sm:$0xff]  }
 0x58f   :  { %v1466_v35 = vpop.f32.mrf.mxu1  ;;  %v5293_v40 = vpop.f32.mrf.mxu0 }
 0x590   :  { %v1771_v24 = vpack.c.bf16 %v1466_v35, %v1462_v30  ;;  %v2154_v38 = vmul.bf16 %v5924_v46, %v1770_v34  ;;  %v7075_v44 = vadd.f32 %v5293_v40, %v5292_v37 }
 0x591   :  { %v1470_v21 = vpop.f32.mrf.mxu1  ;;  %v7080_v45 = vpop.f32.mrf.mxu0 }
 0x592   :  { %v2155_v36 = vmul.bf16 %v5926_v32, %v1771_v24 }
 0x593   :  { %v1472_v39 = vpop.f32.mrf.mxu1  ;;  %v7085_v26 = vpop.f32.mrf.mxu0 }
 0x594   :  { %2470 = vmatprep.mubr.bf16.mxu1 %v2155_v36 }
 0x595   :  { %v1474_v41 = vpop.f32.mrf.mxu1  ;;  %2471 = vmatmul.mubr.bf16.gmra.mxu1 %v2154_v38  ;;  %v5298_v53 = vpop.f32.mrf.mxu0 }
 0x596   :  { %v1774_v47 = vpack.c.bf16 %v1474_v41, %v1470_v21  ;;  %v5950_v41 = vld [vmem:[%s8437_s6 + $0x164] ss:$16 sps:$4 sm:$0xff]  }
 0x597   :  { %v1476_v55 = vpop.f32.mrf.mxu1  ;;  %v5299_v4 = vpop.f32.mrf.mxu0 }
 0x598   :  { %v1775_v22 = vpack.c.bf16 %v1476_v55, %v1472_v39  ;;  %v2158_v61 = vmul.bf16 %v5930_v48, %v1774_v47  ;;  %v7087_v33 = vadd.f32 %v5299_v4, %v5298_v53  ;;  %v5948_v48 = vld [vmem:[%s8437_s6 + $0x160] ss:$16 sps:$4 sm:$0xff]  }
 0x599   :  { %v1480_v59 = vpop.f32.mrf.mxu1  ;;  %v7092_v11 = vpop.f32.mrf.mxu0 }
 0x59a   :  { %v2159_v51 = vmul.bf16 %v5932_v25, %v1775_v22 }
 0x59b   :  { %v1482_v63 = vpop.f32.mrf.mxu1  ;;  %v7097_v3 = vpop.f32.mrf.mxu0 }
 0x59c   :  { %2478 = vmatprep.mubr.bf16.mxu1 %v2159_v51 }
 0x59d   :  { %v1484_v15 = vpop.f32.mrf.mxu1  ;;  %2479 = vmatmul.mubr.bf16.gmra.mxu1 %v2158_v61  ;;  %v5304_v17 = vpop.f32.mrf.mxu0 }
 0x59e   :  { %v1778_v12 = vpack.c.bf16 %v1484_v15, %v1480_v59 }
 0x59f   :  { %v1486_v23 = vpop.f32.mrf.mxu1  ;;  %v5305_v19 = vpop.f32.mrf.mxu0 }
 0x5a0   :  { %v1779_v16 = vpack.c.bf16 %v1486_v23, %v1482_v63  ;;  %v2162_v42 = vmul.bf16 %v5936_v10, %v1778_v12  ;;  %v7099_v27 = vadd.f32 %v5305_v19, %v5304_v17  ;;  %v5956_v10 = vld [vmem:[%s8437_s6 + $0x184] ss:$16 sps:$4 sm:$0xff]  }
 0x5a1   :  { %v1490_v52 = vpop.f32.mrf.mxu1  ;;  %v7104_v29 = vpop.f32.mrf.mxu0 }
 0x5a2   :  { %v2163_v54 = vmul.bf16 %v5938_v14, %v1779_v16 }
 0x5a3   :  { %v1492_v18 = vpop.f32.mrf.mxu1  ;;  %v7109_v46 = vpop.f32.mrf.mxu0 }
 0x5a4   :  { %2486 = vmatprep.mubr.bf16.mxu1 %v2163_v54 }
 0x5a5   :  { %v1494_v20 = vpop.f32.mrf.mxu1  ;;  %2487 = vmatmul.mubr.bf16.gmra.mxu1 %v2162_v42  ;;  %v5310_v21 = vpop.f32.mrf.mxu0 }
 0x5a6   :  { %v1782_v30 = vpack.c.bf16 %v1494_v20, %v1490_v52  ;;  %v5954_v52 = vld [vmem:[%s8437_s6 + $0x180] ss:$16 sps:$4 sm:$0xff]  }
 0x5a7   :  { %v1496_v32 = vpop.f32.mrf.mxu1  ;;  %v5311_v38 = vpop.f32.mrf.mxu0 }
 0x5a8   :  { %v1783_v34 = vpack.c.bf16 %v1496_v32, %v1492_v18  ;;  %v2166_v36 = vmul.bf16 %v5942_v31, %v1782_v30  ;;  %v7111_v40 = vadd.f32 %v5311_v38, %v5310_v21 }
 0x5a9   :  { %v1500_v35 = vpop.f32.mrf.mxu1  ;;  %v7116_v25 = vpop.f32.mrf.mxu0 }
 0x5aa   :  { %v2167_v24 = vmul.bf16 %v5944_v28, %v1783_v34 }
 0x5ab   :  { %v1502_v37 = vpop.f32.mrf.mxu1  ;;  %v7121_v59 = vpop.f32.mrf.mxu0 }
 0x5ac   :  { %2494 = vmatprep.mubr.bf16.mxu1 %v2167_v24 }
 0x5ad   :  { %v1504_v39 = vpop.f32.mrf.mxu1  ;;  %2495 = vmatmul.mubr.bf16.gmra.mxu1 %v2166_v36  ;;  %v5316_v61 = vpop.f32.mrf.mxu0  ;;  %v5960_v36 = vld [vmem:[%s8437_s6 + $0x1a0] ss:$16 sps:$4 sm:$0xff]  }
 0x5ae   :  { %v1786_v47 = vpack.c.bf16 %v1504_v39, %v1500_v35  ;;  %v5962_v35 = vld [vmem:[%s8437_s6 + $0x1a4] ss:$16 sps:$4 sm:$0xff]  }
 0x5af   :  { %v1506_v55 = vpop.f32.mrf.mxu1  ;;  %v5317_v15 = vpop.f32.mrf.mxu0 }
 0x5b0   :  { %v1787_v22 = vpack.c.bf16 %v1506_v55, %v1502_v37  ;;  %v2170_v63 = vmul.bf16 %v5948_v48, %v1786_v47  ;;  %v7123_v12 = vadd.f32 %v5317_v15, %v5316_v61 }
 0x5b1   :  { %v1510_v51 = vpop.f32.mrf.mxu1  ;;  %v7128_v23 = vpop.f32.mrf.mxu0 }
 0x5b2   :  { %v2171_v53 = vmul.bf16 %v5950_v41, %v1787_v22 }
 0x5b3   :  { %v1512_v4 = vpop.f32.mrf.mxu1  ;;  %v7133_v42 = vpop.f32.mrf.mxu0 }
 0x5b4   :  { %2502 = vmatprep.mubr.bf16.mxu1 %v2171_v53 }
 0x5b5   :  { %v1514_v14 = vpop.f32.mrf.mxu1  ;;  %2503 = vmatmul.mubr.bf16.gmra.mxu1 %v2170_v63  ;;  %v5322_v20 = vpop.f32.mrf.mxu0  ;;  %v5968_v63 = vld [vmem:[%s8437_s6 + $0x1c4] ss:$16 sps:$4 sm:$0xff]  }
 0x5b6   :  { %v1790_v16 = vpack.c.bf16 %v1514_v14, %v1510_v51  ;;  %v5966_v14 = vld [vmem:[%s8437_s6 + $0x1c0] ss:$16 sps:$4 sm:$0xff]  }
 0x5b7   :  { %v1516_v54 = vpop.f32.mrf.mxu1  ;;  %v5323_v31 = vpop.f32.mrf.mxu0 }
 0x5b8   :  { %v1791_v17 = vpack.c.bf16 %v1516_v54, %v1512_v4  ;;  %v2174_v28 = vmul.bf16 %v5954_v52, %v1790_v16  ;;  %v7135_v34 = vadd.f32 %v5323_v31, %v5322_v20 }
 0x5b9   :  { %v1520_v18 = vpop.f32.mrf.mxu1  ;;  %v7140_v24 = vpop.f32.mrf.mxu0 }
 0x5ba   :  { %v2175_v19 = vmul.bf16 %v5956_v10, %v1791_v17 }
 0x5bb   :  { %v1522_v30 = vpop.f32.mrf.mxu1  ;;  %v7145_v39 = vpop.f32.mrf.mxu0 }
 0x5bc   :  { %2510 = vmatprep.mubr.bf16.mxu1 %v2175_v19 }
 0x5bd   :  { %v1524_v32 = vpop.f32.mrf.mxu1  ;;  %2511 = vmatmul.mubr.bf16.gmra.mxu1 %v2174_v28  ;;  %v5328_v48 = vpop.f32.mrf.mxu0 }
 0x5be   :  { %v1794_v21 = vpack.c.bf16 %v1524_v32, %v1520_v18  ;;  %v5971_v32 = vld [vmem:[%s8437_s6 + $0x1e4] ss:$16 sps:$4 sm:$0xff]  }
 0x5bf   :  { %v1526_v37 = vpop.f32.mrf.mxu1  ;;  %v5329_v51 = vpop.f32.mrf.mxu0 }
 0x5c0   :  { %v1795_v38 = vpack.c.bf16 %v1526_v37, %v1522_v30  ;;  %v2178_v55 = vmul.bf16 %v5960_v36, %v1794_v21  ;;  %v7147_v61 = vadd.f32 %v5329_v51, %v5328_v48  ;;  %v5969_v36 = vld [vmem:[%s8437_s6 + $0x1e0] ss:$16 sps:$4 sm:$0xff]   ;;  %v1216_v48 = vmul.f32 %v6603_v8, %v6999_v43 }
 0x5c1   :  { %v1530_v41 = vpop.f32.mrf.mxu1  ;;  %v7152_v4 = vpop.f32.mrf.mxu0 }
 0x5c2   :  { %v2179_v47 = vmul.bf16 %v5962_v35, %v1795_v38  ;;  %v1218_v38 = vmul.f32 %v6607_v0, %v7010_v56 }
 0x5c3   :  { %v1532_v22 = vpop.f32.mrf.mxu1  ;;  %v7157_v52 = vpop.f32.mrf.mxu0 }
 0x5c4   :  { %2518 = vmatprep.mubr.bf16.mxu1 %v2179_v47 }
 0x5c5   :  { %v1534_v53 = vpop.f32.mrf.mxu1  ;;  %2519 = vmatmul.mubr.bf16.gmra.mxu1 %v2178_v55  ;;  %v5334_v18 = vpop.f32.mrf.mxu0 }
 0x5c6   :  { %v1798_v15 = vpack.c.bf16 %v1534_v53, %v1530_v41  ;;  %v1224_v53 = vpack.c.bf16 %v1218_v38, %v1216_v48 }
 0x5c7   :  { %v1536_v10 = vpop.f32.mrf.mxu1  ;;  %v5335_v28 = vpop.f32.mrf.mxu0 }
 0x5c8   :  { %v1799_v16 = vpack.c.bf16 %v1536_v10, %v1532_v22  ;;  %v2182_v19 = vmul.bf16 %v5966_v14, %v1798_v15  ;;  %v7159_v31 = vadd.f32 %v5335_v28, %v5334_v18 }
 0x5c9   :  { %v1540_v54 = vpop.f32.mrf.mxu1  ;;  %v7164_v35 = vpop.f32.mrf.mxu0 }
 0x5ca   :  { %v2183_v17 = vmul.bf16 %v5968_v63, %v1799_v16 }
 0x5cb   :  { %v1542_v20 = vpop.f32.mrf.mxu1  ;;  %v7171_v47 = vpop.f32.mrf.mxu0 }
 0x5cc   :  { %2526 = vmatprep.mubr.bf16.mxu1 %v2183_v17 }
 0x5cd   :  { %v1544_v30 = vpop.f32.mrf.mxu1  ;;  %2527 = vmatmul.mubr.bf16.gmra.mxu1 %v2182_v19  ;;  %v5340_v22 = vpop.f32.mrf.mxu0 }
 0x5ce   :  { %v1802_v21 = vpack.c.bf16 %v1544_v30, %v1540_v54 }
 0x5cf   :  { %v1546_v37 = vpop.f32.mrf.mxu1  ;;  %v5341_v63 = vpop.f32.mrf.mxu0 }
 0x5d0   :  { %v1803_v41 = vpack.c.bf16 %v1546_v37, %v1542_v20  ;;  %v2186_v51 = vmul.bf16 %v5969_v36, %v1802_v21  ;;  %v7175_v15 = vadd.f32 %v5341_v63, %v5340_v22  ;;  %v5297_v20 = vadd.f32 %v7085_v26, %v7080_v45 }
 0x5d1   :  { %v7177_v14 = vpop.f32.mrf.mxu0 }
 0x5d2   :  { %v2187_v55 = vmul.bf16 %v5971_v32, %v1803_v41 }
 0x5d3   :  { %v7179_v10 = vpop.f32.mrf.mxu0 }
 0x5d4   :  { %2534 = vmatprep.mubr.bf16.mxu1 %v2187_v55 }
 0x5d5   :  { %2535 = vmatmul.mubr.bf16.gmra.mxu1 %v2186_v51  ;;  %v5346_v0 = vpop.f32.mrf.mxu0 }
 0x5d6   :  { %2759 = vmatprep.mubr.bf16.mxu1 %v1224_v53 }
 0x5d7   :  { %v5347_v56 = vpop.f32.mrf.mxu0 }
 0x5d8   :  { %v7181_v16 = vadd.f32 %v5347_v56, %v5346_v0 }
 0x61d   :  { %v5180_v54 = vpop.f32.mrf.mxu1 }
 0x61f   :  { %v5181_v8 = vpop.f32.mrf.mxu1 }
 0x620   :  { %v5182_v43 = vadd.f32 %v5181_v8, %v5180_v54 }
 0x621   :  { %v5183_v17 = vpop.f32.mrf.mxu1 }
 0x622   :  { %v7184_v18 = vadd.f32 %v7075_v44, %v5182_v43  ;;  %v5303_v44 = vadd.f32 %v7097_v3, %v7092_v11  ;;  %v7206_v11 = vpop.f32.mrf.mxu0 }
 0x623   :  { %v5184_v19 = vpop.f32.mrf.mxu1 }
 0x624   :  { %8508 = vst [vmem:[#allocation12_spill] sm:$0xff] %v7184_v18  ;;  %v5185_v28 = vadd.f32 %v5184_v19, %v5183_v17 }
 0x625   :  { %v5186_v30 = vpop.f32.mrf.mxu1 }
 0x626   :  { %v7188_v32 = vadd.f32 %v5297_v20, %v5185_v28  ;;  %v7212_v28 = vpop.f32.mrf.mxu0 }
 0x627   :  { %v5187_v21 = vpop.f32.mrf.mxu1 }
 0x628   :  { %8509 = vst [vmem:[#allocation13_spill] sm:$0xff] %v7188_v32  ;;  %v5188_v37 = vadd.f32 %v5187_v21, %v5186_v30 }
 0x629   :  { %v5189_v38 = vpop.f32.mrf.mxu1 }
 0x62a   :  { %v7193_v41 = vadd.f32 %v7087_v33, %v5188_v37  ;;  %v5309_v33 = vadd.f32 %v7109_v46, %v7104_v29  ;;  %v5315_v29 = vadd.f32 %v7121_v59, %v7116_v25  ;;  %v7219_v37 = vpop.f32.mrf.mxu0  ;;  %v5321_v25 = vadd.f32 %v7133_v42, %v7128_v23  ;;  %v5972_v23 = vld [vmem:[%s8438_s11 + $0x60] ss:$16 sps:$4 sm:$0xff]  }
 0x62b   :  { %v5190_v48 = vpop.f32.mrf.mxu1  ;;  %v5327_v42 = vadd.f32 %v7145_v39, %v7140_v24 }
 0x62c   :  { %8510 = vst [vmem:[#allocation14_spill] sm:$0xff] %v7193_v41  ;;  %v5191_v55 = vadd.f32 %v5190_v48, %v5189_v38 }
 0x62d   :  { %v5192_v22 = vpop.f32.mrf.mxu1 }
 0x62e   :  { %v7197_v45 = vadd.f32 %v5303_v44, %v5191_v55 }
 0x62f   :  { %v5193_v26 = vpop.f32.mrf.mxu1 }
 0x630   :  { %8511 = vst [vmem:[#allocation15_spill] sm:$0xff] %v7197_v45  ;;  %v5194_v53 = vadd.f32 %v5193_v26, %v5192_v22  ;;  %v7225_v26 = vpop.f32.mrf.mxu0 }
 0x631   :  { %v5195_v63 = vpop.f32.mrf.mxu1 }
 0x632   :  { %v7202_v0 = vadd.f32 %v7099_v27, %v5194_v53 }
 0x633   :  { %v5196_v56 = vpop.f32.mrf.mxu1 }
 0x634   :  { %8512 = vst [vmem:[#allocation16_spill] sm:$0xff] %v7202_v0  ;;  %v5197_v54 = vadd.f32 %v5196_v56, %v5195_v63  ;;  %v7232_v56 = vpop.f32.mrf.mxu0 }
 0x635   :  { %v5198_v8 = vpop.f32.mrf.mxu1  ;;  %8517 = vst [vmem:[#allocation21_spill] sm:$0xff] %v7232_v56 }
 0x636   :  { %v7208_v3 = vadd.f32 %v5309_v33, %v5197_v54 }
 0x637   :  { %v5199_v43 = vpop.f32.mrf.mxu1 }
 0x638   :  { %8513 = vst [vmem:[#allocation17_spill] sm:$0xff] %v7208_v3  ;;  %v5200_v19 = vadd.f32 %v5199_v43, %v5198_v8 }
 0x639   :  { %v5201_v20 = vpop.f32.mrf.mxu1 }
 0x63a   :  { %v7215_v27 = vadd.f32 %v7111_v40, %v5200_v19 }
 0x63b   :  { %v5202_v30 = vpop.f32.mrf.mxu1 }
 0x63c   :  { %8514 = vst [vmem:[#allocation18_spill] sm:$0xff] %v7215_v27  ;;  %v5203_v46 = vadd.f32 %v5202_v30, %v5201_v20  ;;  %v7238_v20 = vpop.f32.mrf.mxu0 }
 0x63d   :  { %v5204_v21 = vpop.f32.mrf.mxu1  ;;  %8519 = vst [vmem:[#allocation23_spill] sm:$0xff] %v7238_v20 }
 0x63e   :  { %v7221_v38 = vadd.f32 %v5315_v29, %v5203_v46  ;;  %v5974_v46 = vld [vmem:[%s8438_s11 + $0x64] ss:$16 sps:$4 sm:$0xff]  }
 0x63f   :  { %v5205_v48 = vpop.f32.mrf.mxu1  ;;  %2893 = vmatprep.subr.bf16.mxu0 %v5974_v46 }
 0x640   :  { %8515 = vst [vmem:[#allocation19_spill] sm:$0xff] %v7221_v38  ;;  %v5206_v55 = vadd.f32 %v5205_v48, %v5204_v21  ;;  %v7251_v48 = vpop.f32.mrf.mxu0  ;;  %2894 = vmatpush1.bf16.msra.mxu0 %v5972_v23 }
 0x641   :  { %v5207_v22 = vpop.f32.mrf.mxu1 }
 0x642   :  { %v7228_v40 = vadd.f32 %v7123_v12, %v5206_v55 }
 0x643   :  { %v5208_v53 = vpop.f32.mrf.mxu1 }
 0x644   :  { %8516 = vst [vmem:[#allocation20_spill] sm:$0xff] %v7228_v40  ;;  %v5209_v59 = vadd.f32 %v5208_v53, %v5207_v22 }
 0x645   :  { %v5210_v63 = vpop.f32.mrf.mxu1 }
 0x646   :  { %v7234_v33 = vadd.f32 %v5321_v25, %v5209_v59  ;;  %v7257_v59 = vpop.f32.mrf.mxu0 }
 0x647   :  { %v5211_v54 = vpop.f32.mrf.mxu1 }
 0x648   :  { %8518 = vst [vmem:[#allocation22_spill] sm:$0xff] %v7234_v33  ;;  %v5212_v43 = vadd.f32 %v5211_v54, %v5210_v63  ;;  %v5333_v63 = vadd.f32 %v7157_v52, %v7152_v4  ;;  %v5339_v4 = vadd.f32 %v7171_v47, %v7164_v35  ;;  %v5345_v35 = vadd.f32 %v7179_v10, %v7177_v14 }
 0x649   :  { %v5213_v19 = vpop.f32.mrf.mxu1  ;;  %v5351_v14 = vadd.f32 %v7212_v28, %v7206_v11 }
 0x64a   :  { %v7241_v12 = vadd.f32 %v7135_v34, %v5212_v43 }
 0x64b   :  { %v5214_v30 = vpop.f32.mrf.mxu1 }
 0x64c   :  { %8520 = vst [vmem:[#allocation24_spill] sm:$0xff] %v7241_v12  ;;  %v5215_v29 = vadd.f32 %v5214_v30, %v5213_v19  ;;  %v7264_v19 = vpop.f32.mrf.mxu0 }
 0x64d   :  { %v5216_v21 = vpop.f32.mrf.mxu1 }
 0x64e   :  { %v7253_v55 = vadd.f32 %v5327_v42, %v5215_v29 }
 0x64f   :  { %v5217_v34 = vpop.f32.mrf.mxu1 }
 0x650   :  { %8521 = vst [vmem:[#allocation25_spill] sm:$0xff] %v7253_v55  ;;  %v5218_v53 = vadd.f32 %v5217_v34, %v5216_v21  ;;  %v7270_v21 = vpop.f32.mrf.mxu0 }
 0x651   :  { %v5219_v25 = vpop.f32.mrf.mxu1 }
 0x652   :  { %v7260_v24 = vadd.f32 %v7147_v61, %v5218_v53 }
 0x653   :  { %v5220_v39 = vpop.f32.mrf.mxu1 }
 0x654   :  { %v5221_v54 = vadd.f32 %v5220_v39, %v5219_v25  ;;  %v7277_v25 = vpop.f32.mrf.mxu0 }
 0x655   :  { %v5222_v43 = vpop.f32.mrf.mxu1 }
 0x656   :  { %v7266_v30 = vadd.f32 %v5333_v63, %v5221_v54  ;;  %v7283_v1 = vpop.f32.mrf.mxu0 }
 0x657   :  { %v5223_v23 = vpop.f32.mrf.mxu1 }
 0x658   :  { %v5224_v29 = vadd.f32 %v5223_v23, %v5222_v43 }
 0x659   :  { %v5225_v46 = vpop.f32.mrf.mxu1 }
 0x65a   :  { %v7273_v61 = vadd.f32 %v7159_v31, %v5224_v29 }
 0x65b   :  { %v5226_v34 = vpop.f32.mrf.mxu1 }
 0x65c   :  { %v5227_v52 = vadd.f32 %v5226_v34, %v5225_v46  ;;  %v7290_v34 = vpop.f32.mrf.mxu0 }
 0x65d   :  { %v5228_v53 = vpop.f32.mrf.mxu1 }
 0x65e   :  { %v7279_v39 = vadd.f32 %v5339_v4, %v5227_v52  ;;  %v7296_v57 = vpop.f32.mrf.mxu0 }
 0x65f   :  { %v5229_v63 = vpop.f32.mrf.mxu1 }
 0x660   :  { %v5230_v43 = vadd.f32 %v5229_v63, %v5228_v53 }
 0x661   :  { %v5231_v23 = vpop.f32.mrf.mxu1 }
 0x662   :  { %v7286_v31 = vadd.f32 %v7175_v15, %v5230_v43 }
 0x663   :  { %v5232_v29 = vpop.f32.mrf.mxu1 }
 0x664   :  { %8522 = vst [vmem:[#allocation26_spill] sm:$0xff] %v7286_v31  ;;  %v5233_v47 = vadd.f32 %v5232_v29, %v5231_v23  ;;  %v5370_v29 = vpop.f32.mrf.mxu0 }
 0x665   :  { %v5234_v46 = vpop.f32.mrf.mxu1 }
 0x666   :  { %v7292_v4 = vadd.f32 %v5345_v35, %v5233_v47 }
 0x667   :  { %v5235_v52 = vpop.f32.mrf.mxu1 }
 0x668   :  { %8523 = vst [vmem:[#allocation27_spill] sm:$0xff] %v7292_v4  ;;  %v5236_v2 = vadd.f32 %v5235_v52, %v5234_v46  ;;  %v5354_v46 = vadd.f32 %v7225_v26, %v7219_v37 }
 0x669   :  { %v5237_v63 = vpop.f32.mrf.mxu1 }
 0x66a   :  { %v7299_v15 = vadd.f32 %v7181_v16, %v5236_v2  ;;  %v5371_v2 = vpop.f32.mrf.mxu0 }
 0x66b   :  { %v5238_v43 = vpop.f32.mrf.mxu1  ;;  %v5372_v12 = vadd.f32 %v5371_v2, %v5370_v29  ;;  %v8555_v29 = vld [vmem:[#allocation11_spill] sm:$0xff] }
 0x66c   :  { %8524 = vst [vmem:[#allocation28_spill] sm:$0xff] %v7299_v15  ;;  %v5239_v10 = vadd.f32 %v5238_v43, %v5237_v63  ;;  %v5373_v28 = vpop.f32.mrf.mxu0 }
 0x66d   :  { %v5240_v23 = vpop.f32.mrf.mxu1 }
 0x66e   :  { %v7303_v35 = vadd.f32 %v5351_v14, %v5239_v10  ;;  %v5374_v14 = vpop.f32.mrf.mxu0 }
 0x66f   :  { %v5241_v47 = vpop.f32.mrf.mxu1  ;;  %v5375_v40 = vadd.f32 %v5374_v14, %v5373_v28 }
 0x670   :  { %8525 = vst [vmem:[#allocation29_spill] sm:$0xff] %v7303_v35  ;;  %v5242_v52 = vadd.f32 %v5241_v47, %v5240_v23  ;;  %v5376_v44 = vpop.f32.mrf.mxu0 }
 0x671   :  { %v7309_v53 = vpop.f32.mrf.mxu1 }
 0x672   :  { %v7311_v16 = vadd.f32 %v5354_v46, %v5242_v52  ;;  %v5377_v23 = vpop.f32.mrf.mxu0 }
 0x673   :  { %v7313_v51 = vpop.f32.mrf.mxu1  ;;  %v5378_v0 = vadd.f32 %v5377_v23, %v5376_v44  ;;  %v8563_v23 = vld [vmem:[#allocation6_spill] sm:$0xff] }
 0x674   :  { %8526 = vst [vmem:[#allocation30_spill] sm:$0xff] %v7311_v16  ;;  %8527 = vst [vmem:[#allocation31_spill] sm:$0xff] %v7313_v51  ;;  %v5379_v36 = vpop.f32.mrf.mxu0 }
 0x675   :  { %v5246_v11 = vpop.f32.mrf.mxu1 }
 0x676   :  { %v5380_v42 = vpop.f32.mrf.mxu0 }
 0x677   :  { %v5247_v63 = vpop.f32.mrf.mxu1  ;;  %v5381_v31 = vadd.f32 %v5380_v42, %v5379_v36 }
 0x678   :  { %v5382_v54 = vpop.f32.mrf.mxu0 }
 0x679   :  { %v5249_v43 = vpop.f32.mrf.mxu1 }
 0x67a   :  { %v5383_v6 = vpop.f32.mrf.mxu0 }
 0x67b   :  { %v5250_v10 = vpop.f32.mrf.mxu1  ;;  %v5384_v41 = vadd.f32 %v5383_v6, %v5382_v54  ;;  %v8528_v6 = vpack.c.bf16 %v7279_v39, %v7273_v61  ;;  %v8547_v61 = vld [vmem:[#allocation28_spill] sm:$0xff]  ;;  %v8549_v39 = vld [vmem:[#allocation15_spill] sm:$0xff]  ;;  %v8550_v54 = vld [vmem:[#allocation14_spill] sm:$0xff] }
 0x67c   :  { %v5385_v50 = vpop.f32.mrf.mxu0 }
 0x67d   :  { %v5252_v17 = vpop.f32.mrf.mxu1 }
 0x67e   :  { %v5386_v13 = vpop.f32.mrf.mxu0 }
 0x67f   :  { %v5253_v37 = vpop.f32.mrf.mxu1  ;;  %v5387_v45 = vadd.f32 %v5386_v13, %v5385_v50  ;;  %v5251_v50 = vadd.f32 %v5250_v10, %v5249_v43  ;;  %v8560_v43 = vld [vmem:[#allocation12_spill] sm:$0xff]  ;;  %v5975_v10 = vld [vmem:[%s8438_s11 + $0x68] ss:$16 sps:$4 sm:$0xff]  }
 0x681   :  { %v5255_v26 = vpop.f32.mrf.mxu1 }
 0x683   :  { %v5256_v47 = vpop.f32.mrf.mxu1 }
 0x684   :  { %v5257_v55 = vadd.f32 %v5256_v47, %v5255_v26  ;;  %v8562_v26 = vld [vmem:[#allocation7_spill] sm:$0xff] }
 0x685   :  { %v5258_v8 = vpop.f32.mrf.mxu1  ;;  %v8564_v47 = vpack.c.bf16 %v8562_v26, %v8563_v23  ;;  %v6018_v26 = vld [vmem:[%s8439_s12 + $0x10] sm:$0xff]  }
 0x686   :  { %v6019_v23 = vld [vmem:[%s8439_s12 + $0x90] sm:$0xff]  }
 0x687   :  { %v5259_v22 = vpop.f32.mrf.mxu1 }
 0x688   :  { %v5260_v33 = vadd.f32 %v5259_v22, %v5258_v8  ;;  %v8536_v8 = vld [vmem:[#allocation22_spill] sm:$0xff]  ;;  %v8540_v22 = vld [vmem:[#allocation19_spill] sm:$0xff] }
 0x689   :  { %v5261_v46 = vpop.f32.mrf.mxu1 }
 0x68a   :  { %v2682_v13 = vadd.f32 %v5372_v12, %v5260_v33 }
 0x68b   :  { %v5262_v52 = vpop.f32.mrf.mxu1 }
 0x68c   :  { %v5263_v3 = vadd.f32 %v5262_v52, %v5261_v46  ;;  %v8565_v46 = vld [vmem:[#allocation10_spill] sm:$0xff]  ;;  %v8566_v52 = vld [vmem:[#allocation9_spill] sm:$0xff] }
 0x68d   :  { %v5264_v7 = vpop.f32.mrf.mxu1 }
 0x68e   :  { %v2685_v51 = vadd.f32 %v5375_v40, %v5263_v3  ;;  %v8531_v3 = vld [vmem:[#allocation25_spill] sm:$0xff] }
 0x68f   :  { %v5265_v5 = vpop.f32.mrf.mxu1 }
 0x690   :  { %v5266_v15 = vadd.f32 %v5265_v5, %v5264_v7  ;;  %v5369_v5 = vadd.f32 %v7296_v57, %v7290_v34  ;;  %v5254_v7 = vadd.f32 %v5253_v37, %v5252_v17  ;;  %v5360_v57 = vadd.f32 %v7257_v59, %v7251_v48  ;;  %v8539_v48 = vld [vmem:[#allocation30_spill] sm:$0xff]  ;;  %v8552_v34 = vld [vmem:[#allocation27_spill] sm:$0xff] }
 0x691   :  { %v5267_v9 = vpop.f32.mrf.mxu1  ;;  %v8541_v59 = vld [vmem:[#allocation18_spill] sm:$0xff] }
 0x692   :  { %v2690_v20 = vadd.f32 %v5378_v0, %v5266_v15  ;;  %v5977_v15 = vld [vmem:[%s8438_s11 + $0x6c] ss:$16 sps:$4 sm:$0xff]  }
 0x693   :  { %v5268_v49 = vpop.f32.mrf.mxu1 }
 0x694   :  { %v5269_v62 = vadd.f32 %v5268_v49, %v5267_v9  ;;  %v2717_v9 = vpack.c.bf16 %v2685_v51, %v2682_v13  ;;  %v8532_v51 = vld [vmem:[#allocation24_spill] sm:$0xff] }
 0x695   :  { %v5270_v18 = vpop.f32.mrf.mxu1  ;;  %v8533_v17 = vpack.c.bf16 %v8531_v3, %v8532_v51  ;;  %v5978_v13 = vld [vmem:[%s8438_s11 + $0x40] ss:$16 sps:$4 sm:$0xff]  }
 0x696   :  { %v2693_v27 = vadd.f32 %v5381_v31, %v5269_v62  ;;  %v5366_v62 = vadd.f32 %v7283_v1, %v7277_v25  ;;  %v8551_v31 = vpack.c.bf16 %v8549_v39, %v8550_v54  ;;  %v4978_v51 = vld [vmem:[%s8440_s10] ss:$0 sm:$0xff]  ;;  %v6003_v39 = vld [vmem:[%s8439_s12 + $0xb0] sm:$0xff]   ;;  %v6004_v54 = vld [vmem:[%s8439_s12 + $0x68] sm:$0xff]  }
 0x697   :  { %v5271_v32 = vpop.f32.mrf.mxu1 }
 0x698   :  { %v5272_v60 = vadd.f32 %v5271_v32, %v5270_v18  ;;  %v2718_v49 = vpack.c.bf16 %v2693_v27, %v2690_v20  ;;  %v5363_v18 = vadd.f32 %v7270_v21, %v7264_v19  ;;  %v5248_v32 = vadd.f32 %v5247_v63, %v5246_v11  ;;  %v8534_v27 = vld [vmem:[#allocation21_spill] sm:$0xff]  ;;  %v8537_v20 = vld [vmem:[#allocation20_spill] sm:$0xff] }
 0x699   :  { %v5273_v58 = vpop.f32.mrf.mxu1  ;;  %v2674_v36 = vadd.f32 %v5366_v62, %v5254_v7  ;;  %v8538_v12 = vpack.c.bf16 %v8536_v8, %v8537_v20  ;;  %v8543_v19 = vld [vmem:[#allocation17_spill] sm:$0xff]  ;;  %v8558_v11 = vld [vmem:[#allocation4_spill] sm:$0xff] }
 0x69a   :  { %v2698_v38 = vadd.f32 %v5384_v41, %v5272_v60  ;;  %v8529_v60 = vpack.c.bf16 %v7266_v30, %v7260_v24  ;;  %v8530_v41 = vld [vmem:[#allocation31_spill] sm:$0xff]  ;;  %v2669_v1 = vadd.f32 %v5363_v18, %v5251_v50  ;;  %v2666_v40 = vadd.f32 %v5360_v57, %v5248_v32  ;;  %v8544_v30 = vld [vmem:[#allocation16_spill] sm:$0xff]  ;;  %v8546_v21 = vld [vmem:[#allocation29_spill] sm:$0xff] }
 0x69b   :  { %v5274_v4 = vpop.f32.mrf.mxu1  ;;  %v8542_v24 = vpack.c.bf16 %v8540_v22, %v8541_v59  ;;  %v8545_v42 = vpack.c.bf16 %v8543_v19, %v8544_v30  ;;  %v8548_v25 = vpack.c.bf16 %v8546_v21, %v8547_v61  ;;  %v8559_v63 = vld [vmem:[#allocation13_spill] sm:$0xff]  ;;  %v5986_v50 = vld [vmem:[%s8438_s11 + $0x24] ss:$16 sps:$4 sm:$0xff]  }
 0x69c   :  { %v5275_v35 = vadd.f32 %v5274_v4, %v5273_v58  ;;  %v2677_v58 = vadd.f32 %v5369_v5, %v5257_v55  ;;  %v2715_v33 = vpack.c.bf16 %v2669_v1, %v2666_v40  ;;  %v8553_v4 = vld [vmem:[#allocation26_spill] sm:$0xff]  ;;  %v8561_v14 = vpack.c.bf16 %v8559_v63, %v8560_v43  ;;  %v5983_v7 = vld [vmem:[%s8438_s11 + $0x4c] ss:$16 sps:$4 sm:$0xff]   ;;  %v5981_v62 = vld [vmem:[%s8438_s11 + $0x48] ss:$16 sps:$4 sm:$0xff]  }
 0x69d   :  { %v5980_v5 = vld [vmem:[%s8438_s11 + $0x44] ss:$16 sps:$4 sm:$0xff]   ;;  %v5995_v32 = vld [vmem:[%s8438_s11 + $0xc] ss:$16 sps:$4 sm:$0xff]   ;;  %v5993_v57 = vld [vmem:[%s8438_s11 + $0x8] ss:$16 sps:$4 sm:$0xff]  }
 0x69e   :  { %v2701_v16 = vadd.f32 %v5387_v45, %v5275_v35  ;;  %v5245_v45 = vadd.f32 %v8530_v41, %v7309_v53  ;;  %v2716_v0 = vpack.c.bf16 %v2677_v58, %v2674_v36  ;;  %v8554_v53 = vpack.c.bf16 %v8552_v34, %v8553_v4  ;;  %v8556_v35 = vld [vmem:[#allocation5_spill] sm:$0xff]  ;;  %2895 = vmatprep.subr.bf16.mxu0 %v5980_v5  ;;  %v5992_v18 = vld [vmem:[%s8438_s11 + $0x4] ss:$16 sps:$4 sm:$0xff]   ;;  %v5990_v36 = vld [vmem:[%s8438_s11] ss:$16 sps:$4 sm:$0xff]  }
 0x69f   :  { %v1222_v2 = vmul.f32 %v8556_v35, %v8555_v29  ;;  %2896 = vmatpush1.bf16.msra.mxu0 %v5978_v13  ;;  %v5989_v58 = vld [vmem:[%s8438_s11 + $0x2c] ss:$16 sps:$4 sm:$0xff]   ;;  %v6000_v19 = vld [vmem:[%s8439_s12 + $0x70] sm:$0xff]   ;;  %v6008_v35 = vld [vmem:[%s8439_s12 + $0x60] sm:$0xff]  }
 0x6a0   :  { %v2719_v56 = vpack.c.bf16 %v2701_v16, %v2698_v38  ;;  %v8535_v38 = vld [vmem:[#allocation23_spill] sm:$0xff]  ;;  %v8557_v16 = vld [vmem:[#allocation8_spill] sm:$0xff]  ;;  %2897 = vmatprep.subr.bf16.mxu0 %v5986_v50  ;;  %v5996_v41 = vld [vmem:[%s8439_s12 + $0x78] sm:$0xff]  }
 0x6a1   :  { %v5357_v44 = vadd.f32 %v8535_v38, %v8534_v27  ;;  %v1220_v28 = vmul.f32 %v8558_v11, %v8557_v16  ;;  %v5998_v22 = vld [vmem:[%s8439_s12 + $0x38] sm:$0xff]   ;;  %v6001_v30 = vld [vmem:[%s8439_s12 + $0xf0] sm:$0xff]   ;;  %v6007_v29 = vld [vmem:[%s8439_s12 + $0xa8] sm:$0xff]  }
 0x6a2   :  { %5388 = vmatprep.subr.bf16.mxu1 %v2719_v56  ;;  %v5999_v59 = vld [vmem:[%s8439_s12 + $0xb8] sm:$0xff]   ;;  %v6010_v16 = vld [vmem:[%s8439_s12 + $0x20] sm:$0xff]  }
 0x6a3   :  { %5389 = vmatpush3.bf16.msra.mxu1 %v8528_v6  ;;  %v2661_v56 = vadd.f32 %v5357_v44, %v5245_v45  ;;  %v1226_v37 = vpack.c.bf16 %v1222_v2, %v1220_v28  ;;  %v8568_v6 = vmov 0   ;;  %v5997_v45 = vld [vmem:[%s8439_s12 + $0xf8] sm:$0xff]   ;;  %v6009_v2 = vld [vmem:[%s8439_s12 + $0xe0] sm:$0xff]  }
 0x6a4   :  { %5390 = vmatprep.subr.bf16.mxu1 %v2718_v49  ;;  %v8567_v49 = vpack.c.bf16 %v8565_v46, %v8566_v52  ;;  %v6011_v11 = vld [vmem:[%s8439_s12 + $0xa0] sm:$0xff]   ;;  %v6012_v28 = vld [vmem:[%s8439_s12 + $0x58] sm:$0xff]   ;;  %v6021_v46 = vld [vmem:[%s8439_s12 + $0xc8] sm:$0xff]  }
 0x6a5   :  { %v2714_v55 = vpack.c.bf16 %v2661_v56, %v8539_v48  ;;  %v6013_v63 = vld [vmem:[%s8439_s12 + $0xd8] sm:$0xff]   ;;  %v6022_v52 = vld [vmem:[%s8439_s12 + $0x8] sm:$0xff]   ;;  %v6024_v5 = vld [vmem:[%s8439_s12 + $0x40] sm:$0xff]  }
 0x6a6   :  { %v6014_v43 = vld [vmem:[%s8439_s12 + $0x18] sm:$0xff]   ;;  %v6026_v13 = vld [vmem:[%s8439_s12] sm:$0xff]  }
 0x6a7   :  { %5391 = vmatpush3.bf16.msra.mxu1 %v8529_v60  ;;  %v5987_v60 = vld [vmem:[%s8438_s11 + $0x28] ss:$16 sps:$4 sm:$0xff]   ;;  %v8569_v50 = vld [vmem:[#allocation2_spill] sm:$0xff] }
 0x6a8   :  { %5392 = vmatprep.subr.bf16.mxu1 %v2717_v9  ;;  %v5984_v9 = vld [vmem:[%s8438_s11 + $0x20] ss:$16 sps:$4 sm:$0xff]  }
 0x6a9   :  { %2898 = vmatpush1.bf16.msra.mxu0 %v5984_v9 }
 0x6aa   :  { %2899 = vmatprep.subr.bf16.mxu0 %v5992_v18 }
 0x6ab   :  { %5393 = vmatpush3.bf16.msra.mxu1 %v8533_v17 }
 0x6ac   :  { %5394 = vmatprep.subr.bf16.mxu1 %v2716_v0 }
 0x6ad   :  { %2900 = vmatpush1.bf16.msra.mxu0 %v5990_v36 }
 0x6ae   :  { %5416 = vmatprep.subr.bf16.mxu0 %v5996_v41 }
 0x6af   :  { %5395 = vmatpush3.bf16.msra.mxu1 %v8538_v12 }
 0x6b0   :  { %5396 = vmatprep.subr.bf16.mxu1 %v2715_v33 }
 0x6b3   :  { %5397 = vmatpush3.bf16.msra.mxu1 %v8542_v24 }
 0x6b4   :  { %5398 = vmatprep.subr.bf16.mxu1 %v2714_v55 }
 0x6b7   :  { %5399 = vmatpush3.bf16.msra.mxu1 %v8545_v42 }
 0x6b8   :  { %5400 = vmatprep.subr.bf16.mxu1 %v8548_v25  ;;  %v6002_v25 = vld [vmem:[%s8439_s12 + $0x30] sm:$0xff]  }
 0x6bb   :  { %5401 = vmatpush3.bf16.msra.mxu1 %v8551_v31  ;;  %v6005_v31 = vld [vmem:[%s8439_s12 + $0xe8] sm:$0xff]  }
 0x6bc   :  { %5402 = vmatprep.subr.bf16.mxu1 %v8554_v53 }
 0x6bf   :  { %5403 = vmatpush3.bf16.msra.mxu1 %v8561_v14  ;;  %v6015_v14 = vld [vmem:[%s8439_s12 + $0x98] sm:$0xff]  }
 0x6c0   :  { %2946 = vmatprep.subr.bf16.mxu1 %v5977_v15  ;;  %v6006_v15 = vld [vmem:[%s8439_s12 + $0x28] sm:$0xff]  }
 0x6c2   :  { %2760 = vmatmul.mubr.bf16.vlgmr.msra.gmra.mxu1 %v8564_v47  ;;  %v6020_v47 = vld [vmem:[%s8439_s12 + $0x48] sm:$0xff]  }
 0x6c3   :  { %2767 = vmatprep.mubr.bf16.mxu1 %v1226_v37  ;;  %2947 = vmatpush1.bf16.msra.mxu1 %v5975_v10  ;;  %v6016_v10 = vld [vmem:[%s8439_s12 + $0x50] sm:$0xff]  }
 0x6c4   :  { %2948 = vmatprep.subr.bf16.mxu1 %v5983_v7  ;;  %v6017_v37 = vld [vmem:[%s8439_s12 + $0xd0] sm:$0xff]   ;;  %v6025_v7 = vld [vmem:[%s8439_s12 + $0xc0] sm:$0xff]  }
 0x6c7   :  { %2949 = vmatpush1.bf16.msra.mxu1 %v5981_v62  ;;  %v6027_v62 = vld [vmem:[%s8439_s12 + $0x80] sm:$0xff]  }
 0x6c8   :  { %2950 = vmatprep.subr.bf16.mxu1 %v5989_v58 }
 0x6ca   :  { %2768 = vmatmul.mubr.bf16.gmra.mxu1 %v8567_v49  ;;  %v6023_v49 = vld [vmem:[%s8439_s12 + $0x88] sm:$0xff]  }
 0x6cb   :  { %2970 = vmatprep.mubr.bf16.mxu1 %v8568_v6  ;;  %2951 = vmatpush1.bf16.msra.mxu1 %v5987_v60 }
 0x6cc   :  { %2952 = vmatprep.subr.bf16.mxu1 %v5995_v32 }
 0x6cf   :  { %2953 = vmatpush1.bf16.msra.mxu1 %v5993_v57 }
 0x6d0   :  { %5444 = vmatprep.subr.bf16.mxu1 %v5997_v45 }
 0x782   :  { %v5404_v1 = vpop.f32.mrf.mxu1 }
 0x784   :  { %v5405_v0 = vpop.f32.mrf.mxu1 }
 0x785   :  { %v5406_v3 = vadd.f32 %v5405_v0, %v5404_v1 }
 0x786   :  { %v5407_v17 = vpop.f32.mrf.mxu1 }
 0x787   :  { %v2762_v38 = vadd.f32 %v5406_v3, %v4978_v51 }
 0x788   :  { %v5408_v27 = vpop.f32.mrf.mxu1 }
 0x789   :  { %v5409_v44 = vadd.f32 %v5408_v27, %v5407_v17  ;;  %v2776_v8 = vmax.f32 %v2762_v38, 0.0 }
 0x78a   :  { %v5410_v40 = vpop.f32.mrf.mxu1 }
 0x78b   :  { %v2765_v56 = vadd.f32 %v5409_v44, %v4978_v51  ;;  %v8570_v44 = vld [vmem:[#allocation3_spill] sm:$0xff] }
 0x78c   :  { %v5411_v33 = vpop.f32.mrf.mxu1 }
 0x78d   :  { %v2777_v20 = vmax.f32 %v2765_v56, 0.0  ;;  %v5412_v12 = vadd.f32 %v5411_v33, %v5410_v40  ;;  %v6096_v33 = vld [vmem:[%s8432_s3 + $0x78] sm:$0xff]  }
 0x78e   :  { %v5413_v48 = vpop.f32.mrf.mxu1 }
 0x78f   :  { %v2780_v55 = vpack.c.bf16 %v2777_v20, %v2776_v8  ;;  %v2770_v42 = vadd.f32 %v5412_v12, %v4978_v51 }
 0x790   :  { %v5414_v24 = vpop.f32.mrf.mxu1 }
 0x791   :  { %v5415_v21 = vadd.f32 %v5414_v24, %v5413_v48  ;;  %4995 = vmatmul.mubr.msk.bf16.vlgmr.msra.gmra.mxu0 %vm2878_vm4, %v2780_v55  ;;  %4997 = vmatmul.mubr.msk.bf16.vlgmr.msra.gmra.mxu1 %vm2878_vm4, %v2780_v55  ;;  %v2778_v34 = vmax.f32 %v2770_v42, 0.0 }
 0x792   :  { %2927 = vmatprep.mubr.bf16.mxu0 %v8568_v6  ;;  %2980 = vmatprep.mubr.bf16.mxu1 %v8568_v6 }
 0x793   :  { %v2773_v61 = vadd.f32 %v5415_v21, %v4978_v51  ;;  %5417 = vmatpush3.bf16.msra.mxu0 %v5998_v22  ;;  %5445 = vmatpush3.bf16.msra.mxu1 %v5999_v59 }
 0x794   :  { %5418 = vmatprep.subr.bf16.mxu0 %v6000_v19  ;;  %5446 = vmatprep.subr.bf16.mxu1 %v6001_v30 }
 0x795   :  { %v2779_v4 = vmax.f32 %v2773_v61, 0.0 }
 0x797   :  { %v2781_v53 = vpack.c.bf16 %v2779_v4, %v2778_v34  ;;  %5419 = vmatpush3.bf16.msra.mxu0 %v6002_v25  ;;  %5447 = vmatpush3.bf16.msra.mxu1 %v6003_v39 }
 0x798   :  { %5420 = vmatprep.subr.bf16.mxu0 %v6004_v54  ;;  %5448 = vmatprep.subr.bf16.mxu1 %v6005_v31 }
 0x799   :  { %4996 = vmatmul.mubr.msk.bf16.gmra.mxu0 %vm2878_vm4, %v2781_v53  ;;  %4998 = vmatmul.mubr.msk.bf16.gmra.mxu1 %vm2878_vm4, %v2781_v53 }
 0x79b   :  { %5421 = vmatpush3.bf16.msra.mxu0 %v6006_v15  ;;  %5449 = vmatpush3.bf16.msra.mxu1 %v6007_v29 }
 0x79c   :  { %5422 = vmatprep.subr.bf16.mxu0 %v6008_v35  ;;  %5450 = vmatprep.subr.bf16.mxu1 %v6009_v2 }
 0x79f   :  { %5423 = vmatpush3.bf16.msra.mxu0 %v6010_v16  ;;  %5451 = vmatpush3.bf16.msra.mxu1 %v6011_v11 }
 0x7a0   :  { %5424 = vmatprep.subr.bf16.mxu0 %v6012_v28  ;;  %5452 = vmatprep.subr.bf16.mxu1 %v6013_v63 }
 0x7a3   :  { %5425 = vmatpush3.bf16.msra.mxu0 %v6014_v43  ;;  %5453 = vmatpush3.bf16.msra.mxu1 %v6015_v14 }
 0x7a4   :  { %5426 = vmatprep.subr.bf16.mxu0 %v6016_v10  ;;  %5454 = vmatprep.subr.bf16.mxu1 %v6017_v37 }
 0x7a7   :  { %5427 = vmatpush3.bf16.msra.mxu0 %v6018_v26  ;;  %5455 = vmatpush3.bf16.msra.mxu1 %v6019_v23 }
 0x7a8   :  { %5428 = vmatprep.subr.bf16.mxu0 %v6020_v47  ;;  %5456 = vmatprep.subr.bf16.mxu1 %v6021_v46 }
 0x7ab   :  { %5429 = vmatpush3.bf16.msra.mxu0 %v6022_v52  ;;  %5457 = vmatpush3.bf16.msra.mxu1 %v6023_v49  ;;  %v6097_v49 = vld [vmem:[%s8432_s3 + $0x38] sm:$0xff]  }
 0x7ac   :  { %5430 = vmatprep.subr.bf16.mxu0 %v6024_v5  ;;  %5458 = vmatprep.subr.bf16.mxu1 %v6025_v7  ;;  %v6098_v5 = vld [vmem:[%s8432_s3 + $0x70] sm:$0xff]  }
 0x7ad   :  { %v6099_v7 = vld [vmem:[%s8432_s3 + $0x30] sm:$0xff]  }
 0x7af   :  { %5431 = vmatpush3.bf16.msra.mxu0 %v6026_v13  ;;  %5459 = vmatpush3.bf16.msra.mxu1 %v6027_v62  ;;  %v6100_v13 = vld [vmem:[%s8432_s3 + $0x68] sm:$0xff]  }
 0x7b0   :  { %5034 = vmatprep.subr.msk.bf16.mxu1 %vm788_vm1, %v8569_v50  ;;  %5031 = vmatprep.subr.msk.bf16.mxu0 %vm788_vm1, %v8569_v50 }
 0x851   :  { %v2919_v58 = vpop.f32.mrf.mxu0  ;;  %v2972_v9 = vpop.f32.mrf.mxu1 }
 0x853   :  { %v2921_v60 = vpop.f32.mrf.mxu0  ;;  %v2974_v18 = vpop.f32.mrf.mxu1 }
 0x855   :  { %v2923_v32 = vpop.f32.mrf.mxu0  ;;  %v2976_v36 = vpop.f32.mrf.mxu1 }
 0x856   :  { %v7524_v0 = vpack.c.bf16 %v2923_v32, %v2919_v58  ;;  %v7526_v3 = vpack.c.bf16 %v2976_v36, %v2972_v9  ;;  %v6102_v58 = vld [vmem:[%s8432_s3 + $0x60] sm:$0xff]   ;;  %v6106_v32 = vld [vmem:[%s8432_s3 + $0x50] sm:$0xff]  }
 0x857   :  { %v2925_v57 = vpop.f32.mrf.mxu0  ;;  %v2978_v41 = vpop.f32.mrf.mxu1  ;;  %v6103_v9 = vld [vmem:[%s8432_s3 + $0x20] sm:$0xff]   ;;  %v6107_v36 = vld [vmem:[%s8432_s3 + $0x10] sm:$0xff]  }
 0x858   :  { %v7520_v45 = vpack.c.bf16 %v2925_v57, %v2921_v60  ;;  %v7522_v1 = vpack.c.bf16 %v2978_v41, %v2974_v18  ;;  %v6104_v60 = vld [vmem:[%s8432_s3 + $0x58] sm:$0xff]   ;;  %v6108_v57 = vld [vmem:[%s8432_s3 + $0x48] sm:$0xff]  }
 0x859   :  { %v2929_v51 = vpop.f32.mrf.mxu0  ;;  %v2982_v17 = vpop.f32.mrf.mxu1  ;;  %v6105_v18 = vld [vmem:[%s8432_s3 + $0x18] sm:$0xff]   ;;  %v6109_v41 = vld [vmem:[%s8432_s3 + $0x8] sm:$0xff]  }
 0x85a   :  { %3287 = vmatprep.mubr.bf16.mxu0 %v7520_v45  ;;  %3336 = vmatprep.mubr.bf16.mxu1 %v7522_v1 }
 0x85b   :  { %v2931_v27 = vpop.f32.mrf.mxu0  ;;  %v2984_v38 = vpop.f32.mrf.mxu1  ;;  %3288 = vmatmul.mubr.bf16.vlgmr.msra.gmra.mxu0 %v7524_v0  ;;  %3337 = vmatmul.mubr.bf16.vlgmr.msra.gmra.mxu1 %v7526_v3 }
 0x85c   :  { %3467 = vmatpush1.bf16.msra.mxu1 %v8570_v44  ;;  %3382 = vmatpush1.bf16.msra.mxu0 %v8570_v44 }
 0x85d   :  { %v2933_v40 = vpop.f32.mrf.mxu0  ;;  %v2986_v56 = vpop.f32.mrf.mxu1  ;;  %5037 = vmatprep.subr.msk.bf16.mxu1 %vm788_vm1, %v8569_v50  ;;  %5472 = vmatprep.subr.bf16.mxu0 %v6096_v33  ;;  %v6101_v50 = vld [vmem:[%s8432_s3 + $0x28] sm:$0xff]  }
 0x85e   :  { %v7541_v55 = vpack.c.bf16 %v2933_v40, %v2929_v51  ;;  %v7543_v22 = vpack.c.bf16 %v2986_v56, %v2982_v17  ;;  %v6110_v51 = vld [vmem:[%s8432_s3 + $0x40] sm:$0xff]  }
 0x85f   :  { %v2935_v8 = vpop.f32.mrf.mxu0  ;;  %v2988_v20 = vpop.f32.mrf.mxu1  ;;  %v6111_v17 = vld [vmem:[%s8432_s3] sm:$0xff]  }
 0x860   :  { %v2996_v12 = vpack.c.bf16 %v2935_v8, %v2931_v27  ;;  %v7539_v48 = vpack.c.bf16 %v2988_v20, %v2984_v38  ;;  %v6112_v8 = vld [vmem:[%s8433_s4 + $0x10] sm:$0xff] }
 0x862   :  { %3295 = vmatprep.mubr.bf16.mxu0 %v2996_v12  ;;  %3344 = vmatprep.mubr.bf16.mxu1 %v7539_v48 }
 0x863   :  { %3296 = vmatmul.mubr.bf16.gmra.mxu0 %v7541_v55  ;;  %3345 = vmatmul.mubr.bf16.gmra.mxu1 %v7543_v22 }
 0x864   :  { %3484 = vmatprep.mubr.bf16.mxu1 %v8568_v6  ;;  %3399 = vmatprep.mubr.bf16.mxu0 %v8568_v6 }
 0x91b   :  { %v5432_v59 = vpop.f32.mrf.mxu0  ;;  %v5460_v24 = vpop.f32.mrf.mxu1 }
 0x91d   :  { %v5433_v19 = vpop.f32.mrf.mxu0  ;;  %v5461_v30 = vpop.f32.mrf.mxu1 }
 0x91e   :  { %v5434_v61 = vadd.f32 %v5433_v19, %v5432_v59  ;;  %v5462_v25 = vadd.f32 %v5461_v30, %v5460_v24  ;;  %v6113_v59 = vld [vmem:[%s8433_s4] sm:$0xff] }
 0x91f   :  { %v5435_v42 = vpop.f32.mrf.mxu0  ;;  %v5463_v21 = vpop.f32.mrf.mxu1  ;;  %v6115_v30 = vld [vmem:[%s8433_s4 + $0x20] sm:$0xff] }
 0x920   :  { %v3339_v15 = vadd.f32 %v5462_v25, %v5434_v61  ;;  %v6116_v25 = vld [vmem:[%s8433_s4 + $0x8] sm:$0xff] }
 0x921   :  { %v5436_v39 = vpop.f32.mrf.mxu0  ;;  %v5464_v54 = vpop.f32.mrf.mxu1 }
 0x922   :  { %v5437_v31 = vadd.f32 %v5436_v39, %v5435_v42  ;;  %v5465_v34 = vadd.f32 %v5464_v54, %v5463_v21 }
 0x923   :  { %v5438_v4 = vpop.f32.mrf.mxu0  ;;  %v5466_v53 = vpop.f32.mrf.mxu1 }
 0x924   :  { %v3342_v29 = vadd.f32 %v5465_v34, %v5437_v31  ;;  %v6117_v31 = vld [vmem:[%s8433_s4 + $0x28] sm:$0xff] }
 0x925   :  { %v5439_v35 = vpop.f32.mrf.mxu0  ;;  %v5467_v2 = vpop.f32.mrf.mxu1 }
 0x926   :  { %v3353_v16 = vpack.c.bf16 %v3342_v29, %v3339_v15  ;;  %v5440_v63 = vadd.f32 %v5439_v35, %v5438_v4  ;;  %v5468_v43 = vadd.f32 %v5467_v2, %v5466_v53  ;;  %v6118_v29 = vld [vmem:[%s8433_s4 + $0x30] sm:$0xff] }
 0x927   :  { %v5441_v11 = vpop.f32.mrf.mxu0  ;;  %v5469_v28 = vpop.f32.mrf.mxu1 }
 0x928   :  { %3357 = vrot.lane.b32.xlu1 %v3353_v16, %s6241_s25  ;;  %5035 = vmatmul.mubr.msk.bf16.vlgmr.msra.gmra.mxu1 %vm781_vm2, %v3353_v16  ;;  %v3347_v23 = vadd.f32 %v5468_v43, %v5440_v63  ;;  %v6119_v63 = vld [vmem:[%s8433_s4 + $0x38] sm:$0xff] }
 0x929   :  { %3653 = vmatpush1.bf16.msra.mxu1 %v8570_v44  ;;  %v5442_v14 = vpop.f32.mrf.mxu0  ;;  %v5470_v10 = vpop.f32.mrf.mxu1  ;;  %3494 = vmatprep.mubr.bf16.mxu1 %v8568_v6 }
 0x92a   :  { %v5443_v37 = vadd.f32 %v5442_v14, %v5441_v11  ;;  %v5471_v26 = vadd.f32 %v5470_v10, %v5469_v28  ;;  %3715 = vmatprep.subr.bf16.mxu1 %v2996_v12 }
 0x92c   :  { %v3350_v47 = vadd.f32 %v5471_v26, %v5443_v37 }
 0x92e   :  { %v3354_v46 = vpack.c.bf16 %v3350_v47, %v3347_v23 }
 0x930   :  { %3359 = vrot.lane.b32.xlu1 %v3354_v46, %s6241_s25  ;;  %5036 = vmatmul.mubr.msk.bf16.gmra.mxu1 %vm781_vm2, %v3354_v46 }
 0x931   :  { %3670 = vmatprep.mubr.bf16.mxu1 %v8568_v6 }
 0x99a   :  { %v3358_v52 = vpop.permute.xlu1 %3357 }
 0x99b   :  { %5032 = vmatmul.mubr.msk.bf16.vlgmr.msra.gmra.mxu0 %vm781_vm2, %v3358_v52 }
 0x99c   :  { %5473 = vmatpush3.bf16.msra.mxu0 %v6097_v49  ;;  %3409 = vmatprep.mubr.bf16.mxu0 %v8568_v6 }
 0x99d   :  { %5474 = vmatprep.subr.bf16.mxu0 %v6098_v5 }
 0x9a0   :  { %5475 = vmatpush3.bf16.msra.mxu0 %v6099_v7 }
 0x9a1   :  { %5476 = vmatprep.subr.bf16.mxu0 %v6100_v13 }
 0x9a2   :  { %v3360_v62 = vpop.permute.xlu1 %3359 }
 0x9a3   :  { %5033 = vmatmul.mubr.msk.bf16.gmra.mxu0 %vm781_vm2, %v3360_v62 }
 0x9a4   :  { %5477 = vmatpush3.bf16.msra.mxu0 %v6101_v50 }
 0x9a5   :  { %5478 = vmatprep.subr.bf16.mxu0 %v6102_v58 }
 0x9a8   :  { %5479 = vmatpush3.bf16.msra.mxu0 %v6103_v9 }
 0x9a9   :  { %5480 = vmatprep.subr.bf16.mxu0 %v6104_v60 }
 0x9ac   :  { %5481 = vmatpush3.bf16.msra.mxu0 %v6105_v18 }
 0x9ad   :  { %5482 = vmatprep.subr.bf16.mxu0 %v6106_v32 }
 0x9b0   :  { %5483 = vmatpush3.bf16.msra.mxu0 %v6107_v36 }
 0x9b1   :  { %5484 = vmatprep.subr.bf16.mxu0 %v6108_v57 }
 0x9b4   :  { %5485 = vmatpush3.bf16.msra.mxu0 %v6109_v41 }
 0x9b5   :  { %5486 = vmatprep.subr.bf16.mxu0 %v6110_v51 }
 0x9b8   :  { %5487 = vmatpush3.bf16.msra.mxu0 %v6111_v17 }
 0x9b9   :  { %3908 = vmatprep.subr.bf16.mxu0 %v7539_v48  ;;  %v6114_v48 = vld [vmem:[%s8433_s4 + $0x18] sm:$0xff] }
 0x9e8   :  { %v3486_v44 = vpop.f32.mrf.mxu1 }
 0x9ea   :  { %v3488_v33 = vpop.f32.mrf.mxu1 }
 0x9ec   :  { %v3490_v61 = vpop.f32.mrf.mxu1 }
 0x9ee   :  { %v3492_v16 = vpop.f32.mrf.mxu1 }
 0x9f0   :  { %v3496_v37 = vpop.f32.mrf.mxu1 }
 0x9f2   :  { %v3498_v52 = vpop.f32.mrf.mxu1 }
 0x9f4   :  { %v3500_v62 = vpop.f32.mrf.mxu1 }
 0x9f6   :  { %v3502_v36 = vpop.f32.mrf.mxu1 }
 0xa5b   :  { %v3401_v27 = vpop.f32.mrf.mxu0 }
 0xa5c   :  { %v3420_v24 = vmul.f32 %v6113_v59, %v3401_v27 }
 0xa5d   :  { %v3403_v38 = vpop.f32.mrf.mxu0 }
 0xa5e   :  { %v3421_v39 = vmul.f32 %v6116_v25, %v3403_v38  ;;  %v6121_v25 = vld [vmem:[%s8434_s1 + $0x18] sm:$0xff] }
 0xa5f   :  { %v3405_v40 = vpop.f32.mrf.mxu0 }
 0xa60   :  { %v3422_v20 = vmul.f32 %v6112_v8, %v3405_v40 }
 0xa61   :  { %v3407_v56 = vpop.f32.mrf.mxu0 }
 0xa62   :  { %v3423_v19 = vmul.f32 %v6114_v48, %v3407_v56  ;;  %v3428_v54 = vadd.f32 %v3422_v20, %v3420_v24 }
 0xa63   :  { %v3411_v12 = vpop.f32.mrf.mxu0 }
 0xa64   :  { %v3424_v42 = vmul.f32 %v6115_v30, %v3411_v12  ;;  %v3437_v53 = vadd.f32 %v3423_v19, %v3421_v39 }
 0xa65   :  { %v3413_v21 = vpop.f32.mrf.mxu0 }
 0xa66   :  { %v3425_v34 = vmul.f32 %v6117_v31, %v3413_v21  ;;  %v3429_v15 = vadd.f32 %v3428_v54, %v3424_v42  ;;  %v6122_v54 = vld [vmem:[%s8434_s1] sm:$0xff] }
 0xa67   :  { %v3415_v4 = vpop.f32.mrf.mxu0 }
 0xa68   :  { %v3426_v35 = vmul.f32 %v6118_v29, %v3415_v4  ;;  %v3438_v11 = vadd.f32 %v3437_v53, %v3425_v34  ;;  %v6123_v34 = vld [vmem:[%s8434_s1 + $0x8] sm:$0xff] }
 0xa69   :  { %v3417_v2 = vpop.f32.mrf.mxu0  ;;  %v6124_v29 = vld [vmem:[%s8434_s1 + $0x28] sm:$0xff] }
 0xa6a   :  { %v3430_v28 = vadd.f32 %v3429_v15, %v3426_v35  ;;  %v3427_v43 = vmul.f32 %v6119_v63, %v3417_v2 }
 0xa6c   :  { %v3431_v14 = vrot.slane %v3430_v28, 4  ;;  %v3439_v10 = vadd.f32 %v3438_v11, %v3427_v43  ;;  %v6126_v43 = vld [vmem:[%s8434_s1 + $0x38] sm:$0xff] }
 0xa6e   :  { %v3432_v26 = vadd.f32 %v3431_v14, %v3430_v28  ;;  %v3440_v23 = vrot.slane %v3439_v10, 4 }
 0xa70   :  { %v3433_v47 = vrot.slane %v3432_v26, 2  ;;  %v3441_v46 = vadd.f32 %v3440_v23, %v3439_v10  ;;  %v6127_v10 = vld [vmem:[%s8434_s1 + $0x30] sm:$0xff] }
 0xa72   :  { %v3434_v49 = vadd.f32 %v3433_v47, %v3432_v26  ;;  %v3442_v5 = vrot.slane %v3441_v46, 2 }
 0xa74   :  { %v3435_v7 = vrot.slane %v3434_v49, 1  ;;  %v3443_v13 = vadd.f32 %v3442_v5, %v3441_v46 }
 0xa76   :  { %v3436_v50 = vadd.f32 %v3435_v7, %v3434_v49  ;;  %v3444_v58 = vrot.slane %v3443_v13, 1 }
 0xa78   :  { %v3445_v9 = vadd.f32 %v3444_v58, %v3443_v13  ;;  %v3491_v60 = vadd.f32 %v3490_v61, %v3436_v50  ;;  %v3487_v18 = vadd.f32 %v3486_v44, %v3436_v50  ;;  %v3497_v32 = vadd.f32 %v3496_v37, %v3436_v50 }
 0xa79   :  { %v3501_v40 = vadd.f32 %v3500_v62, %v3436_v50 }
 0xa7a   :  { %v3493_v57 = vadd.f32 %v3492_v16, %v3445_v9  ;;  %v3507_v41 = vmul.f32 0.2, %v3491_v60  ;;  %v3489_v51 = vadd.f32 %v3488_v33, %v3445_v9  ;;  %v3505_v17 = vmul.f32 0.2, %v3487_v18  ;;  %v6120_v33 = vld [vmem:[%s8434_s1 + $0x10] sm:$0xff]  ;;  %v6125_v16 = vld [vmem:[%s8434_s1 + $0x20] sm:$0xff] }
 0xa7b   :  { %v3499_v27 = vadd.f32 %v3498_v52, %v3445_v9  ;;  %v3509_v38 = vmul.f32 0.2, %v3497_v32  ;;  %v3503_v56 = vadd.f32 %v3502_v36, %v3445_v9  ;;  %v3511_v21 = vmul.f32 0.2, %v3501_v40 }
 0xa7c   :  { %v3508_v8 = vmul.f32 0.2, %v3493_v57  ;;  %v3515_v20 = vmax.f32 %v3491_v60, %v3507_v41  ;;  %v3506_v12 = vmul.f32 0.2, %v3489_v51  ;;  %v3513_v59 = vmax.f32 %v3487_v18, %v3505_v17 }
 0xa7d   :  { %v3510_v24 = vmul.f32 0.2, %v3499_v27  ;;  %v3512_v30 = vmul.f32 0.2, %v3503_v56  ;;  %v3517_v42 = vmax.f32 %v3497_v32, %v3509_v38  ;;  %v3519_v28 = vmax.f32 %v3501_v40, %v3511_v21  ;;  %v6133_v21 = vld [vmem:[%s8436_s7 + $0xe8] sm:$0xff]  }
 0xa7e   :  { %v3516_v48 = vmax.f32 %v3493_v57, %v3508_v8  ;;  %v3514_v19 = vmax.f32 %v3489_v51, %v3506_v12  ;;  %v3523_v61 = vadd.f32 %v6120_v33, %v3515_v20  ;;  %v3521_v31 = vadd.f32 %v6122_v54, %v3513_v59  ;;  %v7708_v33 = vld [vmem:[%s8435_s5 + $0x8] sm:$0xff]   ;;  %v6138_v54 = vld [vmem:[%s8436_s7 + $0xd8] sm:$0xff]  }
 0xa7f   :  { %v3518_v44 = vmax.f32 %v3499_v27, %v3510_v24  ;;  %v3520_v2 = vmax.f32 %v3503_v56, %v3512_v30  ;;  %v3525_v11 = vadd.f32 %v6125_v16, %v3517_v42  ;;  %v3527_v37 = vadd.f32 %v6127_v10, %v3519_v28  ;;  %v6128_v42 = vld [vmem:[%s8436_s7 + $0xf8] sm:$0xff]   ;;  %v6147_v16 = vld [vmem:[%s8436_s7 + $0x80] sm:$0xff]   ;;  %v7773_v28 = vld [vmem:[%s8435_s5 + $0x28] sm:$0xff]  }
 0xa80   :  { %v3524_v39 = vadd.f32 %v6121_v25, %v3516_v48  ;;  %v3522_v4 = vadd.f32 %v6123_v34, %v3514_v19  ;;  %v6136_v25 = vld [vmem:[%s8436_s7 + $0xe0] sm:$0xff]   ;;  %v6140_v34 = vld [vmem:[%s8436_s7 + $0x98] sm:$0xff]   ;;  %v7805_v10 = vld [vmem:[%s8435_s5 + $0x48] sm:$0xff]  }
 0xa81   :  { %v3526_v35 = vadd.f32 %v6124_v29, %v3518_v44  ;;  %v3528_v14 = vadd.f32 %v6126_v43, %v3520_v2  ;;  %v6132_v44 = vld [vmem:[%s8436_s7 + $0xb0] sm:$0xff]   ;;  %v7748_v29 = vld [vmem:[%s8435_s5 + $0x18] sm:$0xff]   ;;  %v6146_v2 = vld [vmem:[%s8436_s7 + $0xc0] sm:$0xff]  }
 0xa82   :  { %v3532_v53 = vmax.f32 %v3523_v61, %v3524_v39  ;;  %v3529_v15 = vmax.f32 %v3521_v31, %v3522_v4  ;;  %v7789_v43 = vld [vmem:[%s8435_s5 + $0x38] sm:$0xff]  }
 0xa83   :  { %v3535_v63 = vmax.f32 %v3525_v11, %v3526_v35  ;;  %v3538_v26 = vmax.f32 %v3527_v37, %v3528_v14 }
 0xa84   :  { %3533 = vmax.xlane.f32.xlu0 %v3532_v53  ;;  %3530 = vmax.xlane.f32.xlu1 %v3529_v15  ;;  %v6142_v53 = vld [vmem:[%s8436_s7 + $0x90] sm:$0xff]   ;;  %v6143_v15 = vld [vmem:[%s8436_s7 + $0xc8] sm:$0xff]  }
 0xa88   :  { %3536 = vmax.xlane.f32.xlu0 %v3535_v63  ;;  %v7781_v63 = vld [vmem:[%s8435_s5 + $0x30] sm:$0xff]  }
 0xa8c   :  { %3539 = vmax.xlane.f32.xlu0 %v3538_v26  ;;  %v7821_v26 = vld [vmem:[%s8435_s5 + $0x58] sm:$0xff]  }
 0xb0d   :  { %v3534_v23 = vpop.xlane.xlu0 %3533  ;;  %v3531_v47 = vpop.xlane.xlu1 %3530 }
 0xb0e   :  { %v3543_v46 = vsub.f32 %v3523_v61, %v3534_v23  ;;  %v3544_v52 = vsub.f32 %v3524_v39, %v3534_v23  ;;  %v3541_v49 = vsub.f32 %v3521_v31, %v3531_v47  ;;  %v3542_v5 = vsub.f32 %v3522_v4, %v3531_v47  ;;  %v6135_v61 = vld [vmem:[%s8436_s7 + $0xa8] sm:$0xff]   ;;  %v6137_v39 = vld [vmem:[%s8436_s7 + $0xa0] sm:$0xff]   ;;  %v7728_v31 = vld [vmem:[%s8435_s5 + $0x10] sm:$0xff]  }
 0xb0f   :  { %v6141_v4 = vld [vmem:[%s8436_s7 + $0xd0] sm:$0xff]   ;;  %v7829_v23 = vld [vmem:[%s8435_s5 + $0x60] sm:$0xff]   ;;  %v7837_v47 = vld [vmem:[%s8435_s5 + $0x68] sm:$0xff]  }
 0xb10   :  { %v3553_v7 = vmul.f32 1.442695, %v3543_v46  ;;  %v3555_v13 = vmul.f32 1.442695, %v3544_v52  ;;  %v3549_v62 = vmul.f32 1.442695, %v3541_v49 }
 0xb11   :  { %v3551_v50 = vmul.f32 1.442695, %v3542_v5  ;;  %v3537_v58 = vpop.xlane.xlu0 %3536  ;;  %v7845_v46 = vld [vmem:[%s8435_s5 + $0x70] sm:$0xff]   ;;  %v7853_v52 = vld [vmem:[%s8435_s5 + $0x78] sm:$0xff]  }
 0xb12   :  { %6056 = vpow2.f32 %v3553_v7  ;;  %v3546_v9 = vsub.f32 %v3526_v35, %v3537_v58  ;;  %v3545_v60 = vsub.f32 %v3525_v11, %v3537_v58  ;;  %v6145_v35 = vld [vmem:[%s8436_s7 + $0x88] sm:$0xff]   ;;  %v7765_v11 = vld [vmem:[%s8435_s5 + $0x20] sm:$0xff]  }
 0xb13   :  { %6058 = vpow2.f32 %v3555_v13 }
 0xb14   :  { %6060 = vpow2.f32 %v3549_v62  ;;  %v3559_v18 = vmul.f32 1.442695, %v3546_v9  ;;  %v3557_v41 = vmul.f32 1.442695, %v3545_v60 }
 0xb15   :  { %6062 = vpow2.f32 %v3551_v50  ;;  %v3540_v32 = vpop.xlane.xlu0 %3539 }
 0xb16   :  { %v3547_v36 = vsub.f32 %v3527_v37, %v3540_v32  ;;  %v3548_v57 = vsub.f32 %v3528_v14, %v3540_v32  ;;  %6064 = vpow2.f32 %v3559_v18  ;;  %v7797_v14 = vld [vmem:[%s8435_s5 + $0x40] sm:$0xff]   ;;  %v7813_v37 = vld [vmem:[%s8435_s5 + $0x50] sm:$0xff]  }
 0xb18   :  { %v3561_v51 = vmul.f32 1.442695, %v3547_v36  ;;  %v3563_v17 = vmul.f32 1.442695, %v3548_v57 }
 0xb1a   :  { %6066 = vpow2.f32 %v3561_v51 }
 0xb1b   :  { %6068 = vpow2.f32 %v3563_v17 }
 0xb1c   :  { %6070 = vpow2.f32 %v3557_v41 }
 0xb1f   :  { %v7654_v27 = vpop.eup %6056 }
 0xb20   :  { %v7656_v38 = vpop.eup %6058 }
 0xb21   :  { %v7658_v40 = vpop.eup %6060 }
 0xb22   :  { %v7660_v56 = vpop.eup %6062  ;;  %v3565_v8 = vpack.c.bf16 %v7654_v27, %v7658_v40 }
 0xb23   :  { %v3566_v20 = vpack.c.bf16 %v7656_v38, %v7660_v56  ;;  %v7666_v12 = vpop.eup %6064 }
 0xb24   :  { %8571 = vst [vmem:[#allocation31_spill] sm:$0xff] %v7666_v12 }
 0xb25   :  { %3601 = vmatprep.mubr.bf16.mxu0 %v3566_v20 }
 0xb26   :  { %3602 = vmatmul.mubr.bf16.vlgmr.msra.gmra.mxu0 %v3565_v8 }
 0xb27   :  { %v7668_v59 = vpop.eup %6066  ;;  %3909 = vmatpush1.bf16.msra.mxu0 %v7543_v22  ;;  %v6131_v22 = vld [vmem:[%s8436_s7 + $0xf0] sm:$0xff]  }
 0xb28   :  { %v7671_v24 = vpop.eup %6068  ;;  %3910 = vmatprep.subr.bf16.mxu0 %v7522_v1  ;;  %v7688_v1 = vld [vmem:[%s8435_s5] sm:$0xff]  }
 0xb29   :  { %8572 = vst [vmem:[#allocation25_spill] sm:$0xff] %v7671_v24  ;;  %v7674_v48 = vpop.eup %6070  ;;  %v3568_v19 = vpack.c.bf16 %v7671_v24, %v7666_v12 }
 0xb2a   :  { %v3567_v30 = vpack.c.bf16 %v7668_v59, %v7674_v48 }
 0xb2b   :  { %3911 = vmatpush1.bf16.msra.mxu0 %v7526_v3  ;;  %3609 = vmatprep.mubr.bf16.mxu0 %v3568_v19  ;;  %v6130_v3 = vld [vmem:[%s8436_s7 + $0xb8] sm:$0xff]  }
 0xb2c   :  { %5612 = vmatprep.subr.bf16.mxu0 %v6128_v42 }
 0xb2e   :  { %3610 = vmatmul.mubr.bf16.gmra.mxu0 %v3567_v30 }
 0xb2f   :  { %3928 = vmatprep.mubr.bf16.mxu0 %v8568_v6 }
 0xb36   :  { %5056 = vmatmul.mubr.msk.bf16.vlgmr.msra.gmra.mxu0 %vm1307_vm3, %v7688_v1 }
 0xb37   :  { %3938 = vmatprep.mubr.bf16.mxu0 %v8568_v6  ;;  %5613 = vmatpush3.bf16.msra.mxu0 %v6130_v3 }
 0xb38   :  { %5614 = vmatprep.subr.bf16.mxu0 %v6131_v22 }
 0xb3b   :  { %5615 = vmatpush3.bf16.msra.mxu0 %v6132_v44 }
 0xb3c   :  { %5616 = vmatprep.subr.bf16.mxu0 %v6133_v21 }
 0xb3e   :  { %5057 = vmatmul.mubr.msk.bf16.gmra.mxu0 %vm1307_vm3, %v7708_v33 }
 0xb3f   :  { %3948 = vmatprep.mubr.bf16.mxu0 %v8568_v6  ;;  %5617 = vmatpush3.bf16.msra.mxu0 %v6135_v61 }
 0xb40   :  { %5618 = vmatprep.subr.bf16.mxu0 %v6136_v25  ;;  %v6160_v25 = vld [vmem:[%s8436_s7 + $0x78] sm:$0xff]  }
 0xb43   :  { %5619 = vmatpush3.bf16.msra.mxu0 %v6137_v39  ;;  %v6165_v39 = vld [vmem:[%s8436_s7 + $0x28] sm:$0xff]  }
 0xb44   :  { %5620 = vmatprep.subr.bf16.mxu0 %v6138_v54  ;;  %v6166_v54 = vld [vmem:[%s8436_s7 + $0x60] sm:$0xff]  }
 0xb46   :  { %5058 = vmatmul.mubr.msk.bf16.gmra.mxu0 %vm1307_vm3, %v7728_v31 }
 0xb47   :  { %3958 = vmatprep.mubr.bf16.mxu0 %v8568_v6  ;;  %5621 = vmatpush3.bf16.msra.mxu0 %v6140_v34  ;;  %v6167_v34 = vld [vmem:[%s8436_s7 + $0x20] sm:$0xff]  }
 0xb48   :  { %5622 = vmatprep.subr.bf16.mxu0 %v6141_v4  ;;  %v6169_v4 = vld [vmem:[%s8436_s7 + $0x18] sm:$0xff]  }
 0xb4b   :  { %5623 = vmatpush3.bf16.msra.mxu0 %v6142_v53  ;;  %v6170_v53 = vld [vmem:[%s8436_s7 + $0x50] sm:$0xff]  }
 0xb4c   :  { %5624 = vmatprep.subr.bf16.mxu0 %v6143_v15  ;;  %v6171_v15 = vld [vmem:[%s8436_s7 + $0x10] sm:$0xff]  }
 0xb4e   :  { %5059 = vmatmul.mubr.msk.bf16.gmra.mxu0 %vm1307_vm3, %v7748_v29 }
 0xb4f   :  { %3968 = vmatprep.mubr.bf16.mxu0 %v8568_v6  ;;  %5625 = vmatpush3.bf16.msra.mxu0 %v6145_v35  ;;  %v6173_v35 = vld [vmem:[%s8436_s7 + $0x8] sm:$0xff]  }
 0xb50   :  { %5626 = vmatprep.subr.bf16.mxu0 %v6146_v2  ;;  %v6174_v2 = vld [vmem:[%s8436_s7 + $0x40] sm:$0xff]  }
 0xb53   :  { %5627 = vmatpush3.bf16.msra.mxu0 %v6147_v16  ;;  %v6175_v16 = vld [vmem:[%s8436_s7] sm:$0xff]  }
 0xb56   :  { %5060 = vmatmul.mubr.msk.bf16.gmra.mxu0 %vm1307_vm3, %v7765_v11 }
 0xb57   :  { %3978 = vmatprep.mubr.bf16.mxu0 %v8568_v6 }
 0xb5e   :  { %5061 = vmatmul.mubr.msk.bf16.gmra.mxu0 %vm1307_vm3, %v7773_v28 }
 0xb5f   :  { %3988 = vmatprep.mubr.bf16.mxu0 %v8568_v6 }
 0xb66   :  { %5062 = vmatmul.mubr.msk.bf16.gmra.mxu0 %vm1307_vm3, %v7781_v63 }
 0xb67   :  { %3998 = vmatprep.mubr.bf16.mxu0 %v8568_v6 }
 0xb6e   :  { %5063 = vmatmul.mubr.msk.bf16.gmra.mxu0 %vm1307_vm3, %v7789_v43 }
 0xb6f   :  { %4008 = vmatprep.mubr.bf16.mxu0 %v8568_v6 }
 0xb76   :  { %5064 = vmatmul.mubr.msk.bf16.gmra.mxu0 %vm1307_vm3, %v7797_v14 }
 0xb77   :  { %4018 = vmatprep.mubr.bf16.mxu0 %v8568_v6 }
 0xb7e   :  { %5065 = vmatmul.mubr.msk.bf16.gmra.mxu0 %vm1307_vm3, %v7805_v10 }
 0xb7f   :  { %4028 = vmatprep.mubr.bf16.mxu0 %v8568_v6 }
 0xb86   :  { %5066 = vmatmul.mubr.msk.bf16.gmra.mxu0 %vm1307_vm3, %v7813_v37 }
 0xb87   :  { %4038 = vmatprep.mubr.bf16.mxu0 %v8568_v6 }
 0xb8e   :  { %5067 = vmatmul.mubr.msk.bf16.gmra.mxu0 %vm1307_vm3, %v7821_v26 }
 0xb8f   :  { %4048 = vmatprep.mubr.bf16.mxu0 %v8568_v6 }
 0xb96   :  { %5068 = vmatmul.mubr.msk.bf16.gmra.mxu0 %vm1307_vm3, %v7829_v23 }
 0xb97   :  { %4058 = vmatprep.mubr.bf16.mxu0 %v8568_v6 }
 0xb9e   :  { %5069 = vmatmul.mubr.msk.bf16.gmra.mxu0 %vm1307_vm3, %v7837_v47 }
 0xb9f   :  { %4068 = vmatprep.mubr.bf16.mxu0 %v8568_v6 }
 0xba6   :  { %5070 = vmatmul.mubr.msk.bf16.gmra.mxu0 %vm1307_vm3, %v7845_v46 }
 0xba7   :  { %4078 = vmatprep.mubr.bf16.mxu0 %v8568_v6 }
 0xbae   :  { %5071 = vmatmul.mubr.msk.bf16.gmra.mxu0 %vm1307_vm3, %v7853_v52 }
 0xbe6   :  { %v5488_v49 = vpop.f32.mrf.mxu0 }
 0xbe8   :  { %v5489_v5 = vpop.f32.mrf.mxu0 }
 0xbe9   :  { %v5490_v7 = vadd.f32 %v5489_v5, %v5488_v49 }
 0xbea   :  { %v5491_v13 = vpop.f32.mrf.mxu0 }
 0xbeb   :  { %v3618_v62 = vmax.f32 %v5490_v7, 1e-30 }
 0xbec   :  { %v5492_v50 = vpop.f32.mrf.mxu0 }
 0xbed   :  { %v5493_v58 = vadd.f32 %v5492_v50, %v5491_v13  ;;  %6072 = vrcp.f32 %v3618_v62 }
 0xbee   :  { %v5494_v9 = vpop.f32.mrf.mxu0 }
 0xbef   :  { %v3619_v60 = vmax.f32 %v5493_v58, 1e-30 }
 0xbf0   :  { %v5495_v18 = vpop.f32.mrf.mxu0 }
 0xbf1   :  { %6074 = vrcp.f32 %v3619_v60  ;;  %v5496_v32 = vadd.f32 %v5495_v18, %v5494_v9 }
 0xbf2   :  { %v5497_v36 = vpop.f32.mrf.mxu0 }
 0xbf3   :  { %v3620_v57 = vmax.f32 %v5496_v32, 1e-30 }
 0xbf4   :  { %v5498_v41 = vpop.f32.mrf.mxu0 }
 0xbf5   :  { %v5499_v51 = vadd.f32 %v5498_v41, %v5497_v36  ;;  %6076 = vrcp.f32 %v3620_v57  ;;  %v6178_v36 = vld [vmem:[%s8437_s6 + $0x28] ss:$16 sps:$4 sm:$0xff]  }
 0xbf7   :  { %v3621_v17 = vmax.f32 %v5499_v51, 1e-30  ;;  %v6179_v51 = vld [vmem:[%s8437_s6 + $0x2c] ss:$16 sps:$4 sm:$0xff]  }
 0xbf9   :  { %6078 = vrcp.f32 %v3621_v17 }
 0xbfa   :  { %v6073_v8 = vpop.eup %6072 }
 0xbfb   :  { %v3626_v19 = vmul.f32 0.125, %v6073_v8 }
 0xbfe   :  { %v6075_v20 = vpop.eup %6074 }
 0xbff   :  { %v3627_v30 = vmul.f32 0.125, %v6075_v20 }
 0xc01   :  { %v3630_v42 = vpack.c.bf16 %v3627_v30, %v3626_v19 }
 0xc02   :  { %v6077_v3 = vpop.eup %6076 }
 0xc03   :  { %5038 = vmatmul.mubr.msk.bf16.vlgmr.msra.gmra.mxu1 %vm781_vm2, %v3630_v42  ;;  %v3628_v44 = vmul.f32 0.125, %v6077_v3  ;;  %v6180_v42 = vld [vmem:[%s8437_s6 + $0x48] ss:$16 sps:$4 sm:$0xff]  }
 0xc04   :  { %3716 = vmatpush1.bf16.msra.mxu1 %v7541_v55  ;;  %3680 = vmatprep.mubr.bf16.mxu1 %v8568_v6  ;;  %v6163_v55 = vld [vmem:[%s8436_s7 + $0x30] sm:$0xff]  }
 0xc05   :  { %3717 = vmatprep.subr.bf16.mxu1 %v7520_v45  ;;  %v6161_v45 = vld [vmem:[%s8436_s7 + $0x38] sm:$0xff]  }
 0xc06   :  { %v6079_v22 = vpop.eup %6078 }
 0xc07   :  { %v3629_v21 = vmul.f32 0.125, %v6079_v22 }
 0xc08   :  { %3718 = vmatpush1.bf16.msra.mxu1 %v7524_v0  ;;  %v6162_v0 = vld [vmem:[%s8436_s7 + $0x70] sm:$0xff]  }
 0xc09   :  { %v3631_v61 = vpack.c.bf16 %v3629_v21, %v3628_v44  ;;  %5500 = vmatprep.subr.bf16.mxu1 %v6160_v25  ;;  %v6181_v44 = vld [vmem:[%s8437_s6 + $0x4c] ss:$16 sps:$4 sm:$0xff]  }
 0xc0b   :  { %5039 = vmatmul.mubr.msk.bf16.gmra.mxu1 %vm781_vm2, %v3631_v61 }
 0xc0c   :  { %3735 = vmatprep.mubr.bf16.mxu1 %v8568_v6 }
 0xc13   :  { %5040 = vmatmul.mubr.msk.bf16.vlgmr.msra.gmra.mxu1 %vm1307_vm3, %v7688_v1  ;;  %v6164_v1 = vld [vmem:[%s8436_s7 + $0x68] sm:$0xff]  }
 0xc14   :  { %3745 = vmatprep.mubr.bf16.mxu1 %v8568_v6  ;;  %5501 = vmatpush3.bf16.msra.mxu1 %v6161_v45 }
 0xc15   :  { %5502 = vmatprep.subr.bf16.mxu1 %v6162_v0 }
 0xc18   :  { %5503 = vmatpush3.bf16.msra.mxu1 %v6163_v55  ;;  %v6182_v55 = vld [vmem:[%s8437_s6 + $0x68] ss:$16 sps:$4 sm:$0xff]  }
 0xc19   :  { %5504 = vmatprep.subr.bf16.mxu1 %v6164_v1 }
 0xc1b   :  { %5041 = vmatmul.mubr.msk.bf16.gmra.mxu1 %vm1307_vm3, %v7708_v33  ;;  %v6168_v33 = vld [vmem:[%s8436_s7 + $0x58] sm:$0xff]  }
 0xc1c   :  { %3755 = vmatprep.mubr.bf16.mxu1 %v8568_v6  ;;  %5505 = vmatpush3.bf16.msra.mxu1 %v6165_v39 }
 0xc1d   :  { %5506 = vmatprep.subr.bf16.mxu1 %v6166_v54  ;;  %v6183_v54 = vld [vmem:[%s8437_s6 + $0x6c] ss:$16 sps:$4 sm:$0xff]  }
 0xc20   :  { %5507 = vmatpush3.bf16.msra.mxu1 %v6167_v34 }
 0xc21   :  { %5508 = vmatprep.subr.bf16.mxu1 %v6168_v33 }
 0xc23   :  { %5042 = vmatmul.mubr.msk.bf16.gmra.mxu1 %vm1307_vm3, %v7728_v31  ;;  %v6172_v31 = vld [vmem:[%s8436_s7 + $0x48] sm:$0xff]  }
 0xc24   :  { %3765 = vmatprep.mubr.bf16.mxu1 %v8568_v6  ;;  %5509 = vmatpush3.bf16.msra.mxu1 %v6169_v4 }
 0xc25   :  { %5510 = vmatprep.subr.bf16.mxu1 %v6170_v53 }
 0xc28   :  { %5511 = vmatpush3.bf16.msra.mxu1 %v6171_v15 }
 0xc29   :  { %5512 = vmatprep.subr.bf16.mxu1 %v6172_v31  ;;  %v6184_v31 = vld [vmem:[%s8437_s6 + $0x88] ss:$16 sps:$4 sm:$0xff]  }
 0xc2b   :  { %5043 = vmatmul.mubr.msk.bf16.gmra.mxu1 %vm1307_vm3, %v7748_v29  ;;  %v3930_v29 = vpop.f32.mrf.mxu0 }
 0xc2c   :  { %3775 = vmatprep.mubr.bf16.mxu1 %v8568_v6  ;;  %5513 = vmatpush3.bf16.msra.mxu1 %v6173_v35 }
 0xc2d   :  { %5514 = vmatprep.subr.bf16.mxu1 %v6174_v2  ;;  %v3932_v49 = vpop.f32.mrf.mxu0 }
 0xc2f   :  { %v3934_v5 = vpop.f32.mrf.mxu0 }
 0xc30   :  { %5515 = vmatpush3.bf16.msra.mxu1 %v6175_v16  ;;  %v6185_v16 = vld [vmem:[%s8437_s6 + $0x8c] ss:$16 sps:$4 sm:$0xff]  }
 0xc31   :  { %v3936_v7 = vpop.f32.mrf.mxu0 }
 0xc32   :  { %v4092_v13 = vpack.c.bf16 %v3936_v7, %v3932_v49 }
 0xc33   :  { %5044 = vmatmul.mubr.msk.bf16.gmra.mxu1 %vm1307_vm3, %v7765_v11  ;;  %v4091_v11 = vpack.c.bf16 %v3934_v5, %v3930_v29  ;;  %v3940_v50 = vpop.f32.mrf.mxu0 }
 0xc34   :  { %3785 = vmatprep.mubr.bf16.mxu1 %v8568_v6 }
 0xc35   :  { %v3942_v9 = vpop.f32.mrf.mxu0 }
 0xc3b   :  { %5045 = vmatmul.mubr.msk.bf16.gmra.mxu1 %vm1307_vm3, %v7773_v28  ;;  %v6176_v28 = vld [vmem:[%s8437_s6 + $0x8] ss:$16 sps:$4 sm:$0xff]  }
 0xc3c   :  { %3795 = vmatprep.mubr.bf16.mxu1 %v8568_v6  ;;  %v4155_v62 = vmul.bf16 %v6176_v28, %v4091_v11 }
 0xc43   :  { %5046 = vmatmul.mubr.msk.bf16.gmra.mxu1 %vm1307_vm3, %v7781_v63  ;;  %v6177_v63 = vld [vmem:[%s8437_s6 + $0xc] ss:$16 sps:$4 sm:$0xff]  }
 0xc44   :  { %3805 = vmatprep.mubr.bf16.mxu1 %v8568_v6  ;;  %v4156_v58 = vmul.bf16 %v6177_v63, %v4092_v13  ;;  %v6186_v13 = vld [vmem:[%s8437_s6 + $0xa8] ss:$16 sps:$4 sm:$0xff]  }
 0xc46   :  { %4410 = vmatprep.mubr.bf16.mxu0 %v4156_v58 }
 0xc47   :  { %4411 = vmatmul.mubr.bf16.vlgmr.msra.gmra.mxu0 %v4155_v62 }
 0xc4b   :  { %5047 = vmatmul.mubr.msk.bf16.gmra.mxu1 %vm1307_vm3, %v7789_v43  ;;  %v3944_v43 = vpop.f32.mrf.mxu0 }
 0xc4c   :  { %3815 = vmatprep.mubr.bf16.mxu1 %v8568_v6  ;;  %v4095_v60 = vpack.c.bf16 %v3944_v43, %v3940_v50  ;;  %v6187_v50 = vld [vmem:[%s8437_s6 + $0xac] ss:$16 sps:$4 sm:$0xff]  }
 0xc4d   :  { %v3946_v18 = vpop.f32.mrf.mxu0 }
 0xc4e   :  { %v4096_v32 = vpack.c.bf16 %v3946_v18, %v3942_v9  ;;  %v4159_v57 = vmul.bf16 %v6178_v36, %v4095_v60  ;;  %v6188_v18 = vld [vmem:[%s8437_s6 + $0xc8] ss:$16 sps:$4 sm:$0xff]  }
 0xc4f   :  { %v3950_v41 = vpop.f32.mrf.mxu0 }
 0xc50   :  { %v4160_v17 = vmul.bf16 %v6179_v51, %v4096_v32 }
 0xc51   :  { %v3952_v8 = vpop.f32.mrf.mxu0 }
 0xc52   :  { %4418 = vmatprep.mubr.bf16.mxu0 %v4160_v17 }
 0xc53   :  { %5048 = vmatmul.mubr.msk.bf16.gmra.mxu1 %vm1307_vm3, %v7797_v14  ;;  %v3954_v14 = vpop.f32.mrf.mxu0  ;;  %4419 = vmatmul.mubr.bf16.gmra.mxu0 %v4159_v57  ;;  %v6189_v57 = vld [vmem:[%s8437_s6 + $0xcc] ss:$16 sps:$4 sm:$0xff]  }
 0xc54   :  { %3825 = vmatprep.mubr.bf16.mxu1 %v8568_v6  ;;  %v4099_v20 = vpack.c.bf16 %v3954_v14, %v3950_v41 }
 0xc55   :  { %v3956_v19 = vpop.f32.mrf.mxu0 }
 0xc56   :  { %v4100_v30 = vpack.c.bf16 %v3956_v19, %v3952_v8  ;;  %v4163_v3 = vmul.bf16 %v6180_v42, %v4099_v20  ;;  %v6190_v20 = vld [vmem:[%s8437_s6 + $0xe8] ss:$16 sps:$4 sm:$0xff]   ;;  %v6191_v42 = vld [vmem:[%s8437_s6 + $0xec] ss:$16 sps:$4 sm:$0xff]  }
 0xc57   :  { %v3960_v22 = vpop.f32.mrf.mxu0 }
 0xc58   :  { %v4164_v21 = vmul.bf16 %v6181_v44, %v4100_v30 }
 0xc59   :  { %v3962_v61 = vpop.f32.mrf.mxu0 }
 0xc5a   :  { %4426 = vmatprep.mubr.bf16.mxu0 %v4164_v21 }
 0xc5b   :  { %5049 = vmatmul.mubr.msk.bf16.gmra.mxu1 %vm1307_vm3, %v7805_v10  ;;  %v3964_v10 = vpop.f32.mrf.mxu0  ;;  %4427 = vmatmul.mubr.bf16.gmra.mxu0 %v4163_v3 }
 0xc5c   :  { %3835 = vmatprep.mubr.bf16.mxu1 %v8568_v6  ;;  %v4103_v25 = vpack.c.bf16 %v3964_v10, %v3960_v22 }
 0xc5d   :  { %v3966_v45 = vpop.f32.mrf.mxu0 }
 0xc5e   :  { %v4104_v0 = vpack.c.bf16 %v3966_v45, %v3962_v61  ;;  %v4167_v1 = vmul.bf16 %v6182_v55, %v4103_v25  ;;  %v6192_v61 = vld [vmem:[%s8437_s6 + $0x108] ss:$16 sps:$4 sm:$0xff]   ;;  %v6193_v45 = vld [vmem:[%s8437_s6 + $0x10c] ss:$16 sps:$4 sm:$0xff]  }
 0xc5f   :  { %v3970_v39 = vpop.f32.mrf.mxu0 }
 0xc60   :  { %v4168_v34 = vmul.bf16 %v6183_v54, %v4104_v0 }
 0xc61   :  { %v3972_v33 = vpop.f32.mrf.mxu0 }
 0xc62   :  { %4434 = vmatprep.mubr.bf16.mxu0 %v4168_v34  ;;  %v6194_v34 = vld [vmem:[%s8437_s6 + $0x128] ss:$16 sps:$4 sm:$0xff]  }
 0xc63   :  { %5050 = vmatmul.mubr.msk.bf16.gmra.mxu1 %vm1307_vm3, %v7813_v37  ;;  %v3974_v37 = vpop.f32.mrf.mxu0  ;;  %4435 = vmatmul.mubr.bf16.gmra.mxu0 %v4167_v1 }
 0xc64   :  { %3845 = vmatprep.mubr.bf16.mxu1 %v8568_v6  ;;  %v4107_v4 = vpack.c.bf16 %v3974_v37, %v3970_v39 }
 0xc65   :  { %v3976_v53 = vpop.f32.mrf.mxu0 }
 0xc66   :  { %v4108_v15 = vpack.c.bf16 %v3976_v53, %v3972_v33  ;;  %v4171_v35 = vmul.bf16 %v6184_v31, %v4107_v4  ;;  %v6195_v4 = vld [vmem:[%s8437_s6 + $0x12c] ss:$16 sps:$4 sm:$0xff]  }
 0xc67   :  { %v3980_v2 = vpop.f32.mrf.mxu0 }
 0xc68   :  { %v4172_v29 = vmul.bf16 %v6185_v16, %v4108_v15 }
 0xc69   :  { %v3982_v49 = vpop.f32.mrf.mxu0 }
 0xc6a   :  { %4442 = vmatprep.mubr.bf16.mxu0 %v4172_v29  ;;  %v6196_v29 = vld [vmem:[%s8437_s6 + $0x148] ss:$16 sps:$4 sm:$0xff]  }
 0xc6b   :  { %5051 = vmatmul.mubr.msk.bf16.gmra.mxu1 %vm1307_vm3, %v7821_v26  ;;  %v3984_v26 = vpop.f32.mrf.mxu0  ;;  %4443 = vmatmul.mubr.bf16.gmra.mxu0 %v4171_v35 }
 0xc6c   :  { %3855 = vmatprep.mubr.bf16.mxu1 %v8568_v6  ;;  %v4111_v5 = vpack.c.bf16 %v3984_v26, %v3980_v2 }
 0xc6d   :  { %v3986_v11 = vpop.f32.mrf.mxu0 }
 0xc6e   :  { %v4112_v7 = vpack.c.bf16 %v3986_v11, %v3982_v49  ;;  %v4175_v28 = vmul.bf16 %v6186_v13, %v4111_v5  ;;  %v6197_v5 = vld [vmem:[%s8437_s6 + $0x14c] ss:$16 sps:$4 sm:$0xff]  }
 0xc6f   :  { %v3990_v62 = vpop.f32.mrf.mxu0 }
 0xc70   :  { %v4176_v63 = vmul.bf16 %v6187_v50, %v4112_v7 }
 0xc71   :  { %v3992_v58 = vpop.f32.mrf.mxu0 }
 0xc72   :  { %4450 = vmatprep.mubr.bf16.mxu0 %v4176_v63  ;;  %v6198_v63 = vld [vmem:[%s8437_s6 + $0x168] ss:$16 sps:$4 sm:$0xff]  }
 0xc73   :  { %5052 = vmatmul.mubr.msk.bf16.gmra.mxu1 %vm1307_vm3, %v7829_v23  ;;  %v3994_v23 = vpop.f32.mrf.mxu0  ;;  %4451 = vmatmul.mubr.bf16.gmra.mxu0 %v4175_v28 }
 0xc74   :  { %3865 = vmatprep.mubr.bf16.mxu1 %v8568_v6  ;;  %v4115_v9 = vpack.c.bf16 %v3994_v23, %v3990_v62 }
 0xc75   :  { %v3996_v43 = vpop.f32.mrf.mxu0 }
 0xc76   :  { %v4116_v60 = vpack.c.bf16 %v3996_v43, %v3992_v58  ;;  %v4179_v32 = vmul.bf16 %v6188_v18, %v4115_v9  ;;  %v6199_v9 = vld [vmem:[%s8437_s6 + $0x16c] ss:$16 sps:$4 sm:$0xff]  }
 0xc77   :  { %v4000_v36 = vpop.f32.mrf.mxu0 }
 0xc78   :  { %v4180_v41 = vmul.bf16 %v6189_v57, %v4116_v60 }
 0xc79   :  { %v4002_v51 = vpop.f32.mrf.mxu0 }
 0xc7a   :  { %4458 = vmatprep.mubr.bf16.mxu0 %v4180_v41  ;;  %v6200_v41 = vld [vmem:[%s8437_s6 + $0x188] ss:$16 sps:$4 sm:$0xff]  }
 0xc7b   :  { %5053 = vmatmul.mubr.msk.bf16.gmra.mxu1 %vm1307_vm3, %v7837_v47  ;;  %v4004_v47 = vpop.f32.mrf.mxu0  ;;  %4459 = vmatmul.mubr.bf16.gmra.mxu0 %v4179_v32 }
 0xc7c   :  { %3875 = vmatprep.mubr.bf16.mxu1 %v8568_v6  ;;  %v4119_v17 = vpack.c.bf16 %v4004_v47, %v4000_v36 }
 0xc7d   :  { %v4006_v8 = vpop.f32.mrf.mxu0 }
 0xc7e   :  { %v4120_v14 = vpack.c.bf16 %v4006_v8, %v4002_v51  ;;  %v4183_v19 = vmul.bf16 %v6190_v20, %v4119_v17  ;;  %v6201_v17 = vld [vmem:[%s8437_s6 + $0x18c] ss:$16 sps:$4 sm:$0xff]  }
 0xc7f   :  { %v4010_v30 = vpop.f32.mrf.mxu0 }
 0xc80   :  { %v4184_v3 = vmul.bf16 %v6191_v42, %v4120_v14 }
 0xc81   :  { %v4012_v22 = vpop.f32.mrf.mxu0 }
 0xc82   :  { %4466 = vmatprep.mubr.bf16.mxu0 %v4184_v3  ;;  %v6202_v3 = vld [vmem:[%s8437_s6 + $0x1a8] ss:$16 sps:$4 sm:$0xff]  }
 0xc83   :  { %5054 = vmatmul.mubr.msk.bf16.gmra.mxu1 %vm1307_vm3, %v7845_v46  ;;  %4467 = vmatmul.mubr.bf16.gmra.mxu0 %v4183_v19 }
 0xc84   :  { %3885 = vmatprep.mubr.bf16.mxu1 %v8568_v6  ;;  %v4014_v6 = vpop.f32.mrf.mxu0 }
 0xc85   :  { %v4123_v46 = vpack.c.bf16 %v4014_v6, %v4010_v30 }
 0xc86   :  { %v4016_v44 = vpop.f32.mrf.mxu0 }
 0xc87   :  { %v4124_v21 = vpack.c.bf16 %v4016_v44, %v4012_v22  ;;  %v4187_v10 = vmul.bf16 %v6192_v61, %v4123_v46  ;;  %v6203_v46 = vld [vmem:[%s8437_s6 + $0x1ac] ss:$16 sps:$4 sm:$0xff]  }
 0xc88   :  { %v4020_v25 = vpop.f32.mrf.mxu0 }
 0xc89   :  { %v4188_v0 = vmul.bf16 %v6193_v45, %v4124_v21 }
 0xc8a   :  { %v4022_v55 = vpop.f32.mrf.mxu0 }
 0xc8b   :  { %5055 = vmatmul.mubr.msk.bf16.gmra.mxu1 %vm1307_vm3, %v7853_v52  ;;  %4474 = vmatprep.mubr.bf16.mxu0 %v4188_v0  ;;  %v6204_v0 = vld [vmem:[%s8437_s6 + $0x1c8] ss:$16 sps:$4 sm:$0xff]  }
 0xc8c   :  { %v4024_v1 = vpop.f32.mrf.mxu0  ;;  %4475 = vmatmul.mubr.bf16.gmra.mxu0 %v4187_v10 }
 0xc8d   :  { %v4127_v52 = vpack.c.bf16 %v4024_v1, %v4020_v25 }
 0xc8e   :  { %v4026_v39 = vpop.f32.mrf.mxu0 }
 0xc8f   :  { %v4128_v54 = vpack.c.bf16 %v4026_v39, %v4022_v55  ;;  %v4191_v33 = vmul.bf16 %v6194_v34, %v4127_v52  ;;  %v6205_v52 = vld [vmem:[%s8437_s6 + $0x1cc] ss:$16 sps:$4 sm:$0xff]  }
 0xc90   :  { %v4030_v37 = vpop.f32.mrf.mxu0 }
 0xc91   :  { %v4192_v53 = vmul.bf16 %v6195_v4, %v4128_v54 }
 0xc92   :  { %v4032_v15 = vpop.f32.mrf.mxu0 }
 0xc93   :  { %4482 = vmatprep.mubr.bf16.mxu0 %v4192_v53 }
 0xc94   :  { %v4034_v31 = vpop.f32.mrf.mxu0  ;;  %4483 = vmatmul.mubr.bf16.gmra.mxu0 %v4191_v33 }
 0xc95   :  { %v4131_v35 = vpack.c.bf16 %v4034_v31, %v4030_v37 }
 0xc96   :  { %v4036_v2 = vpop.f32.mrf.mxu0 }
 0xc97   :  { %v4132_v16 = vpack.c.bf16 %v4036_v2, %v4032_v15  ;;  %v4195_v49 = vmul.bf16 %v6196_v29, %v4131_v35  ;;  %v6206_v35 = vld [vmem:[%s8437_s6 + $0x1e8] ss:$16 sps:$4 sm:$0xff]  }
 0xc98   :  { %v4040_v26 = vpop.f32.mrf.mxu0 }
 0xc99   :  { %v4196_v11 = vmul.bf16 %v6197_v5, %v4132_v16 }
 0xc9a   :  { %v4042_v7 = vpop.f32.mrf.mxu0 }
 0xc9b   :  { %4490 = vmatprep.mubr.bf16.mxu0 %v4196_v11 }
 0xc9c   :  { %v4044_v13 = vpop.f32.mrf.mxu0  ;;  %4491 = vmatmul.mubr.bf16.gmra.mxu0 %v4195_v49  ;;  %v6207_v49 = vld [vmem:[%s8437_s6 + $0x1ec] ss:$16 sps:$4 sm:$0xff]  }
 0xc9d   :  { %v4135_v28 = vpack.c.bf16 %v4044_v13, %v4040_v26 }
 0xc9e   :  { %v4046_v62 = vpop.f32.mrf.mxu0 }
 0xc9f   :  { %v4136_v50 = vpack.c.bf16 %v4046_v62, %v4042_v7  ;;  %v4199_v58 = vmul.bf16 %v6198_v63, %v4135_v28 }
 0xca0   :  { %v4050_v23 = vpop.f32.mrf.mxu0 }
 0xca1   :  { %v4200_v43 = vmul.bf16 %v6199_v9, %v4136_v50 }
 0xca2   :  { %v4052_v60 = vpop.f32.mrf.mxu0 }
 0xca3   :  { %4498 = vmatprep.mubr.bf16.mxu0 %v4200_v43 }
 0xca4   :  { %v4054_v18 = vpop.f32.mrf.mxu0  ;;  %4499 = vmatmul.mubr.bf16.gmra.mxu0 %v4199_v58 }
 0xca5   :  { %v4139_v32 = vpack.c.bf16 %v4054_v18, %v4050_v23 }
 0xca6   :  { %v4056_v36 = vpop.f32.mrf.mxu0 }
 0xca7   :  { %v4140_v57 = vpack.c.bf16 %v4056_v36, %v4052_v60  ;;  %v4203_v51 = vmul.bf16 %v6200_v41, %v4139_v32 }
 0xca8   :  { %v4060_v47 = vpop.f32.mrf.mxu0 }
 0xca9   :  { %v4204_v8 = vmul.bf16 %v6201_v17, %v4140_v57 }
 0xcaa   :  { %v4062_v14 = vpop.f32.mrf.mxu0 }
 0xcab   :  { %4506 = vmatprep.mubr.bf16.mxu0 %v4204_v8 }
 0xcac   :  { %v4064_v20 = vpop.f32.mrf.mxu0  ;;  %4507 = vmatmul.mubr.bf16.gmra.mxu0 %v4203_v51 }
 0xcad   :  { %v4143_v19 = vpack.c.bf16 %v4064_v20, %v4060_v47 }
 0xcae   :  { %v4066_v30 = vpop.f32.mrf.mxu0 }
 0xcaf   :  { %v4144_v42 = vpack.c.bf16 %v4066_v30, %v4062_v14  ;;  %v4207_v22 = vmul.bf16 %v6202_v3, %v4143_v19  ;;  %v6210_v14 = vld [vmem:[%s8437_s6 + $0x24] ss:$16 sps:$4 sm:$0xff]   ;;  %v6211_v19 = vld [vmem:[%s8437_s6 + $0x20] ss:$16 sps:$4 sm:$0xff]  }
 0xcb0   :  { %v4070_v6 = vpop.f32.mrf.mxu0 }
 0xcb1   :  { %v4208_v44 = vmul.bf16 %v6203_v46, %v4144_v42 }
 0xcb2   :  { %v4072_v21 = vpop.f32.mrf.mxu0 }
 0xcb3   :  { %4514 = vmatprep.mubr.bf16.mxu0 %v4208_v44 }
 0xcb4   :  { %v4074_v61 = vpop.f32.mrf.mxu0  ;;  %4515 = vmatmul.mubr.bf16.gmra.mxu0 %v4207_v22 }
 0xcb5   :  { %v4147_v10 = vpack.c.bf16 %v4074_v61, %v4070_v6 }
 0xcb6   :  { %v4076_v25 = vpop.f32.mrf.mxu0 }
 0xcb7   :  { %v4148_v45 = vpack.c.bf16 %v4076_v25, %v4072_v21  ;;  %v4211_v55 = vmul.bf16 %v6204_v0, %v4147_v10  ;;  %v6212_v21 = vld [vmem:[%s8437_s6 + $0x44] ss:$16 sps:$4 sm:$0xff]   ;;  %v6213_v10 = vld [vmem:[%s8437_s6 + $0x40] ss:$16 sps:$4 sm:$0xff]  }
 0xcb8   :  { %v4080_v1 = vpop.f32.mrf.mxu0 }
 0xcb9   :  { %v4212_v39 = vmul.bf16 %v6205_v52, %v4148_v45 }
 0xcba   :  { %v4082_v54 = vpop.f32.mrf.mxu0 }
 0xcbb   :  { %4522 = vmatprep.mubr.bf16.mxu0 %v4212_v39 }
 0xcbc   :  { %v4084_v33 = vpop.f32.mrf.mxu0  ;;  %4523 = vmatmul.mubr.bf16.gmra.mxu0 %v4211_v55 }
 0xcbd   :  { %v4151_v37 = vpack.c.bf16 %v4084_v33, %v4080_v1  ;;  %v6215_v33 = vld [vmem:[%s8437_s6 + $0x60] ss:$16 sps:$4 sm:$0xff]  }
 0xcbe   :  { %v4086_v53 = vpop.f32.mrf.mxu0 }
 0xcbf   :  { %v4152_v15 = vpack.c.bf16 %v4086_v53, %v4082_v54  ;;  %v4215_v2 = vmul.bf16 %v6206_v35, %v4151_v37  ;;  %v6214_v54 = vld [vmem:[%s8437_s6 + $0x64] ss:$16 sps:$4 sm:$0xff]  }
 0xcc1   :  { %v4216_v26 = vmul.bf16 %v6207_v49, %v4152_v15 }
 0xcc3   :  { %v3672_v34 = vpop.f32.mrf.mxu1  ;;  %4530 = vmatprep.mubr.bf16.mxu0 %v4216_v26  ;;  %v6216_v26 = vld [vmem:[%s8437_s6 + $0x84] ss:$16 sps:$4 sm:$0xff]  }
 0xcc4   :  { %v8055_v16 = vmul.f32 %v7658_v40, %v3672_v34  ;;  %4531 = vmatmul.mubr.bf16.gmra.mxu0 %v4215_v2 }
 0xcc5   :  { %v8049_v4 = vpop.f32.mrf.mxu1 }
 0xcc6   :  { %8573 = vst [vmem:[#allocation24_spill] sm:$0xff] %v8055_v16 }
 0xcc7   :  { %v3676_v31 = vpop.f32.mrf.mxu1 }
 0xcc8   :  { %v8058_v29 = vmul.f32 %v7654_v27, %v3676_v31 }
 0xcc9   :  { %v8063_v5 = vpop.f32.mrf.mxu1 }
 0xcca   :  { %8574 = vst [vmem:[#allocation21_spill] sm:$0xff] %v8058_v29 }
 0xccb   :  { %v3682_v7 = vpop.f32.mrf.mxu1 }
 0xccc   :  { %v8070_v28 = vmul.f32 %v7674_v48, %v3682_v7  ;;  %v6208_v48 = vld [vmem:[%s8437_s6 + $0x4] ss:$16 sps:$4 sm:$0xff]  }
 0xccd   :  { %v8067_v13 = vpop.f32.mrf.mxu1 }
 0xcce   :  { %8575 = vst [vmem:[#allocation23_spill] sm:$0xff] %v8067_v13  ;;  %8576 = vst [vmem:[#allocation22_spill] sm:$0xff] %v8070_v28 }
 0xccf   :  { %v3686_v40 = vpop.f32.mrf.mxu1 }
 0xcd0   :  { %v8073_v27 = vmul.f32 %v7668_v59, %v3686_v40  ;;  %v6209_v59 = vld [vmem:[%s8437_s6] ss:$16 sps:$4 sm:$0xff]  }
 0xcd1   :  { %v8075_v62 = vpop.f32.mrf.mxu1  ;;  %v6217_v40 = vld [vmem:[%s8437_s6 + $0x80] ss:$16 sps:$4 sm:$0xff]  }
 0xcd2   :  { %8577 = vst [vmem:[#allocation20_spill] sm:$0xff] %v8073_v27  ;;  %8578 = vst [vmem:[#allocation30_spill] sm:$0xff] %v8075_v62 }
 0xcd3   :  { %v3737_v63 = vpop.f32.mrf.mxu1 }
 0xcd5   :  { %v3739_v58 = vpop.f32.mrf.mxu1 }
 0xcd7   :  { %v3741_v23 = vpop.f32.mrf.mxu1 }
 0xcd8   :  { %v4089_v9 = vpack.c.bf16 %v3741_v23, %v3737_v63 }
 0xcd9   :  { %v3743_v43 = vpop.f32.mrf.mxu1 }
 0xcda   :  { %v4090_v60 = vpack.c.bf16 %v3743_v43, %v3739_v58  ;;  %v4153_v36 = vmul.bf16 %v6209_v59, %v4089_v9  ;;  %v6219_v59 = vld [vmem:[%s8437_s6 + $0xa0] ss:$16 sps:$4 sm:$0xff]  }
 0xcdb   :  { %v3747_v18 = vpop.f32.mrf.mxu1 }
 0xcdc   :  { %v4154_v32 = vmul.bf16 %v6208_v48, %v4090_v60  ;;  %v6218_v48 = vld [vmem:[%s8437_s6 + $0xa4] ss:$16 sps:$4 sm:$0xff]  }
 0xcdd   :  { %v3749_v57 = vpop.f32.mrf.mxu1 }
 0xcde   :  { %4249 = vmatprep.mubr.bf16.mxu1 %v4154_v32 }
 0xcdf   :  { %v3751_v41 = vpop.f32.mrf.mxu1  ;;  %4250 = vmatmul.mubr.bf16.vlgmr.msra.gmra.mxu1 %v4153_v36 }
 0xce0   :  { %v4093_v51 = vpack.c.bf16 %v3751_v41, %v3747_v18 }
 0xce1   :  { %v3753_v47 = vpop.f32.mrf.mxu1 }
 0xce2   :  { %v4094_v17 = vpack.c.bf16 %v3753_v47, %v3749_v57  ;;  %v4157_v30 = vmul.bf16 %v6211_v19, %v4093_v51  ;;  %v6221_v19 = vld [vmem:[%s8437_s6 + $0xc0] ss:$16 sps:$4 sm:$0xff]  }
 0xce3   :  { %v3757_v8 = vpop.f32.mrf.mxu1 }
 0xce4   :  { %v4158_v20 = vmul.bf16 %v6210_v14, %v4094_v17  ;;  %v6220_v14 = vld [vmem:[%s8437_s6 + $0xc4] ss:$16 sps:$4 sm:$0xff]  }
 0xce5   :  { %v3759_v42 = vpop.f32.mrf.mxu1 }
 0xce6   :  { %4257 = vmatprep.mubr.bf16.mxu1 %v4158_v20 }
 0xce7   :  { %v3761_v3 = vpop.f32.mrf.mxu1  ;;  %4258 = vmatmul.mubr.bf16.gmra.mxu1 %v4157_v30 }
 0xce8   :  { %v4097_v22 = vpack.c.bf16 %v3761_v3, %v3757_v8 }
 0xce9   :  { %v3763_v6 = vpop.f32.mrf.mxu1 }
 0xcea   :  { %v4098_v46 = vpack.c.bf16 %v3763_v6, %v3759_v42  ;;  %v4161_v25 = vmul.bf16 %v6213_v10, %v4097_v22 }
 0xceb   :  { %v3767_v44 = vpop.f32.mrf.mxu1 }
 0xcec   :  { %v4162_v61 = vmul.bf16 %v6212_v21, %v4098_v46 }
 0xced   :  { %v3769_v45 = vpop.f32.mrf.mxu1 }
 0xcee   :  { %4265 = vmatprep.mubr.bf16.mxu1 %v4162_v61  ;;  %v6222_v61 = vld [vmem:[%s8437_s6 + $0xe4] ss:$16 sps:$4 sm:$0xff]  }
 0xcef   :  { %v3771_v0 = vpop.f32.mrf.mxu1  ;;  %4266 = vmatmul.mubr.bf16.gmra.mxu1 %v4161_v25  ;;  %v6223_v25 = vld [vmem:[%s8437_s6 + $0xe0] ss:$16 sps:$4 sm:$0xff]  }
 0xcf0   :  { %v4101_v55 = vpack.c.bf16 %v3771_v0, %v3767_v44 }
 0xcf1   :  { %v3773_v1 = vpop.f32.mrf.mxu1 }
 0xcf2   :  { %v4102_v52 = vpack.c.bf16 %v3773_v1, %v3769_v45  ;;  %v4165_v37 = vmul.bf16 %v6215_v33, %v4101_v55 }
 0xcf3   :  { %v3777_v39 = vpop.f32.mrf.mxu1 }
 0xcf4   :  { %v4166_v34 = vmul.bf16 %v6214_v54, %v4102_v52 }
 0xcf5   :  { %v3779_v53 = vpop.f32.mrf.mxu1 }
 0xcf6   :  { %4273 = vmatprep.mubr.bf16.mxu1 %v4166_v34 }
 0xcf7   :  { %v3781_v15 = vpop.f32.mrf.mxu1  ;;  %4274 = vmatmul.mubr.bf16.gmra.mxu1 %v4165_v37 }
 0xcf8   :  { %v4105_v31 = vpack.c.bf16 %v3781_v15, %v3777_v39 }
 0xcf9   :  { %v3783_v35 = vpop.f32.mrf.mxu1 }
 0xcfa   :  { %v4106_v2 = vpack.c.bf16 %v3783_v35, %v3779_v53  ;;  %v4169_v63 = vmul.bf16 %v6217_v40, %v4105_v31  ;;  %v6224_v35 = vld [vmem:[%s8437_s6 + $0x104] ss:$16 sps:$4 sm:$0xff]  }
 0xcfb   :  { %v3787_v49 = vpop.f32.mrf.mxu1 }
 0xcfc   :  { %v4170_v7 = vmul.bf16 %v6216_v26, %v4106_v2 }
 0xcfd   :  { %v3789_v58 = vpop.f32.mrf.mxu1 }
 0xcfe   :  { %4281 = vmatprep.mubr.bf16.mxu1 %v4170_v7 }
 0xcff   :  { %v3791_v23 = vpop.f32.mrf.mxu1  ;;  %4282 = vmatmul.mubr.bf16.gmra.mxu1 %v4169_v63 }
 0xd00   :  { %v4109_v9 = vpack.c.bf16 %v3791_v23, %v3787_v49  ;;  %v6225_v49 = vld [vmem:[%s8437_s6 + $0x100] ss:$16 sps:$4 sm:$0xff]  }
 0xd01   :  { %v3793_v43 = vpop.f32.mrf.mxu1 }
 0xd02   :  { %v4110_v60 = vpack.c.bf16 %v3793_v43, %v3789_v58  ;;  %v4173_v36 = vmul.bf16 %v6219_v59, %v4109_v9 }
 0xd03   :  { %v3797_v18 = vpop.f32.mrf.mxu1 }
 0xd04   :  { %v4174_v32 = vmul.bf16 %v6218_v48, %v4110_v60 }
 0xd05   :  { %v3799_v57 = vpop.f32.mrf.mxu1 }
 0xd06   :  { %4289 = vmatprep.mubr.bf16.mxu1 %v4174_v32 }
 0xd07   :  { %v3801_v41 = vpop.f32.mrf.mxu1  ;;  %4290 = vmatmul.mubr.bf16.gmra.mxu1 %v4173_v36  ;;  %v5628_v21 = vpop.f32.mrf.mxu0  ;;  %v6226_v36 = vld [vmem:[%s8437_s6 + $0x124] ss:$16 sps:$4 sm:$0xff]  }
 0xd08   :  { %v4113_v51 = vpack.c.bf16 %v3801_v41, %v3797_v18  ;;  %v6227_v41 = vld [vmem:[%s8437_s6 + $0x120] ss:$16 sps:$4 sm:$0xff]  }
 0xd09   :  { %v3803_v47 = vpop.f32.mrf.mxu1  ;;  %v5629_v55 = vpop.f32.mrf.mxu0 }
 0xd0a   :  { %v4114_v17 = vpack.c.bf16 %v3803_v47, %v3799_v57  ;;  %v4177_v30 = vmul.bf16 %v6221_v19, %v4113_v51  ;;  %v8127_v1 = vadd.f32 %v5629_v55, %v5628_v21 }
 0xd0b   :  { %v3807_v8 = vpop.f32.mrf.mxu1  ;;  %v5631_v39 = vpop.f32.mrf.mxu0 }
 0xd0c   :  { %v4178_v20 = vmul.bf16 %v6220_v14, %v4114_v17 }
 0xd0d   :  { %v3809_v42 = vpop.f32.mrf.mxu1  ;;  %v5632_v33 = vpop.f32.mrf.mxu0 }
 0xd0e   :  { %4297 = vmatprep.mubr.bf16.mxu1 %v4178_v20  ;;  %v8129_v53 = vadd.f32 %v5632_v33, %v5631_v39 }
 0xd0f   :  { %v3811_v3 = vpop.f32.mrf.mxu1  ;;  %4298 = vmatmul.mubr.bf16.gmra.mxu1 %v4177_v30 }
 0xd10   :  { %v4117_v22 = vpack.c.bf16 %v3811_v3, %v3807_v8 }
 0xd11   :  { %v3813_v6 = vpop.f32.mrf.mxu1 }
 0xd12   :  { %v4118_v46 = vpack.c.bf16 %v3813_v6, %v3809_v42  ;;  %v4181_v45 = vmul.bf16 %v6223_v25, %v4117_v22 }
 0xd13   :  { %v3817_v44 = vpop.f32.mrf.mxu1  ;;  %v5634_v31 = vpop.f32.mrf.mxu0 }
 0xd14   :  { %v4182_v10 = vmul.bf16 %v6222_v61, %v4118_v46  ;;  %v6229_v61 = vld [vmem:[%s8437_s6 + $0x140] ss:$16 sps:$4 sm:$0xff]  }
 0xd15   :  { %v3819_v0 = vpop.f32.mrf.mxu1  ;;  %v5635_v40 = vpop.f32.mrf.mxu0 }
 0xd16   :  { %4305 = vmatprep.mubr.bf16.mxu1 %v4182_v10  ;;  %v8137_v63 = vadd.f32 %v5635_v40, %v5634_v31 }
 0xd17   :  { %v3821_v52 = vpop.f32.mrf.mxu1  ;;  %4306 = vmatmul.mubr.bf16.gmra.mxu1 %v4181_v45  ;;  %v5637_v23 = vpop.f32.mrf.mxu0 }
 0xd18   :  { %v4121_v54 = vpack.c.bf16 %v3821_v52, %v3817_v44  ;;  %v6228_v44 = vld [vmem:[%s8437_s6 + $0x144] ss:$16 sps:$4 sm:$0xff]  }
 0xd19   :  { %v3823_v34 = vpop.f32.mrf.mxu1  ;;  %v5638_v60 = vpop.f32.mrf.mxu0 }
 0xd1a   :  { %v4122_v37 = vpack.c.bf16 %v3823_v34, %v3819_v0  ;;  %v4185_v26 = vmul.bf16 %v6225_v49, %v4121_v54  ;;  %v8139_v48 = vadd.f32 %v5638_v60, %v5637_v23  ;;  %v6231_v49 = vld [vmem:[%s8437_s6 + $0x160] ss:$16 sps:$4 sm:$0xff]  }
 0xd1b   :  { %v3827_v15 = vpop.f32.mrf.mxu1  ;;  %v5640_v59 = vpop.f32.mrf.mxu0 }
 0xd1c   :  { %v4186_v2 = vmul.bf16 %v6224_v35, %v4122_v37  ;;  %v6230_v35 = vld [vmem:[%s8437_s6 + $0x164] ss:$16 sps:$4 sm:$0xff]  }
 0xd1d   :  { %v3829_v7 = vpop.f32.mrf.mxu1  ;;  %v5641_v17 = vpop.f32.mrf.mxu0 }
 0xd1e   :  { %4313 = vmatprep.mubr.bf16.mxu1 %v4186_v2  ;;  %v8147_v8 = vadd.f32 %v5641_v17, %v5640_v59 }
 0xd1f   :  { %v3831_v58 = vpop.f32.mrf.mxu1  ;;  %4314 = vmatmul.mubr.bf16.gmra.mxu1 %v4185_v26  ;;  %v5643_v20 = vpop.f32.mrf.mxu0 }
 0xd20   :  { %v4125_v9 = vpack.c.bf16 %v3831_v58, %v3827_v15 }
 0xd21   :  { %v3833_v43 = vpop.f32.mrf.mxu1  ;;  %v5644_v42 = vpop.f32.mrf.mxu0 }
 0xd22   :  { %v4126_v18 = vpack.c.bf16 %v3833_v43, %v3829_v7  ;;  %v4189_v51 = vmul.bf16 %v6227_v41, %v4125_v9  ;;  %v8149_v22 = vadd.f32 %v5644_v42, %v5643_v20  ;;  %v6232_v41 = vld [vmem:[%s8437_s6 + $0x184] ss:$16 sps:$4 sm:$0xff]  }
 0xd23   :  { %v3837_v32 = vpop.f32.mrf.mxu1  ;;  %v5646_v46 = vpop.f32.mrf.mxu0 }
 0xd24   :  { %v4190_v57 = vmul.bf16 %v6226_v36, %v4126_v18 }
 0xd25   :  { %v3839_v47 = vpop.f32.mrf.mxu1  ;;  %v5647_v45 = vpop.f32.mrf.mxu0 }
 0xd26   :  { %4321 = vmatprep.mubr.bf16.mxu1 %v4190_v57  ;;  %v8157_v0 = vadd.f32 %v5647_v45, %v5646_v46 }
 0xd27   :  { %v3841_v14 = vpop.f32.mrf.mxu1  ;;  %4322 = vmatmul.mubr.bf16.gmra.mxu1 %v4189_v51  ;;  %v5649_v52 = vpop.f32.mrf.mxu0 }
 0xd28   :  { %v4129_v19 = vpack.c.bf16 %v3841_v14, %v3837_v32 }
 0xd29   :  { %v3843_v30 = vpop.f32.mrf.mxu1  ;;  %v5650_v34 = vpop.f32.mrf.mxu0 }
 0xd2a   :  { %v4130_v3 = vpack.c.bf16 %v3843_v30, %v3839_v47  ;;  %v4193_v10 = vmul.bf16 %v6229_v61, %v4129_v19  ;;  %v8159_v37 = vadd.f32 %v5650_v34, %v5649_v52  ;;  %v6233_v47 = vld [vmem:[%s8437_s6 + $0x180] ss:$16 sps:$4 sm:$0xff]  }
 0xd2b   :  { %v3847_v6 = vpop.f32.mrf.mxu1  ;;  %v5652_v31 = vpop.f32.mrf.mxu0 }
 0xd2c   :  { %v4194_v21 = vmul.bf16 %v6228_v44, %v4130_v3 }
 0xd2d   :  { %v3849_v25 = vpop.f32.mrf.mxu1  ;;  %v5653_v40 = vpop.f32.mrf.mxu0 }
 0xd2e   :  { %4329 = vmatprep.mubr.bf16.mxu1 %v4194_v21  ;;  %v8167_v58 = vadd.f32 %v5653_v40, %v5652_v31 }
 0xd2f   :  { %v3851_v55 = vpop.f32.mrf.mxu1  ;;  %4330 = vmatmul.mubr.bf16.gmra.mxu1 %v4193_v10  ;;  %v5655_v9 = vpop.f32.mrf.mxu0 }
 0xd30   :  { %v4133_v39 = vpack.c.bf16 %v3851_v55, %v3847_v6  ;;  %v6235_v55 = vld [vmem:[%s8437_s6 + $0x1a0] ss:$16 sps:$4 sm:$0xff]  }
 0xd31   :  { %v3853_v54 = vpop.f32.mrf.mxu1  ;;  %v5656_v18 = vpop.f32.mrf.mxu0 }
 0xd32   :  { %v4134_v33 = vpack.c.bf16 %v3853_v54, %v3849_v25  ;;  %v4197_v26 = vmul.bf16 %v6231_v49, %v4133_v39  ;;  %v8169_v59 = vadd.f32 %v5656_v18, %v5655_v9  ;;  %v6234_v25 = vld [vmem:[%s8437_s6 + $0x1a4] ss:$16 sps:$4 sm:$0xff]  }
 0xd33   :  { %v3857_v15 = vpop.f32.mrf.mxu1  ;;  %v5658_v57 = vpop.f32.mrf.mxu0 }
 0xd34   :  { %v4198_v2 = vmul.bf16 %v6230_v35, %v4134_v33 }
 0xd35   :  { %v3859_v7 = vpop.f32.mrf.mxu1  ;;  %v5659_v20 = vpop.f32.mrf.mxu0 }
 0xd36   :  { %4337 = vmatprep.mubr.bf16.mxu1 %v4198_v2  ;;  %v8177_v19 = vadd.f32 %v5659_v20, %v5658_v57 }
 0xd37   :  { %v3861_v23 = vpop.f32.mrf.mxu1  ;;  %4338 = vmatmul.mubr.bf16.gmra.mxu1 %v4197_v26  ;;  %v5661_v42 = vpop.f32.mrf.mxu0 }
 0xd38   :  { %v4137_v43 = vpack.c.bf16 %v3861_v23, %v3857_v15  ;;  %v6236_v23 = vld [vmem:[%s8437_s6 + $0x1c4] ss:$16 sps:$4 sm:$0xff]  }
 0xd39   :  { %v3863_v60 = vpop.f32.mrf.mxu1  ;;  %v5662_v46 = vpop.f32.mrf.mxu0 }
 0xd3a   :  { %v4138_v32 = vpack.c.bf16 %v3863_v60, %v3859_v7  ;;  %v4201_v17 = vmul.bf16 %v6233_v47, %v4137_v43  ;;  %v8179_v21 = vadd.f32 %v5662_v46, %v5661_v42  ;;  %v6237_v43 = vld [vmem:[%s8437_s6 + $0x1c0] ss:$16 sps:$4 sm:$0xff]  }
 0xd3b   :  { %v3867_v36 = vpop.f32.mrf.mxu1  ;;  %v5664_v10 = vpop.f32.mrf.mxu0 }
 0xd3c   :  { %v4202_v51 = vmul.bf16 %v6232_v41, %v4138_v32 }
 0xd3d   :  { %v3869_v14 = vpop.f32.mrf.mxu1  ;;  %v5665_v54 = vpop.f32.mrf.mxu0 }
 0xd3e   :  { %4345 = vmatprep.mubr.bf16.mxu1 %v4202_v51  ;;  %v8187_v34 = vadd.f32 %v5665_v54, %v5664_v10 }
 0xd3f   :  { %v3871_v30 = vpop.f32.mrf.mxu1  ;;  %4346 = vmatmul.mubr.bf16.gmra.mxu1 %v4201_v17  ;;  %v5667_v15 = vpop.f32.mrf.mxu0 }
 0xd40   :  { %v4141_v3 = vpack.c.bf16 %v3871_v30, %v3867_v36 }
 0xd41   :  { %v3873_v6 = vpop.f32.mrf.mxu1  ;;  %v5668_v2 = vpop.f32.mrf.mxu0 }
 0xd42   :  { %v4142_v44 = vpack.c.bf16 %v3873_v6, %v3869_v14  ;;  %v4205_v52 = vmul.bf16 %v6235_v55, %v4141_v3  ;;  %v8189_v26 = vadd.f32 %v5668_v2, %v5667_v15  ;;  %v3694_v14 = vmul.f32 %v7656_v38, %v8063_v5  ;;  %v6238_v6 = vld [vmem:[%s8437_s6 + $0x1e4] ss:$16 sps:$4 sm:$0xff]  }
 0xd43   :  { %v3877_v61 = vpop.f32.mrf.mxu1  ;;  %v5670_v40 = vpop.f32.mrf.mxu0  ;;  %v3692_v3 = vmul.f32 %v7660_v56, %v8049_v4 }
 0xd44   :  { %v4206_v45 = vmul.bf16 %v6234_v25, %v4142_v44  ;;  %v6239_v44 = vld [vmem:[%s8437_s6 + $0x1e0] ss:$16 sps:$4 sm:$0xff]  }
 0xd45   :  { %v3879_v39 = vpop.f32.mrf.mxu1  ;;  %v5671_v32 = vpop.f32.mrf.mxu0  ;;  %v3700_v25 = vpack.c.bf16 %v3694_v14, %v3692_v3 }
 0xd46   :  { %4353 = vmatprep.mubr.bf16.mxu1 %v4206_v45  ;;  %v8197_v36 = vadd.f32 %v5671_v32, %v5670_v40 }
 0xd47   :  { %v3881_v33 = vpop.f32.mrf.mxu1  ;;  %4354 = vmatmul.mubr.bf16.gmra.mxu1 %v4205_v52  ;;  %v5673_v41 = vpop.f32.mrf.mxu0 }
 0xd48   :  { %v4145_v31 = vpack.c.bf16 %v3881_v33, %v3877_v61 }
 0xd49   :  { %v3883_v35 = vpop.f32.mrf.mxu1  ;;  %v5674_v17 = vpop.f32.mrf.mxu0 }
 0xd4a   :  { %v4146_v49 = vpack.c.bf16 %v3883_v35, %v3879_v39  ;;  %v4209_v60 = vmul.bf16 %v6237_v43, %v4145_v31  ;;  %v8201_v30 = vadd.f32 %v5674_v17, %v5673_v41 }
 0xd4b   :  { %v3887_v7 = vpop.f32.mrf.mxu1 }
 0xd4c   :  { %v4210_v9 = vmul.bf16 %v6236_v23, %v4146_v49  ;;  %v5676_v42 = vpop.f32.mrf.mxu0 }
 0xd4d   :  { %v3889_v18 = vpop.f32.mrf.mxu1 }
 0xd4e   :  { %4361 = vmatprep.mubr.bf16.mxu1 %v4210_v9  ;;  %v5677_v10 = vpop.f32.mrf.mxu0 }
 0xd4f   :  { %v3891_v57 = vpop.f32.mrf.mxu1  ;;  %4362 = vmatmul.mubr.bf16.gmra.mxu1 %v4209_v60  ;;  %v8211_v38 = vadd.f32 %v5677_v10, %v5676_v42 }
 0xd50   :  { %v4149_v51 = vpack.c.bf16 %v3891_v57, %v3887_v7  ;;  %v5679_v5 = vpop.f32.mrf.mxu0 }
 0xd51   :  { %v3893_v47 = vpop.f32.mrf.mxu1 }
 0xd52   :  { %v4150_v20 = vpack.c.bf16 %v3893_v47, %v3889_v18  ;;  %v4213_v61 = vmul.bf16 %v6239_v44, %v4149_v51  ;;  %v5680_v45 = vpop.f32.mrf.mxu0 }
 0xd53   :  { %v8213_v56 = vadd.f32 %v5680_v45, %v5679_v5 }
 0xd54   :  { %v4214_v46 = vmul.bf16 %v6238_v6, %v4150_v20  ;;  %v5682_v4 = vpop.f32.mrf.mxu0 }
 0xd56   :  { %4369 = vmatprep.mubr.bf16.mxu1 %v4214_v46  ;;  %v5683_v55 = vpop.f32.mrf.mxu0 }
 0xd57   :  { %4370 = vmatmul.mubr.bf16.gmra.mxu1 %v4213_v61  ;;  %v8215_v52 = vadd.f32 %v5683_v55, %v5682_v4 }
 0xd58   :  { %4594 = vmatprep.mubr.bf16.mxu1 %v3700_v25  ;;  %v5685_v39 = vpop.f32.mrf.mxu0 }
 0xd5a   :  { %v5686_v54 = vpop.f32.mrf.mxu0 }
 0xd5b   :  { %v8217_v33 = vadd.f32 %v5686_v54, %v5685_v39 }
 0xd9f   :  { %v5516_v15 = vpop.f32.mrf.mxu1 }
 0xda1   :  { %v5517_v31 = vpop.f32.mrf.mxu1 }
 0xda2   :  { %v5518_v35 = vadd.f32 %v5517_v31, %v5516_v15 }
 0xda3   :  { %v5519_v2 = vpop.f32.mrf.mxu1 }
 0xda4   :  { %v8220_v49 = vadd.f32 %v8127_v1, %v5518_v35 }
 0xda5   :  { %v5520_v7 = vpop.f32.mrf.mxu1 }
 0xda6   :  { %8579 = vst [vmem:[#allocation19_spill] sm:$0xff] %v8220_v49  ;;  %v5521_v40 = vadd.f32 %v5520_v7, %v5519_v2 }
 0xda7   :  { %v5522_v23 = vpop.f32.mrf.mxu1 }
 0xda8   :  { %v8223_v9 = vadd.f32 %v8129_v53, %v5521_v40 }
 0xda9   :  { %v5523_v43 = vpop.f32.mrf.mxu1 }
 0xdaa   :  { %8580 = vst [vmem:[#allocation18_spill] sm:$0xff] %v8223_v9  ;;  %v5524_v18 = vadd.f32 %v5523_v43, %v5522_v23 }
 0xdab   :  { %v5525_v32 = vpop.f32.mrf.mxu1 }
 0xdac   :  { %v8228_v57 = vadd.f32 %v8137_v63, %v5524_v18 }
 0xdad   :  { %v5526_v41 = vpop.f32.mrf.mxu1 }
 0xdae   :  { %8581 = vst [vmem:[#allocation17_spill] sm:$0xff] %v8228_v57  ;;  %v5527_v51 = vadd.f32 %v5526_v41, %v5525_v32 }
 0xdaf   :  { %v5528_v47 = vpop.f32.mrf.mxu1 }
 0xdb0   :  { %v8231_v1 = vadd.f32 %v8139_v48, %v5527_v51 }
 0xdb1   :  { %v5529_v17 = vpop.f32.mrf.mxu1 }
 0xdb2   :  { %8582 = vst [vmem:[#allocation16_spill] sm:$0xff] %v8231_v1  ;;  %v5530_v14 = vadd.f32 %v5529_v17, %v5528_v47  ;;  %v6028_v47 = vld [vmem:[%s8441_s14 + $0x18] sm:$0xff]  }
 0xdb3   :  { %v5531_v20 = vpop.f32.mrf.mxu1  ;;  %5758 = vmatprep.subr.bf16.mxu0 %v6028_v47 }
 0xdb4   :  { %v8236_v42 = vadd.f32 %v8147_v8, %v5530_v14  ;;  %v8246_v8 = vpop.f32.mrf.mxu0  ;;  %5759 = vmatpush3.bf16.msra.mxu0 %v6028_v47 }
 0xdb5   :  { %v5532_v3 = vpop.f32.mrf.mxu1 }
 0xdb6   :  { %8583 = vst [vmem:[#allocation29_spill] sm:$0xff] %v8236_v42  ;;  %v5533_v6 = vadd.f32 %v5532_v3, %v5531_v20  ;;  %v8253_v31 = vpop.f32.mrf.mxu0 }
 0xdb7   :  { %v5534_v46 = vpop.f32.mrf.mxu1 }
 0xdb8   :  { %v8239_v63 = vadd.f32 %v8149_v22, %v5533_v6  ;;  %v8258_v40 = vpop.f32.mrf.mxu0 }
 0xdb9   :  { %v5535_v44 = vpop.f32.mrf.mxu1  ;;  %8588 = vst [vmem:[#allocation26_spill] sm:$0xff] %v8258_v40 }
 0xdba   :  { %8584 = vst [vmem:[#allocation28_spill] sm:$0xff] %v8239_v63  ;;  %v5536_v61 = vadd.f32 %v5535_v44, %v5534_v46  ;;  %v8265_v41 = vpop.f32.mrf.mxu0 }
 0xdbb   :  { %v5537_v10 = vpop.f32.mrf.mxu1  ;;  %8590 = vst [vmem:[#allocation5_spill] sm:$0xff] %v8265_v41 }
 0xdbc   :  { %v8244_v25 = vadd.f32 %v8157_v0, %v5536_v61 }
 0xdbd   :  { %v5538_v5 = vpop.f32.mrf.mxu1 }
 0xdbe   :  { %8585 = vst [vmem:[#allocation15_spill] sm:$0xff] %v8244_v25  ;;  %v5539_v45 = vadd.f32 %v5538_v5, %v5537_v10 }
 0xdbf   :  { %v5540_v4 = vpop.f32.mrf.mxu1 }
 0xdc0   :  { %v8249_v55 = vadd.f32 %v8159_v37, %v5539_v45 }
 0xdc1   :  { %v5541_v39 = vpop.f32.mrf.mxu1 }
 0xdc2   :  { %8586 = vst [vmem:[#allocation14_spill] sm:$0xff] %v8249_v55  ;;  %v5542_v54 = vadd.f32 %v5541_v39, %v5540_v4 }
 0xdc3   :  { %v5543_v15 = vpop.f32.mrf.mxu1 }
 0xdc4   :  { %v8256_v35 = vadd.f32 %v8167_v58, %v5542_v54 }
 0xdc5   :  { %v5544_v0 = vpop.f32.mrf.mxu1 }
 0xdc6   :  { %8587 = vst [vmem:[#allocation27_spill] sm:$0xff] %v8256_v35  ;;  %v5545_v2 = vadd.f32 %v5544_v0, %v5543_v15 }
 0xdc7   :  { %v5546_v7 = vpop.f32.mrf.mxu1 }
 0xdc8   :  { %v8261_v23 = vadd.f32 %v8169_v59, %v5545_v2  ;;  %v8273_v59 = vpop.f32.mrf.mxu0 }
 0xdc9   :  { %v5547_v37 = vpop.f32.mrf.mxu1 }
 0xdca   :  { %8589 = vst [vmem:[#allocation11_spill] sm:$0xff] %v8261_v23  ;;  %v5548_v18 = vadd.f32 %v5547_v37, %v5546_v7  ;;  %v8280_v44 = vpop.f32.mrf.mxu0 }
 0xdcb   :  { %v5549_v32 = vpop.f32.mrf.mxu1 }
 0xdcc   :  { %v8268_v51 = vadd.f32 %v8177_v19, %v5548_v18  ;;  %v8285_v4 = vpop.f32.mrf.mxu0 }
 0xdcd   :  { %v5550_v58 = vpop.f32.mrf.mxu1 }
 0xdce   :  { %8591 = vst [vmem:[#allocation8_spill] sm:$0xff] %v8268_v51  ;;  %v5551_v17 = vadd.f32 %v5550_v58, %v5549_v32  ;;  %v8292_v2 = vpop.f32.mrf.mxu0 }
 0xdcf   :  { %v5552_v14 = vpop.f32.mrf.mxu1 }
 0xdd0   :  { %v8276_v20 = vadd.f32 %v8179_v21, %v5551_v17  ;;  %v8297_v32 = vpop.f32.mrf.mxu0 }
 0xdd1   :  { %v5553_v3 = vpop.f32.mrf.mxu1 }
 0xdd2   :  { %8592 = vst [vmem:[#allocation4_spill] sm:$0xff] %v8276_v20  ;;  %v5554_v19 = vadd.f32 %v5553_v3, %v5552_v14  ;;  %v8304_v3 = vpop.f32.mrf.mxu0 }
 0xdd3   :  { %v5555_v46 = vpop.f32.mrf.mxu1 }
 0xdd4   :  { %v8283_v61 = vadd.f32 %v8187_v34, %v5554_v19 }
 0xdd5   :  { %v5556_v10 = vpop.f32.mrf.mxu1 }
 0xdd6   :  { %v5557_v5 = vadd.f32 %v5556_v10, %v5555_v46 }
 0xdd7   :  { %v5558_v45 = vpop.f32.mrf.mxu1 }
 0xdd8   :  { %v8288_v21 = vadd.f32 %v8189_v26, %v5557_v5  ;;  %v8309_v5 = vpop.f32.mrf.mxu0 }
 0xdd9   :  { %v5559_v39 = vpop.f32.mrf.mxu1 }
 0xdda   :  { %v5560_v15 = vadd.f32 %v5559_v39, %v5558_v45 }
 0xddb   :  { %v5561_v0 = vpop.f32.mrf.mxu1 }
 0xddc   :  { %v8295_v7 = vadd.f32 %v8197_v36, %v5560_v15 }
 0xddd   :  { %v5562_v34 = vpop.f32.mrf.mxu1 }
 0xdde   :  { %v5563_v37 = vadd.f32 %v5562_v34, %v5561_v0  ;;  %v8316_v34 = vpop.f32.mrf.mxu0 }
 0xddf   :  { %v5564_v18 = vpop.f32.mrf.mxu1 }
 0xde0   :  { %v8300_v58 = vadd.f32 %v8201_v30, %v5563_v37 }
 0xde1   :  { %v5565_v26 = vpop.f32.mrf.mxu1 }
 0xde2   :  { %v5566_v17 = vadd.f32 %v5565_v26, %v5564_v18 }
 0xde3   :  { %v5567_v14 = vpop.f32.mrf.mxu1 }
 0xde4   :  { %v8307_v19 = vadd.f32 %v8211_v38, %v5566_v17  ;;  %v5706_v17 = vpop.f32.mrf.mxu0 }
 0xde5   :  { %v5568_v36 = vpop.f32.mrf.mxu1 }
 0xde6   :  { %8593 = vst [vmem:[#allocation13_spill] sm:$0xff] %v8307_v19  ;;  %v5569_v46 = vadd.f32 %v5568_v36, %v5567_v14  ;;  %v5690_v36 = vadd.f32 %v8253_v31, %v8246_v8  ;;  %v5707_v50 = vpop.f32.mrf.mxu0 }
 0xde7   :  { %v5570_v10 = vpop.f32.mrf.mxu1  ;;  %v5708_v51 = vadd.f32 %v5707_v50, %v5706_v17  ;;  %v8627_v17 = vld [vmem:[#allocation25_spill] sm:$0xff] }
 0xde8   :  { %v8312_v45 = vadd.f32 %v8213_v56, %v5569_v46 }
 0xde9   :  { %v5571_v30 = vpop.f32.mrf.mxu1 }
 0xdea   :  { %8594 = vst [vmem:[#allocation12_spill] sm:$0xff] %v8312_v45  ;;  %v5572_v39 = vadd.f32 %v5571_v30, %v5570_v10 }
 0xdeb   :  { %v5573_v0 = vpop.f32.mrf.mxu1 }
 0xdec   :  { %v8319_v37 = vadd.f32 %v8215_v52, %v5572_v39 }
 0xded   :  { %v5574_v38 = vpop.f32.mrf.mxu1 }
 0xdee   :  { %8595 = vst [vmem:[#allocation7_spill] sm:$0xff] %v8319_v37  ;;  %v5575_v18 = vadd.f32 %v5574_v38, %v5573_v0  ;;  %v5709_v38 = vpop.f32.mrf.mxu0 }
 0xdef   :  { %v5576_v26 = vpop.f32.mrf.mxu1 }
 0xdf0   :  { %v8322_v14 = vadd.f32 %v8217_v33, %v5575_v18  ;;  %v5710_v18 = vpop.f32.mrf.mxu0 }
 0xdf1   :  { %v5577_v56 = vpop.f32.mrf.mxu1  ;;  %v5711_v35 = vadd.f32 %v5710_v18, %v5709_v38  ;;  %v8633_v18 = vld [vmem:[#allocation21_spill] sm:$0xff] }
 0xdf2   :  { %8596 = vst [vmem:[#allocation6_spill] sm:$0xff] %v8322_v14  ;;  %v5578_v46 = vadd.f32 %v5577_v56, %v5576_v26  ;;  %v5712_v53 = vpop.f32.mrf.mxu0 }
 0xdf3   :  { %v8328_v30 = vpop.f32.mrf.mxu1 }
 0xdf4   :  { %v8330_v52 = vadd.f32 %v5690_v36, %v5578_v46  ;;  %v5713_v26 = vpop.f32.mrf.mxu0 }
 0xdf5   :  { %v8332_v39 = vpop.f32.mrf.mxu1  ;;  %v5714_v42 = vadd.f32 %v5713_v26, %v5712_v53  ;;  %v5696_v53 = vadd.f32 %v8280_v44, %v8273_v59  ;;  %v8636_v26 = vld [vmem:[#allocation20_spill] sm:$0xff] }
 0xdf6   :  { %8597 = vst [vmem:[#allocation10_spill] sm:$0xff] %v8330_v52  ;;  %8598 = vst [vmem:[#allocation9_spill] sm:$0xff] %v8332_v39  ;;  %v5715_v10 = vpop.f32.mrf.mxu0 }
 0xdf7   :  { %v5582_v0 = vpop.f32.mrf.mxu1 }
 0xdf8   :  { %v5716_v43 = vpop.f32.mrf.mxu0 }
 0xdf9   :  { %v5583_v11 = vpop.f32.mrf.mxu1  ;;  %v5717_v19 = vadd.f32 %v5716_v43, %v5715_v10  ;;  %v8628_v10 = vld [vmem:[#allocation23_spill] sm:$0xff] }
 0xdfa   :  { %v5718_v6 = vpop.f32.mrf.mxu0 }
 0xdfb   :  { %v5585_v33 = vpop.f32.mrf.mxu1 }
 0xdfc   :  { %v5719_v28 = vpop.f32.mrf.mxu0 }
 0xdfd   :  { %v5586_v60 = vpop.f32.mrf.mxu1  ;;  %v5720_v57 = vadd.f32 %v5719_v28, %v5718_v6  ;;  %v8599_v28 = vpack.c.bf16 %v8300_v58, %v8295_v7  ;;  %v8610_v59 = vld [vmem:[#allocation10_spill] sm:$0xff]  ;;  %v8618_v58 = vld [vmem:[#allocation7_spill] sm:$0xff] }
 0xdfe   :  { %v5721_v29 = vpop.f32.mrf.mxu0 }
 0xdff   :  { %v5588_v15 = vpop.f32.mrf.mxu1 }
 0xe00   :  { %v5722_v12 = vpop.f32.mrf.mxu0 }
 0xe01   :  { %v5589_v8 = vpop.f32.mrf.mxu1  ;;  %v5723_v1 = vadd.f32 %v5722_v12, %v5721_v29  ;;  %v5705_v12 = vadd.f32 %v8316_v34, %v8309_v5 }
 0xe02   :  { %v5590_v29 = vadd.f32 %v5589_v8, %v5588_v15  ;;  %v8624_v15 = vld [vmem:[#allocation13_spill] sm:$0xff]  ;;  %v8634_v8 = vld [vmem:[#allocation24_spill] sm:$0xff] }
 0xe03   :  { %v5591_v31 = vpop.f32.mrf.mxu1 }
 0xe05   :  { %v5592_v56 = vpop.f32.mrf.mxu1 }
 0xe06   :  { %v5593_v20 = vadd.f32 %v5592_v56, %v5591_v31  ;;  %v8635_v31 = vpack.c.bf16 %v8633_v18, %v8634_v8  ;;  %v8637_v56 = vld [vmem:[#allocation22_spill] sm:$0xff] }
 0xe07   :  { %v5594_v48 = vpop.f32.mrf.mxu1 }
 0xe09   :  { %v5595_v22 = vpop.f32.mrf.mxu1 }
 0xe0a   :  { %v5596_v23 = vadd.f32 %v5595_v22, %v5594_v48 }
 0xe0b   :  { %v5597_v36 = vpop.f32.mrf.mxu1 }
 0xe0d   :  { %v5598_v46 = vpop.f32.mrf.mxu1 }
 0xe0e   :  { %v5599_v63 = vadd.f32 %v5598_v46, %v5597_v36  ;;  %v8638_v36 = vpack.c.bf16 %v8636_v26, %v8637_v56  ;;  %v6029_v46 = vld [vmem:[%s8441_s14 + $0x10] sm:$0xff]  }
 0xe0f   :  { %v5600_v54 = vpop.f32.mrf.mxu1  ;;  %5760 = vmatprep.subr.bf16.mxu0 %v6029_v46 }
 0xe10   :  { %v4520_v39 = vadd.f32 %v5711_v35, %v5599_v63  ;;  %v8605_v35 = vld [vmem:[#allocation26_spill] sm:$0xff]  ;;  %5761 = vmatpush3.bf16.msra.mxu0 %v6029_v46 }
 0xe11   :  { %v5601_v47 = vpop.f32.mrf.mxu1 }
 0xe12   :  { %v5602_v37 = vadd.f32 %v5601_v47, %v5600_v54  ;;  %v8614_v54 = vld [vmem:[#allocation28_spill] sm:$0xff] }
 0xe13   :  { %v5603_v27 = vpop.f32.mrf.mxu1 }
 0xe14   :  { %v4525_v41 = vadd.f32 %v5714_v42, %v5602_v37  ;;  %v8601_v42 = vld [vmem:[#allocation9_spill] sm:$0xff]  ;;  %v8626_v37 = vld [vmem:[#allocation30_spill] sm:$0xff] }
 0xe15   :  { %v5604_v16 = vpop.f32.mrf.mxu1  ;;  %v5581_v63 = vadd.f32 %v8601_v42, %v8328_v30  ;;  %v8629_v30 = vld [vmem:[#allocation31_spill] sm:$0xff] }
 0xe16   :  { %v5605_v24 = vadd.f32 %v5604_v16, %v5603_v27  ;;  %v5587_v27 = vadd.f32 %v5586_v60, %v5585_v33 }
 0xe17   :  { %v5606_v49 = vpop.f32.mrf.mxu1 }
 0xe18   :  { %v4528_v25 = vadd.f32 %v5717_v19, %v5605_v24  ;;  %v4517_v24 = vadd.f32 %v5708_v51, %v5596_v23  ;;  %v8607_v51 = vld [vmem:[#allocation11_spill] sm:$0xff]  ;;  %v8621_v19 = vld [vmem:[#allocation17_spill] sm:$0xff] }
 0xe19   :  { %v5607_v9 = vpop.f32.mrf.mxu1 }
 0xe1a   :  { %v5608_v62 = vadd.f32 %v5607_v9, %v5606_v49  ;;  %v4553_v16 = vpack.c.bf16 %v4528_v25, %v4525_v41  ;;  %v4552_v50 = vpack.c.bf16 %v4520_v39, %v4517_v24  ;;  %v8600_v49 = vpack.c.bf16 %v8288_v21, %v8283_v61  ;;  %v8602_v25 = vld [vmem:[#allocation4_spill] sm:$0xff]  ;;  %v8611_v61 = vld [vmem:[#allocation14_spill] sm:$0xff] }
 0xe1b   :  { %v5609_v13 = vpop.f32.mrf.mxu1  ;;  %v5699_v9 = vadd.f32 %v8292_v2, %v8285_v4  ;;  %v8612_v4 = vld [vmem:[#allocation15_spill] sm:$0xff]  ;;  %v8615_v2 = vld [vmem:[#allocation29_spill] sm:$0xff]  ;;  %v8630_v39 = vld [vmem:[#allocation18_spill] sm:$0xff] }
 0xe1c   :  { %v4533_v55 = vadd.f32 %v5720_v57, %v5608_v62  ;;  %v4512_v62 = vadd.f32 %v5705_v12, %v5593_v20  ;;  %v5584_v57 = vadd.f32 %v5583_v11, %v5582_v0  ;;  %v8608_v20 = vld [vmem:[#allocation27_spill] sm:$0xff]  ;;  %v8613_v21 = vpack.c.bf16 %v8611_v61, %v8612_v4 }
 0xe1d   :  { %v5610_v45 = vpop.f32.mrf.mxu1  ;;  %v4504_v48 = vadd.f32 %v5699_v9, %v5587_v27  ;;  %v8609_v6 = vpack.c.bf16 %v8607_v51, %v8608_v20  ;;  %v8616_v7 = vpack.c.bf16 %v8614_v54, %v8615_v2  ;;  %v8631_v0 = vld [vmem:[#allocation19_spill] sm:$0xff] }
 0xe1e   :  { %v5611_v14 = vadd.f32 %v5610_v45, %v5609_v13  ;;  %v5702_v13 = vadd.f32 %v8304_v3, %v8297_v32  ;;  %v4501_v43 = vadd.f32 %v5696_v53, %v5584_v57  ;;  %v8617_v32 = vld [vmem:[#allocation6_spill] sm:$0xff]  ;;  %v8620_v3 = vld [vmem:[#allocation16_spill] sm:$0xff]  ;;  %v8632_v38 = vpack.c.bf16 %v8630_v39, %v8631_v0 }
 0xe1f   :  { %v8619_v47 = vpack.c.bf16 %v8617_v32, %v8618_v58  ;;  %v8622_v5 = vpack.c.bf16 %v8620_v3, %v8621_v19  ;;  %v8623_v45 = vld [vmem:[#allocation12_spill] sm:$0xff] }
 0xe20   :  { %v4536_v52 = vadd.f32 %v5723_v1, %v5611_v14  ;;  %v4509_v1 = vadd.f32 %v5702_v13, %v5590_v29  ;;  %v4550_v41 = vpack.c.bf16 %v4504_v48, %v4501_v43  ;;  %v8625_v34 = vpack.c.bf16 %v8623_v45, %v8624_v15  ;;  %v5072_v13 = vld [vmem:[%s8442_s13] ss:$0 sm:$0xff] }
 0xe21   :  { %v3698_v14 = vmul.f32 %v8627_v17, %v8626_v37 }
 0xe22   :  { %v4554_v40 = vpack.c.bf16 %v4536_v52, %v4533_v55  ;;  %v4551_v60 = vpack.c.bf16 %v4512_v62, %v4509_v1  ;;  %v8603_v55 = vld [vmem:[#allocation8_spill] sm:$0xff]  ;;  %v3696_v52 = vmul.f32 %v8629_v30, %v8628_v10 }
 0xe23   :  { %v8604_v22 = vpack.c.bf16 %v8602_v25, %v8603_v55 }
 0xe24   :  { %5724 = vmatprep.subr.bf16.mxu1 %v4554_v40  ;;  %v8606_v40 = vld [vmem:[#allocation5_spill] sm:$0xff]  ;;  %v3702_v33 = vpack.c.bf16 %v3698_v14, %v3696_v52 }
 0xe25   :  { %5725 = vmatpush3.bf16.msra.mxu1 %v8599_v28  ;;  %v5693_v23 = vadd.f32 %v8606_v40, %v8605_v35  ;;  %v6031_v28 = vld [vmem:[%s8441_s14] sm:$0xff]  }
 0xe26   :  { %5726 = vmatprep.subr.bf16.mxu1 %v4553_v16  ;;  %v6030_v16 = vld [vmem:[%s8441_s14 + $0x8] sm:$0xff]  }
 0xe27   :  { %v4496_v11 = vadd.f32 %v5693_v23, %v5581_v63  ;;  %5762 = vmatprep.subr.bf16.mxu0 %v6030_v16 }
 0xe28   :  { %5763 = vmatpush3.bf16.msra.mxu0 %v6030_v16 }
 0xe29   :  { %5727 = vmatpush3.bf16.msra.mxu1 %v8600_v49  ;;  %v4549_v44 = vpack.c.bf16 %v4496_v11, %v8610_v59  ;;  %5764 = vmatprep.subr.bf16.mxu0 %v6031_v28  ;;  %v5073_v11 = vld [vmem:[%s8443_s15] ss:$0 sm:$0xff] }
 0xe2a   :  { %5728 = vmatprep.subr.bf16.mxu1 %v4552_v50 }
 0xe2c   :  { %5765 = vmatpush3.bf16.msra.mxu0 %v6031_v28 }
 0xe2d   :  { %5729 = vmatpush3.bf16.msra.mxu1 %v8604_v22 }
 0xe2e   :  { %5730 = vmatprep.subr.bf16.mxu1 %v4551_v60 }
 0xe31   :  { %5731 = vmatpush3.bf16.msra.mxu1 %v8609_v6 }
 0xe32   :  { %5732 = vmatprep.subr.bf16.mxu1 %v4550_v41 }
 0xe35   :  { %5733 = vmatpush3.bf16.msra.mxu1 %v8613_v21 }
 0xe36   :  { %5734 = vmatprep.subr.bf16.mxu1 %v4549_v44 }
 0xe39   :  { %5735 = vmatpush3.bf16.msra.mxu1 %v8616_v7 }
 0xe3a   :  { %5736 = vmatprep.subr.bf16.mxu1 %v8619_v47 }
 0xe3d   :  { %5737 = vmatpush3.bf16.msra.mxu1 %v8622_v5 }
 0xe3e   :  { %5738 = vmatprep.subr.bf16.mxu1 %v8625_v34 }
 0xe41   :  { %5739 = vmatpush3.bf16.msra.mxu1 %v8632_v38 }
 0xe44   :  { %4595 = vmatmul.mubr.bf16.vlgmr.msra.gmra.mxu1 %v8635_v31 }
 0xe45   :  { %4602 = vmatprep.mubr.bf16.mxu1 %v3702_v33 }
 0xe4c   :  { %4603 = vmatmul.mubr.bf16.gmra.mxu1 %v8638_v36 }
 0xf04   :  { %v5740_v12 = vpop.f32.mrf.mxu1 }
 0xf06   :  { %v5741_v29 = vpop.f32.mrf.mxu1 }
 0xf07   :  { %v5742_v24 = vadd.f32 %v5741_v29, %v5740_v12 }
 0xf08   :  { %v5743_v27 = vpop.f32.mrf.mxu1 }
 0xf09   :  { %v4597_v50 = vadd.f32 %v5742_v24, %v5072_v13 }
 0xf0a   :  { %v5744_v62 = vpop.f32.mrf.mxu1 }
 0xf0b   :  { %v5745_v49 = vadd.f32 %v5744_v62, %v5743_v27  ;;  %v4611_v53 = vmax.f32 %v4597_v50, 0.0 }
 0xf0c   :  { %v5746_v9 = vpop.f32.mrf.mxu1 }
 0xf0d   :  { %v4600_v57 = vadd.f32 %v5745_v49, %v5072_v13 }
 0xf0e   :  { %v5747_v1 = vpop.f32.mrf.mxu1 }
 0xf0f   :  { %v4612_v42 = vmax.f32 %v4600_v57, 0.0  ;;  %v5748_v63 = vadd.f32 %v5747_v1, %v5746_v9 }
 0xf10   :  { %v5749_v48 = vpop.f32.mrf.mxu1 }
 0xf11   :  { %v4615_v60 = vpack.c.bf16 %v4612_v42, %v4611_v53  ;;  %v4605_v55 = vadd.f32 %v5748_v63, %v5072_v13 }
 0xf12   :  { %v5750_v25 = vpop.f32.mrf.mxu1 }
 0xf13   :  { %v5751_v22 = vadd.f32 %v5750_v25, %v5749_v48  ;;  %5766 = vmatprep.mubr.msk.bf16.mxu0 %vm2878_vm4, %v4615_v60  ;;  %v4613_v40 = vmax.f32 %v4605_v55, 0.0 }
 0xf15   :  { %v4608_v35 = vadd.f32 %v5751_v22, %v5072_v13 }
 0xf17   :  { %v4614_v23 = vmax.f32 %v4608_v35, 0.0 }
 0xf19   :  { %v4616_v43 = vpack.c.bf16 %v4614_v23, %v4613_v40 }
 0xf1b   :  { %5767 = vmatmul.mubr.msk.bf16.vlgmr.msra.gmra.mxu0 %vm2878_vm4, %v4616_v43 }
 0xfdb   :  { %v5768_v41 = vpop.f32.mrf.mxu0 }
 0xfdc   :  { %v4705_v51 = vadd.f32 %v5768_v41, %v5073_v11 }
 0xfdd   :  { %v4696_v20 = vpop.f32.mrf.mxu0 }
 0xfde   :  { %v4697_v6 = vadd.f32 %v5073_v11, %v4696_v20  ;;  %v4717_v59 = vsel %vm781_vm2, %v4705_v51, -inf }
 0xfdf   :  { %4718 = vmax.xlane.f32.xlu0 %v4717_v59  ;;  %v5769_v44 = vpop.f32.mrf.mxu0 }
 0xfe0   :  { %v4711_v21 = vsel %vm781_vm2, %v4697_v6, -inf  ;;  %v4708_v54 = vadd.f32 %v5769_v44, %v5073_v11 }
 0xfe1   :  { %v4699_v61 = vpop.f32.mrf.mxu0 }
 0xfe2   :  { %v4700_v4 = vadd.f32 %v5073_v11, %v4699_v61  ;;  %v4720_v7 = vsel %vm781_vm2, %v4708_v54, -inf }
 0xfe3   :  { %4712 = vmax.xlane.f32.xlu0 %v4711_v21 }
 0xfe4   :  { %v4714_v2 = vsel %vm781_vm2, %v4700_v4, -inf }
 0xfe7   :  { %4715 = vmax.xlane.f32.xlu0 %v4714_v2 }
 0xfeb   :  { %4721 = vmax.xlane.f32.xlu0 %v4720_v7 }
0x1068   :  { %v4719_v32 = vpop.xlane.xlu0 %4718 }
0x1069   :  { %v4725_v58 = vsub.f32 %v4705_v51, %v4719_v32 }
0x106b   :  { %v4731_v19 = vmul.f32 1.442695, %v4725_v58 }
0x106c   :  { %v4713_v47 = vpop.xlane.xlu0 %4712 }
0x106d   :  { %v4723_v3 = vsub.f32 %v4697_v6, %v4713_v47 }
0x106f   :  { %v4727_v5 = vmul.f32 1.442695, %v4723_v3 }
0x1070   :  { %v4716_v45 = vpop.xlane.xlu0 %4715 }
0x1071   :  { %6080 = vpow2.f32 %v4727_v5  ;;  %v4724_v15 = vsub.f32 %v4700_v4, %v4716_v45 }
0x1072   :  { %6082 = vpow2.f32 %v4731_v19 }
0x1073   :  { %v4729_v34 = vmul.f32 1.442695, %v4724_v15 }
0x1074   :  { %v4722_v37 = vpop.xlane.xlu0 %4721 }
0x1075   :  { %6084 = vpow2.f32 %v4729_v34  ;;  %v4726_v17 = vsub.f32 %v4708_v54, %v4722_v37 }
0x1077   :  { %v4733_v14 = vmul.f32 1.442695, %v4726_v17 }
0x1079   :  { %6086 = vpow2.f32 %v4733_v14 }
0x107e   :  { %v6081_v10 = vpop.eup %6080 }
0x107f   :  { %v4735_v30 = vsel %vm781_vm2, %v6081_v10, 0.0  ;;  %v6083_v52 = vpop.eup %6082 }
0x1080   :  { %4736 = vadd.xlane.f32.xlu0 %v4735_v30  ;;  %v4741_v0 = vsel %vm781_vm2, %v6083_v52, 0.0 }
0x1082   :  { %v6085_v39 = vpop.eup %6084 }
0x1083   :  { %v4738_v38 = vsel %vm781_vm2, %v6085_v39, 0.0 }
0x1084   :  { %4742 = vadd.xlane.f32.xlu0 %v4741_v0  ;;  %4739 = vadd.xlane.f32.xlu1 %v4738_v38 }
0x1086   :  { %v6087_v33 = vpop.eup %6086 }
0x1087   :  { %v4744_v18 = vsel %vm781_vm2, %v6087_v33, 0.0 }
0x1088   :  { %4745 = vadd.xlane.f32.xlu1 %v4744_v18 }
0x1109   :  { %v4737_v8 = vpop.xlane.xlu0 %4736 }
0x110a   :  { %6088 = vlog2.f32 %v4737_v8 }
0x110d   :  { %v4740_v31 = vpop.xlane.xlu1 %4739  ;;  %v4743_v26 = vpop.xlane.xlu0 %4742 }
0x110e   :  { %6090 = vlog2.f32 %v4740_v31 }
0x110f   :  { %6092 = vlog2.f32 %v4743_v26 }
0x1111   :  { %v4746_v56 = vpop.xlane.xlu1 %4745 }
0x1112   :  { %6094 = vlog2.f32 %v4746_v56 }
0x1117   :  { %v6089_v36 = vpop.eup %6088 }
0x1118   :  { %v4748_v46 = vmul.f32 0.6931472, %v6089_v36 }
0x111a   :  { %v4755_v16 = vsub.f32 %v4723_v3, %v4748_v46 }
0x111b   :  { %v6091_v28 = vpop.eup %6090 }
0x111c   :  { %v6093_v12 = vpop.eup %6092  ;;  %4759 = vst.msk [vmem:[%s8444_s16] sm:$0xff] %vm781_vm2, %v4755_v16  ;;  %v4750_v29 = vmul.f32 0.6931472, %v6091_v28 }
0x111d   :  { %v4752_v24 = vmul.f32 0.6931472, %v6093_v12 }
0x111e   :  { %v4756_v13 = vsub.f32 %v4724_v15, %v4750_v29 }
0x111f   :  { %v6095_v27 = vpop.eup %6094  ;;  %v4757_v62 = vsub.f32 %v4725_v58, %v4752_v24 }
0x1120   :  { %4760 = vst.msk [vmem:[%s8444_s16 + $0x8] sm:$0xff] %vm781_vm2, %v4756_v13  ;;  %v4754_v50 = vmul.f32 0.6931472, %v6095_v27 }
0x1121   :  { %4761 = vst.msk [vmem:[%s8444_s16 + $0x10] sm:$0xff] %vm781_vm2, %v4757_v62 }
0x1122   :  { %v4758_v49 = vsub.f32 %v4726_v17, %v4754_v50 }
0x1124   :  { %4762 = vst.msk [vmem:[%s8444_s16 + $0x18] sm:$0xff] %vm781_vm2, %v4758_v49 }

</bundles_post_ra>
